<compile_context>
chip_gen: v6e
topology: v6e:2x2x1
jax: 0.10.0
libtpu: 0.0.40
codegen_flags: <defaults>
</compile_context>

<pallas_src>
import jax
import jax.numpy as jnp
from jax.experimental import pallas as pl
from jax.experimental.pallas import tpu as pltpu


def topic_drift_kernel(x_ref, w1_ref, b1_ref, wa_ref, w2_ref, b2_ref, w3_ref,
                       ba_ref, b3_ref, out_ref):
    TB, W, D = x_ref.shape
    H = w1_ref.shape[1]

    # embedding_processor: Linear(D -> H) + ReLU  (Dropout = identity in eval).
    # One tall (TB*W, D) bf16 MXU matmul with f32 accumulation.
    x2 = x_ref[...].reshape(TB * W, D)                               # bf16 (TB*W, D)
    h2 = jnp.dot(x2, w1_ref[...],
                 preferred_element_type=jnp.float32)                 # f32 (TB*W, H)
    h2 = jnp.maximum(h2 + b1_ref[...], 0.0)
    h = h2.reshape(TB, W, H)                                         # f32 (TB, W, H)

    # attention: Linear(H -> 1) as VPU multiply + lane reduce (no N=1 MXU matmul),
    # softmax over the window dim, kept in f32.
    wa = wa_ref[...].reshape(1, 1, H)
    logits = jnp.sum(h * wa, axis=-1) + ba_ref[0, 0]                 # (TB, W)
    m = jnp.max(logits, axis=-1, keepdims=True)
    e = jnp.exp(logits - m)                                          # (TB, W), in [0, 1]
    l = jnp.sum(e, axis=-1, keepdims=True)                           # (TB, 1)

    # Weighted sum over the window WITHOUT a second (TB, W, H) temporary:
    # accumulate un-normalized context, then normalize once via the EUP reciprocal.
    context = e[:, 0:1] * h[:, 0, :]                                 # (TB, H)
    for w in range(1, W):                                            # W is small & static
        context = context + e[:, w:w + 1] * h[:, w, :]
    context = context * pl.reciprocal(l, approx=True)                # (TB, H)

    # regressor: Linear(H -> H//2) + ReLU + Linear(H//2 -> 1) + Sigmoid.
    r = jnp.dot(context.astype(w2_ref.dtype), w2_ref[...],
                preferred_element_type=jnp.float32) + b2_ref[...]
    r = jnp.maximum(r, 0.0)                                          # (TB, H2)
    z = jnp.sum(r * w3_ref[...], axis=-1, keepdims=True) + b3_ref[0, 0]  # (TB, 1)

    # Lane-dense store: (TB,) results written as one (1, TB) row.
    out_ref[...] = jax.nn.sigmoid(z).reshape(1, TB).astype(out_ref.dtype)


def _round_up(n, m):
    return ((n + m - 1) // m) * m


# Scoped-VMEM budget safe on every generation (v5e/v6e: 128 MiB physical,
# v7x: 64 MiB physical / 32 MiB default scoped).
_VMEM_LIMIT_BYTES = 48 * 1024 * 1024


def _estimate_vmem_bytes(TB, W, D, H, H2):
    """Rough per-step VMEM footprint, including 128-lane padding and double-buffering."""
    lane = 128
    d_p, h_p, h2_p = max(D, lane), max(H, lane), max(H2, lane)
    x_tile = 2 * TB * W * d_p * 2              # bf16 x, double-buffered input block
    h_tmp = TB * W * h_p * 4                   # processed (f32); the only (TB,W,H) live temp
    small = 6 * TB * lane * 4                  # logits / e / context / r / z slack (f32)
    weights = 2 * (_round_up(D, 8) * h_p * 2 + _round_up(H, 8) * h2_p * 2
                   + 4 * 8 * lane * 4)         # resident w1/w2 (bf16) + bias rows (dbl-buffered)
    out_tile = 2 * 8 * TB * 4                  # (1, TB) output block, sublane-padded
    return x_tile + h_tmp + small + weights + out_tile


def _choose_tb(B, W, D, H, H2, block_b=None):
    """Pick the batch tile: big tiles for large B (step-overhead amortization),
    capped by the VMEM budget; lane-multiple-of-128 whenever B >= 32."""
    if B < 32:
        return _round_up(max(B, 1), 8)
    cap = _round_up(B, 128)
    if block_b is not None:
        return min(_round_up(block_b, 128), cap)
    budget = int(0.75 * _VMEM_LIMIT_BYTES)
    for cand in (1024, 512, 256, 128):
        tb = min(cand, cap)
        if _estimate_vmem_bytes(tb, W, D, H, H2) <= budget:
            return tb
    return min(128, cap)


def topic_drift_forward(x_flat, params, input_dim, block_b=None):
    """x_flat: (B, W*D) float32 -> (B, 1) float32 drift scores."""
    B = x_flat.shape[0]
    D = input_dim
    W = x_flat.shape[1] // D
    H = params["w1"].shape[1]
    H2 = params["w2"].shape[1]

    TB = _choose_tb(B, W, D, H, H2, block_b)

    # bf16 on the HBM-dominant x stream and the MXU weight operands; everything
    # else (biases, attention/regressor row vectors, VPU math) stays f32.
    x = x_flat.reshape(B, W, D).astype(jnp.bfloat16)
    B_eff = B
    if B < TB:
        # Tiny pad (< TB rows) only when a single block would exceed the array;
        # large-B ragged tails use Pallas partial blocks (no extra HBM copy of x).
        x = jnp.pad(x, ((0, TB - B), (0, 0), (0, 0)))
        B_eff = TB
    G = (B_eff + TB - 1) // TB
    B_out = G * TB

    w1 = params["w1"].astype(jnp.bfloat16)
    w2 = params["w2"].astype(jnp.bfloat16)
    wa_row = params["wa"].reshape(1, H)    # f32, VPU path
    w3_row = params["w3"].reshape(1, H2)   # f32, VPU path

    out_row = pl.pallas_call(
        topic_drift_kernel,
        out_shape=jax.ShapeDtypeStruct((1, B_out), jnp.float32),
        grid=(G,),
        in_specs=[
            pl.BlockSpec((TB, W, D), lambda i: (i, 0, 0)),      # x: batch-tiled (bf16)
            pl.BlockSpec((D, H), lambda i: (0, 0)),             # w1 (resident, bf16)
            pl.BlockSpec((1, H), lambda i: (0, 0)),             # b1 (f32)
            pl.BlockSpec((1, H), lambda i: (0, 0)),             # wa row (f32)
            pl.BlockSpec((H, H2), lambda i: (0, 0)),            # w2 (resident, bf16)
            pl.BlockSpec((1, H2), lambda i: (0, 0)),            # b2 (f32)
            pl.BlockSpec((1, H2), lambda i: (0, 0)),            # w3 row (f32)
            pl.BlockSpec(memory_space=pltpu.MemorySpace.SMEM),  # ba scalar
            pl.BlockSpec(memory_space=pltpu.MemorySpace.SMEM),  # b3 scalar
        ],
        out_specs=pl.BlockSpec((1, TB), lambda i: (0, i)),      # lane-dense output row
        compiler_params=pltpu.CompilerParams(
            # TODO(synk): on v7x, verify in the trace that this parallel axis spans both
            # TensorCores; if not, switch to pltpu.CORE_PARALLEL on the batch axis.
            dimension_semantics=("parallel",),
            vmem_limit_bytes=_VMEM_LIMIT_BYTES),
    )(x, w1, params["b1"], wa_row, w2, params["b2"], w3_row,
      params["ba"], params["b3"])

    return out_row[0, :B].reshape(B, 1)


def init_params(key, input_dim, hidden_dim):
    """Deterministic init mimicking nn.Linear default (uniform +/- 1/sqrt(fan_in)).

    Weights are stored as (in_features, out_features), all f32 (cast to bf16 in wrapper)."""
    h2 = hidden_dim // 2
    keys = jax.random.split(key, 8)

    def lin(kw, kb, fan_in, fan_out):
        bound = 1.0 / jnp.sqrt(fan_in)
        w = jax.random.uniform(kw, (fan_in, fan_out), jnp.float32, -bound, bound)
        b = jax.random.uniform(kb, (1, fan_out), jnp.float32, -bound, bound)
        return w, b

    w1, b1 = lin(keys[0], keys[1], input_dim, hidden_dim)
    wa, ba = lin(keys[2], keys[3], hidden_dim, 1)
    w2, b2 = lin(keys[4], keys[5], hidden_dim, h2)
    w3, b3 = lin(keys[6], keys[7], h2, 1)
    return dict(w1=w1, b1=b1, wa=wa, ba=ba, w2=w2, b2=b2, w3=w3, b3=b3)


def reference_forward(x_flat, params, input_dim):
    """Pure-JAX f32 reference for correctness check."""
    B = x_flat.shape[0]
    W = x_flat.shape[1] // input_dim
    x = x_flat.reshape(B, W, input_dim)
    h = jnp.maximum(x @ params["w1"] + params["b1"], 0.0)
    logits = h @ params["wa"] + params["ba"]
    attn = jax.nn.softmax(logits, axis=1)
    context = jnp.sum(attn * h, axis=1)
    r = jnp.maximum(context @ params["w2"] + params["b2"], 0.0)
    return jax.nn.sigmoid(r @ params["w3"] + params["b3"])


if __name__ == "__main__":
    # Small shapes consistent with the module: batch=2, window=8, input_dim=32, hidden=32
    B, W, D, H = 2, 8, 32, 32

    key = jax.random.PRNGKey(0)
    kx, kp = jax.random.split(key)
    x_flat = jax.random.normal(kx, (B, W * D), jnp.float32)
    params = init_params(kp, D, H)

    out = topic_drift_forward(x_flat, params, D)
    out = jax.block_until_ready(out)
    ref = reference_forward(x_flat, params, D)
    assert out.shape == (B, 1)
    # bf16 MXU operands + approx reciprocal => loosened tolerance vs f32 reference.
    assert jnp.allclose(out, ref, atol=2e-2, rtol=2e-2), (out, ref)

    # Also exercise the large-B path (multi-step grid + ragged last block, no x pad).
    B2 = 1300
    x2_flat = jax.random.normal(jax.random.PRNGKey(1), (B2, W * D), jnp.float32)
    out2 = jax.block_until_ready(topic_drift_forward(x2_flat, params, D))
    ref2 = reference_forward(x2_flat, params, D)
    assert out2.shape == (B2, 1)
    assert jnp.allclose(out2, ref2, atol=2e-2, rtol=2e-2)

    print("KERNEL_OK")
</pallas_src>

<mosaic_0001>
module attributes {stable_mosaic.version = 11 : i64} {
  func.func @topic_drift_kernel(%arg0: i32, %arg1: memref<8x8x32xbf16, #tpu.memory_space<vmem>>, %arg2: memref<32x32xbf16, #tpu.memory_space<vmem>>, %arg3: memref<1x32xf32, #tpu.memory_space<vmem>>, %arg4: memref<1x32xf32, #tpu.memory_space<vmem>>, %arg5: memref<32x16xbf16, #tpu.memory_space<vmem>>, %arg6: memref<1x16xf32, #tpu.memory_space<vmem>>, %arg7: memref<1x16xf32, #tpu.memory_space<vmem>>, %arg8: memref<1x1xf32, #tpu.memory_space<smem>>, %arg9: memref<1x1xf32, #tpu.memory_space<smem>>, %arg10: memref<1x8xf32, #tpu.memory_space<vmem>>) attributes {dimension_semantics = [#tpu.dimension_semantics<parallel>], iteration_bounds = array<i64: 1>, scalar_prefetch = 0 : i64, scratch_operands = 0 : i64, tpu.core_type = #tpu.core_type<tc>, window_params = [{transform_indices = @transform_0, window_bounds = array<i64: 8, 8, 32>}, {pipeline_mode = #tpu.pipeline_mode<synchronous>, transform_indices = @transform_1, window_bounds = array<i64: 32, 32>}, {pipeline_mode = #tpu.pipeline_mode<synchronous>, transform_indices = @transform_2, window_bounds = array<i64: 1, 32>}, {pipeline_mode = #tpu.pipeline_mode<synchronous>, transform_indices = @transform_3, window_bounds = array<i64: 1, 32>}, {pipeline_mode = #tpu.pipeline_mode<synchronous>, transform_indices = @transform_4, window_bounds = array<i64: 32, 16>}, {pipeline_mode = #tpu.pipeline_mode<synchronous>, transform_indices = @transform_5, window_bounds = array<i64: 1, 16>}, {pipeline_mode = #tpu.pipeline_mode<synchronous>, transform_indices = @transform_6, window_bounds = array<i64: 1, 16>}, {transform_indices = @transform_7, window_bounds = array<i64: 1, 1>}, {transform_indices = @transform_8, window_bounds = array<i64: 1, 1>}, {transform_indices = @transform_9, window_bounds = array<i64: 1, 8>}]} {
    %c0 = arith.constant 0 : index
    %c0_0 = arith.constant 0 : index
    %c0_1 = arith.constant 0 : index
    %0 = vector.load %arg1[%c0, %c0_0, %c0_1] : memref<8x8x32xbf16, #tpu.memory_space<vmem>>, vector<8x8x32xbf16>
    %1 = vector.shape_cast %0 : vector<8x8x32xbf16> to vector<64x32xbf16>
    %c0_2 = arith.constant 0 : index
    %c0_3 = arith.constant 0 : index
    %2 = vector.load %arg2[%c0_2, %c0_3] : memref<32x32xbf16, #tpu.memory_space<vmem>>, vector<32x32xbf16>
    %cst = arith.constant dense<0.000000e+00> : vector<64x32xf32>
    %3 = tpu.matmul %1, %2, %cst {dimension_numbers = #tpu.dot_dimension_numbers<[1], [0], [0], [1], [0, 0, 1, 1], [], []>} : vector<64x32xbf16>, vector<32x32xbf16>, vector<64x32xf32> -> vector<64x32xf32>
    %c0_4 = arith.constant 0 : index
    %c0_5 = arith.constant 0 : index
    %4 = vector.load %arg3[%c0_4, %c0_5] : memref<1x32xf32, #tpu.memory_space<vmem>>, vector<1x32xf32>
    %5 = vector.broadcast %4 : vector<1x32xf32> to vector<64x32xf32>
    %6 = arith.addf %3, %5 : vector<64x32xf32>
    %cst_6 = arith.constant 0.000000e+00 : f32
    %7 = vector.broadcast %cst_6 : f32 to vector<64x32xf32>
    %8 = arith.maximumf %6, %7 : vector<64x32xf32>
    %9 = vector.shape_cast %8 : vector<64x32xf32> to vector<8x8x32xf32>
    %c0_7 = arith.constant 0 : index
    %c0_8 = arith.constant 0 : index
    %10 = vector.load %arg4[%c0_7, %c0_8] : memref<1x32xf32, #tpu.memory_space<vmem>>, vector<1x32xf32>
    %11 = vector.shape_cast %10 : vector<1x32xf32> to vector<1x1x32xf32>
    %12 = vector.broadcast %11 : vector<1x1x32xf32> to vector<8x8x32xf32>
    %13 = arith.mulf %9, %12 : vector<8x8x32xf32>
    %cst_9 = arith.constant dense<0.000000e+00> : vector<8x8xf32>
    %14 = vector.multi_reduction <add>, %13, %cst_9 [2] : vector<8x8x32xf32> to vector<8x8xf32>
    %c0_10 = arith.constant 0 : index
    %c0_11 = arith.constant 0 : index
    %15 = memref.load %arg8[%c0_10, %c0_11] : memref<1x1xf32, #tpu.memory_space<smem>>
    %16 = vector.broadcast %15 : f32 to vector<8x8xf32>
    %17 = arith.addf %14, %16 : vector<8x8xf32>
    %cst_12 = arith.constant dense<0xFF800000> : vector<8xf32>
    %18 = vector.multi_reduction <maximumf>, %17, %cst_12 [1] : vector<8x8xf32> to vector<8xf32>
    %19 = vector.shape_cast %18 : vector<8xf32> to vector<8x1xf32>
    %20 = vector.broadcast %19 : vector<8x1xf32> to vector<8x8xf32>
    %21 = arith.subf %17, %20 : vector<8x8xf32>
    %22 = math.exp %21 : vector<8x8xf32>
    %cst_13 = arith.constant dense<0.000000e+00> : vector<8xf32>
    %23 = vector.multi_reduction <add>, %22, %cst_13 [1] : vector<8x8xf32> to vector<8xf32>
    %24 = vector.shape_cast %23 : vector<8xf32> to vector<8x1xf32>
    %25 = vector.extract_strided_slice %22 {offsets = [0, 0], sizes = [8, 1], strides = [1, 1]} : vector<8x8xf32> to vector<8x1xf32>
    %26 = vector.extract_strided_slice %9 {offsets = [0, 0, 0], sizes = [8, 1, 32], strides = [1, 1, 1]} : vector<8x8x32xf32> to vector<8x1x32xf32>
    %27 = vector.shape_cast %26 : vector<8x1x32xf32> to vector<8x32xf32>
    %28 = vector.broadcast %25 : vector<8x1xf32> to vector<8x32xf32>
    %29 = arith.mulf %28, %27 : vector<8x32xf32>
    %30 = vector.extract_strided_slice %22 {offsets = [0, 1], sizes = [8, 1], strides = [1, 1]} : vector<8x8xf32> to vector<8x1xf32>
    %31 = vector.extract_strided_slice %9 {offsets = [0, 1, 0], sizes = [8, 1, 32], strides = [1, 1, 1]} : vector<8x8x32xf32> to vector<8x1x32xf32>
    %32 = vector.shape_cast %31 : vector<8x1x32xf32> to vector<8x32xf32>
    %33 = vector.broadcast %30 : vector<8x1xf32> to vector<8x32xf32>
    %34 = arith.mulf %33, %32 : vector<8x32xf32>
    %35 = arith.addf %29, %34 : vector<8x32xf32>
    %36 = vector.extract_strided_slice %22 {offsets = [0, 2], sizes = [8, 1], strides = [1, 1]} : vector<8x8xf32> to vector<8x1xf32>
    %37 = vector.extract_strided_slice %9 {offsets = [0, 2, 0], sizes = [8, 1, 32], strides = [1, 1, 1]} : vector<8x8x32xf32> to vector<8x1x32xf32>
    %38 = vector.shape_cast %37 : vector<8x1x32xf32> to vector<8x32xf32>
    %39 = vector.broadcast %36 : vector<8x1xf32> to vector<8x32xf32>
    %40 = arith.mulf %39, %38 : vector<8x32xf32>
    %41 = arith.addf %35, %40 : vector<8x32xf32>
    %42 = vector.extract_strided_slice %22 {offsets = [0, 3], sizes = [8, 1], strides = [1, 1]} : vector<8x8xf32> to vector<8x1xf32>
    %43 = vector.extract_strided_slice %9 {offsets = [0, 3, 0], sizes = [8, 1, 32], strides = [1, 1, 1]} : vector<8x8x32xf32> to vector<8x1x32xf32>
    %44 = vector.shape_cast %43 : vector<8x1x32xf32> to vector<8x32xf32>
    %45 = vector.broadcast %42 : vector<8x1xf32> to vector<8x32xf32>
    %46 = arith.mulf %45, %44 : vector<8x32xf32>
    %47 = arith.addf %41, %46 : vector<8x32xf32>
    %48 = vector.extract_strided_slice %22 {offsets = [0, 4], sizes = [8, 1], strides = [1, 1]} : vector<8x8xf32> to vector<8x1xf32>
    %49 = vector.extract_strided_slice %9 {offsets = [0, 4, 0], sizes = [8, 1, 32], strides = [1, 1, 1]} : vector<8x8x32xf32> to vector<8x1x32xf32>
    %50 = vector.shape_cast %49 : vector<8x1x32xf32> to vector<8x32xf32>
    %51 = vector.broadcast %48 : vector<8x1xf32> to vector<8x32xf32>
    %52 = arith.mulf %51, %50 : vector<8x32xf32>
    %53 = arith.addf %47, %52 : vector<8x32xf32>
    %54 = vector.extract_strided_slice %22 {offsets = [0, 5], sizes = [8, 1], strides = [1, 1]} : vector<8x8xf32> to vector<8x1xf32>
    %55 = vector.extract_strided_slice %9 {offsets = [0, 5, 0], sizes = [8, 1, 32], strides = [1, 1, 1]} : vector<8x8x32xf32> to vector<8x1x32xf32>
    %56 = vector.shape_cast %55 : vector<8x1x32xf32> to vector<8x32xf32>
    %57 = vector.broadcast %54 : vector<8x1xf32> to vector<8x32xf32>
    %58 = arith.mulf %57, %56 : vector<8x32xf32>
    %59 = arith.addf %53, %58 : vector<8x32xf32>
    %60 = vector.extract_strided_slice %22 {offsets = [0, 6], sizes = [8, 1], strides = [1, 1]} : vector<8x8xf32> to vector<8x1xf32>
    %61 = vector.extract_strided_slice %9 {offsets = [0, 6, 0], sizes = [8, 1, 32], strides = [1, 1, 1]} : vector<8x8x32xf32> to vector<8x1x32xf32>
    %62 = vector.shape_cast %61 : vector<8x1x32xf32> to vector<8x32xf32>
    %63 = vector.broadcast %60 : vector<8x1xf32> to vector<8x32xf32>
    %64 = arith.mulf %63, %62 : vector<8x32xf32>
    %65 = arith.addf %59, %64 : vector<8x32xf32>
    %66 = vector.extract_strided_slice %22 {offsets = [0, 7], sizes = [8, 1], strides = [1, 1]} : vector<8x8xf32> to vector<8x1xf32>
    %67 = vector.extract_strided_slice %9 {offsets = [0, 7, 0], sizes = [8, 1, 32], strides = [1, 1, 1]} : vector<8x8x32xf32> to vector<8x1x32xf32>
    %68 = vector.shape_cast %67 : vector<8x1x32xf32> to vector<8x32xf32>
    %69 = vector.broadcast %66 : vector<8x1xf32> to vector<8x32xf32>
    %70 = arith.mulf %69, %68 : vector<8x32xf32>
    %71 = arith.addf %65, %70 : vector<8x32xf32>
    %72 = tpu.reciprocal %24 {approx = true} : vector<8x1xf32> -> vector<8x1xf32>
    %73 = vector.broadcast %72 : vector<8x1xf32> to vector<8x32xf32>
    %74 = arith.mulf %71, %73 : vector<8x32xf32>
    %75 = arith.truncf %74 : vector<8x32xf32> to vector<8x32xbf16>
    %c0_14 = arith.constant 0 : index
    %c0_15 = arith.constant 0 : index
    %76 = vector.load %arg5[%c0_14, %c0_15] : memref<32x16xbf16, #tpu.memory_space<vmem>>, vector<32x16xbf16>
    %cst_16 = arith.constant dense<0.000000e+00> : vector<8x16xf32>
    %77 = tpu.matmul %75, %76, %cst_16 {dimension_numbers = #tpu.dot_dimension_numbers<[1], [0], [0], [1], [0, 0, 1, 1], [], []>} : vector<8x32xbf16>, vector<32x16xbf16>, vector<8x16xf32> -> vector<8x16xf32>
    %c0_17 = arith.constant 0 : index
    %c0_18 = arith.constant 0 : index
    %78 = vector.load %arg6[%c0_17, %c0_18] : memref<1x16xf32, #tpu.memory_space<vmem>>, vector<1x16xf32>
    %79 = vector.broadcast %78 : vector<1x16xf32> to vector<8x16xf32>
    %80 = arith.addf %77, %79 : vector<8x16xf32>
    %cst_19 = arith.constant 0.000000e+00 : f32
    %81 = vector.broadcast %cst_19 : f32 to vector<8x16xf32>
    %82 = arith.maximumf %80, %81 : vector<8x16xf32>
    %c0_20 = arith.constant 0 : index
    %c0_21 = arith.constant 0 : index
    %83 = vector.load %arg7[%c0_20, %c0_21] : memref<1x16xf32, #tpu.memory_space<vmem>>, vector<1x16xf32>
    %84 = vector.broadcast %83 : vector<1x16xf32> to vector<8x16xf32>
    %85 = arith.mulf %82, %84 : vector<8x16xf32>
    %cst_22 = arith.constant dense<0.000000e+00> : vector<8xf32>
    %86 = vector.multi_reduction <add>, %85, %cst_22 [1] : vector<8x16xf32> to vector<8xf32>
    %87 = vector.shape_cast %86 : vector<8xf32> to vector<8x1xf32>
    %c0_23 = arith.constant 0 : index
    %c0_24 = arith.constant 0 : index
    %88 = memref.load %arg9[%c0_23, %c0_24] : memref<1x1xf32, #tpu.memory_space<smem>>
    %89 = vector.broadcast %88 : f32 to vector<8x1xf32>
    %90 = arith.addf %87, %89 : vector<8x1xf32>
    %91 = arith.negf %90 : vector<8x1xf32>
    %92 = math.exp %91 : vector<8x1xf32>
    %cst_25 = arith.constant 1.000000e+00 : f32
    %93 = vector.broadcast %cst_25 : f32 to vector<8x1xf32>
    %94 = arith.addf %93, %92 : vector<8x1xf32>
    %95 = arith.divf %93, %94 : vector<8x1xf32>
    %96 = vector.shape_cast %95 : vector<8x1xf32> to vector<1x8xf32>
    %c0_26 = arith.constant 0 : index
    %c0_27 = arith.constant 0 : index
    %97 = vector.load %arg10[%c0_26, %c0_27] : memref<1x8xf32, #tpu.memory_space<vmem>>, vector<1x8xf32>
    tpu.vector_store %arg10[%c0_26, %c0_27], %96 {strides = array<i32>} : memref<1x8xf32, #tpu.memory_space<vmem>>, vector<1x8xf32>,
    return
  }
  func.func @transform_0(%arg0: i32) -> (i32, i32, i32) {
    %c0_i32 = arith.constant 0 : i32
    %c0_i32_0 = arith.constant 0 : i32
    %c0_i32_1 = arith.constant 0 : i32
    return %arg0, %c0_i32, %c0_i32_0 : i32, i32, i32
  }
  func.func @transform_1(%arg0: i32) -> (i32, i32) {
    %c0_i32 = arith.constant 0 : i32
    %c0_i32_0 = arith.constant 0 : i32
    %c0_i32_1 = arith.constant 0 : i32
    return %c0_i32, %c0_i32_0 : i32, i32
  }
  func.func @transform_2(%arg0: i32) -> (i32, i32) {
    %c0_i32 = arith.constant 0 : i32
    %c0_i32_0 = arith.constant 0 : i32
    %c0_i32_1 = arith.constant 0 : i32
    return %c0_i32, %c0_i32_0 : i32, i32
  }
  func.func @transform_3(%arg0: i32) -> (i32, i32) {
    %c0_i32 = arith.constant 0 : i32
    %c0_i32_0 = arith.constant 0 : i32
    %c0_i32_1 = arith.constant 0 : i32
    return %c0_i32, %c0_i32_0 : i32, i32
  }
  func.func @transform_4(%arg0: i32) -> (i32, i32) {
    %c0_i32 = arith.constant 0 : i32
    %c0_i32_0 = arith.constant 0 : i32
    %c0_i32_1 = arith.constant 0 : i32
    return %c0_i32, %c0_i32_0 : i32, i32
  }
  func.func @transform_5(%arg0: i32) -> (i32, i32) {
    %c0_i32 = arith.constant 0 : i32
    %c0_i32_0 = arith.constant 0 : i32
    %c0_i32_1 = arith.constant 0 : i32
    return %c0_i32, %c0_i32_0 : i32, i32
  }
  func.func @transform_6(%arg0: i32) -> (i32, i32) {
    %c0_i32 = arith.constant 0 : i32
    %c0_i32_0 = arith.constant 0 : i32
    %c0_i32_1 = arith.constant 0 : i32
    return %c0_i32, %c0_i32_0 : i32, i32
  }
  func.func @transform_7(%arg0: i32) -> (i32, i32) {
    %c0_i32 = arith.constant 0 : i32
    %c0_i32_0 = arith.constant 0 : i32
    %c0_i32_1 = arith.constant 0 : i32
    return %c0_i32, %c0_i32_0 : i32, i32
  }
  func.func @transform_8(%arg0: i32) -> (i32, i32) {
    %c0_i32 = arith.constant 0 : i32
    %c0_i32_0 = arith.constant 0 : i32
    %c0_i32_1 = arith.constant 0 : i32
    return %c0_i32, %c0_i32_0 : i32, i32
  }
  func.func @transform_9(%arg0: i32) -> (i32, i32) {
    %c0_i32 = arith.constant 0 : i32
    %c0_i32_0 = arith.constant 0 : i32
    return %c0_i32, %arg0 : i32, i32
  }
}

</mosaic_0001>

<bundles_post_ra>
// kernel: tpu_custom_call.1
= control target key start
LH: loop header
LB: loop body
LE: loop exit
PB: predicated region body
PF: predicated region fallthrough
CT: control target
= control target key end

     0   :  { %16 = vsyncpa [#allocation5], 0  ;;  %s5445_s0 = inlined_call_operand.hbm [shape: bf16[8,8,32], index: 0, kind: input, shape index: {}]   ;;  %s5446_s1 = inlined_call_operand.vmem [shape: bf16[32,32], index: 1, kind: input, shape index: {}]   ;;  %s5447_s2 = inlined_call_operand.vmem [shape: f32[1,32], index: 2, kind: input, shape index: {}]   ;;  %s5448_s3 = inlined_call_operand.vmem [shape: f32[1,32], index: 3, kind: input, shape index: {}]   ;;  %s5449_s4 = inlined_call_operand.vmem [shape: bf16[32,16], index: 4, kind: input, shape index: {}]   ;;  %s5450_s5 = inlined_call_operand.vmem [shape: f32[1,16], index: 5, kind: input, shape index: {}]   ;;  %s5451_s6 = inlined_call_operand.vmem [shape: f32[1,16], index: 6, kind: input, shape index: {}]   ;;  %s5452_s7 = inlined_call_operand.<no memory space> [shape: f32[1,1], index: 7, kind: input, shape index: {}]   ;;  %s5453_s8 = inlined_call_operand.<no memory space> [shape: f32[1,1], index: 8, kind: input, shape index: {}]   ;;  %s5454_s9 = inlined_call_operand.hbm [shape: f32[1,8], index: 9, kind: output, shape index: {}]  }
   0x1   :  { %17 = vsyncpa [#allocation6], 0  ;;  %s3294_s30 = smov [#allocation4]  }
   0x2   :  { %s23_s10 = sshll.u32 %s3294_s30, 4  ;;  %s24_s10 = int_to_ptr.vmem [resolvable:$true] %s23_s10 }
   0x3   :  { %s3258_s11 = scalar_lea.vmem %s24_s10, 512  ;;  %p3263_p1 = scmp.lt.s32.totalorder %s24_s10, %s24_s10 }
   0x4   :  { %p3259_p0 = scmp.ne.s32.totalorder %s24_s10, %s3258_s11  ;;  %p3264_p2 = scmp.lt.s32.totalorder %s3258_s11, %s3258_s11 }
   0x6   :  { %p3265_p3 = por %p3264_p2, %p3263_p1 }
   0x8   :  { %p3266_p4 = pnand %p3265_p3, %p3259_p0 }
   0xa   :  { %3269 = shalt.err (!%p3266_p4)
}
   0xb   :  { %s3295_s12 = smov 64   ;;  %s3296_s13 = smov 4  }
   0xc   :  { %29 = dma.hbm_to_vmem [thread:$0]  %s5445_s0, 512, %s24_s10, [#allocation5], %s3295_s12, %s3295_s12, %s3296_s13  }
   0xd   :  { %3290 = dma.done.wait [#allocation5], 512  }
   0xe   :  { %3291 = vsyncadd [#allocation5], 4294966784  ;;  %v3220_v0 = vld [vmem:[%s5446_s1 + $0x8] sm:$0xff]   ;;  %v3221_v1 = vld [vmem:[%s5446_s1] sm:$0xff]   ;;  %vm101_vm0 = vcmask 261120   ;;  %v5455_v6 = vlaneseq  ;;  %vm278_vm1 = vcmask 1041409  }
   0xf   :  { %3191 = vmatprep.subr.bf16.mxu0 %v3220_v0  ;;  %v3222_v2 = vld [vmem:[#allocation4] sm:$0xff]   ;;  %v3223_v3 = vld [vmem:[#allocation4 + $0x8] sm:$0xff]   ;;  %v3224_v4 = vld [vmem:[#allocation4 + $0x10] sm:$0xff]   ;;  %vm280_vm2 = vcmask 1042434   ;;  %vm282_vm3 = vcmask 1043459   ;;  %vm284_vm4 = vcmask 1044484  }
  0x10   :  { %3192 = vmatpush3.bf16.msra.mxu0 %v3220_v0  ;;  %3195 = vmatprep.mubr.msk.bf16.mxu0 %vm101_vm0, %v3222_v2  ;;  %v3225_v5 = vld [vmem:[#allocation4 + $0x18] sm:$0xff]   ;;  %v3365_v7 = vshrl.u32 %v5455_v6, 7  ;;  %v3370_v8 = vld [vmem:[%s5447_s2] ss:$0 sm:$0xff]  ;;  %vm286_vm5 = vcmask 1045509   ;;  %vm288_vm6 = vcmask 1046534  }
  0x11   :  { %3193 = vmatprep.subr.bf16.mxu0 %v3221_v1  ;;  %v3400_v23 = vld [vmem:[%s5448_s3] ss:$0 sm:$0xff]  ;;  %vm290_vm7 = vcmask 1047559   ;;  %vm293_vm8 = vcmask 64512   ;;  %vm3299_vm9 = vmmov 0   ;;  %vm2907_vm10 = vcmask 130112  }
  0x12   :  { %5567 = vst [vmem:[#allocation10_spill] sm:$0xff] %v3365_v7  ;;  %v3374_v11 = vsub.s32 0, %v3365_v7  ;;  %v3381_v14 = vsub.s32 1, %v3365_v7  ;;  %v3386_v16 = vsub.s32 2, %v3365_v7  ;;  %v3408_v27 = vsub.s32 3, %v3365_v7 }
  0x13   :  { %vm2914_vm11 = vcmask 195712   ;;  %vm2921_vm12 = vcmask 261312   ;;  %vm3128_vm13 = vcmask 130048   ;;  %vm3147_vm14 = vcmask 57344  }
  0x14   :  { %3194 = vmatpush3.bf16.msra.mxu0 %v3221_v1  ;;  %5568 = vst [vmem:[#allocation11_spill] sm:$0xff] %v3374_v11  ;;  %5569 = vst [vmem:[#allocation12_spill] sm:$0xff] %v3381_v14 }
  0x15   :  { %5570 = vst [vmem:[#allocation13_spill] sm:$0xff] %v3386_v16  ;;  %5571 = vst [vmem:[#allocation14_spill] sm:$0xff] %v3408_v27 }
  0x17   :  { %3196 = vmatmul.mubr.msk.bf16.vlgmr.msra.gmra.mxu0 %vm101_vm0, %v3223_v3 }
  0x18   :  { %3199 = vmatprep.mubr.msk.bf16.mxu0 %vm101_vm0, %v3224_v4 }
  0x1f   :  { %3200 = vmatmul.mubr.msk.bf16.gmra.mxu0 %vm101_vm0, %v3225_v5 }
  0xd7   :  { %v3197_v9 = vpop.f32.mrf.mxu0 }
  0xd8   :  { %v157_v10 = vadd.f32 %v3197_v9, %v3370_v8 }
  0xd9   :  { %v148_v18 = vpop.f32.mrf.mxu0 }
  0xda   :  { %v3376_v12 = vmax.f32 %v157_v10, 0.0  ;;  %v149_v19 = vadd.f32 %v3370_v8, %v148_v18 }
  0xdb   :  { %v3198_v29 = vpop.f32.mrf.mxu0 }
  0xdc   :  { %v518_v13 = vrot.slane %v3376_v12, %v3374_v11  ;;  %v766_v15 = vrot.slane %v3376_v12, %v3381_v14  ;;  %v1046_v17 = vrot.slane %v3376_v12, %v3386_v16  ;;  %v3391_v20 = vmax.f32 %v149_v19, 0.0 }
  0xdd   :  { %v196_v24 = vmul.f32 %v3400_v23, %v3376_v12  ;;  %v160_v30 = vadd.f32 %v3198_v29, %v3370_v8  ;;  %v151_v37 = vpop.f32.mrf.mxu0 }
  0xde   :  { %524 = vbcast.lane.b32.xlu0 %v518_v13, 264  ;;  %520 = vbcast.lane.b32.xlu1 %v518_v13, 256  ;;  %v480_v21 = vrot.slane %v3391_v20, %v3374_v11  ;;  %v728_v22 = vrot.slane %v3391_v20, %v3381_v14  ;;  %v1008_v25 = vrot.slane %v3391_v20, %v3386_v16 }
  0xdf   :  { %v208_v26 = vsel %vm101_vm0, %v196_v24, 0.0  ;;  %v3412_v28 = vrot.slane %v3391_v20, %v3408_v27  ;;  %v3416_v31 = vmax.f32 %v160_v30, 0.0  ;;  %v194_v32 = vmul.f32 %v3400_v23, %v3391_v20  ;;  %v3201_v45 = vpop.f32.mrf.mxu0 }
  0xe0   :  { %v152_v38 = vadd.f32 %v3370_v8, %v151_v37  ;;  %v173_v46 = vadd.f32 %v3201_v45, %v3370_v8 }
  0xe1   :  { %v537_v33 = vrot.slane %v3416_v31, %v3374_v11  ;;  %v202_v34 = vsel %vm101_vm0, %v194_v32, 0.0  ;;  %v785_v35 = vrot.slane %v3416_v31, %v3381_v14  ;;  %v1065_v36 = vrot.slane %v3416_v31, %v3386_v16  ;;  %v164_v50 = vpop.f32.mrf.mxu0 }
  0xe2   :  { %528 = vbcast.lane.b32.xlu0 %v518_v13, 272  ;;  %772 = vbcast.lane.b32.xlu1 %v766_v15, 264  ;;  %v3429_v39 = vmax.f32 %v152_v38, 0.0  ;;  %v197_v41 = vmul.f32 %v3400_v23, %v3416_v31  ;;  %v3441_v47 = vmax.f32 %v173_v46, 0.0  ;;  %v165_v52 = vadd.f32 %v3370_v8, %v164_v50 }
  0xe3   :  { %v3202_v59 = vpop.f32.mrf.mxu0 }
  0xe4   :  { %v499_v40 = vrot.slane %v3429_v39, %v3374_v11  ;;  %v211_v42 = vsel %vm101_vm0, %v197_v41, 0.0  ;;  %v747_v43 = vrot.slane %v3429_v39, %v3381_v14  ;;  %v1027_v44 = vrot.slane %v3429_v39, %v3386_v16 }
  0xe5   :  { %v594_v48 = vrot.slane %v3441_v47, %v3374_v11  ;;  %v842_v49 = vrot.slane %v3441_v47, %v3381_v14  ;;  %v1122_v51 = vrot.slane %v3441_v47, %v3386_v16  ;;  %v195_v53 = vmul.f32 %v3400_v23, %v3429_v39  ;;  %v167_v37 = vpop.f32.mrf.mxu0 }
  0xe6   :  { %532 = vbcast.lane.b32.xlu0 %v518_v13, 280  ;;  %780 = vbcast.lane.b32.xlu1 %v766_v15, 280  ;;  %v3452_v54 = vmax.f32 %v165_v52, 0.0  ;;  %v176_v60 = vadd.f32 %v3202_v59, %v3370_v8 }
  0xe7   :  { %v205_v55 = vsel %vm101_vm0, %v195_v53, 0.0 }
  0xe8   :  { %v556_v56 = vrot.slane %v3452_v54, %v3374_v11  ;;  %v3459_v57 = vrot.slane %v3452_v54, %v3381_v14  ;;  %v3465_v58 = vrot.slane %v3452_v54, %v3386_v16  ;;  %v3471_v62 = vmax.f32 %v176_v60, 0.0 }
  0xea   :  { %768 = vbcast.lane.b32.xlu0 %v766_v15, 256  ;;  %1052 = vbcast.lane.b32.xlu1 %v1046_v17, 264  ;;  %v3478_v0 = vrot.slane %v3471_v62, %v3374_v11  ;;  %v3486_v2 = vrot.slane %v3471_v62, %v3381_v14  ;;  %v3494_v4 = vrot.slane %v3471_v62, %v3386_v16 }
  0xeb   :  { %v201_v32 = vmul.f32 %v3400_v23, %v3471_v62 }
  0xee   :  { %776 = vbcast.lane.b32.xlu0 %v766_v15, 272  ;;  %1060 = vbcast.lane.b32.xlu1 %v1046_v17, 280 }
  0xf2   :  { %1048 = vbcast.lane.b32.xlu0 %v1046_v17, 256 }
  0xf6   :  { %1056 = vbcast.lane.b32.xlu0 %v1046_v17, 272 }
  0xfa   :  { %482 = vbcast.lane.b32.xlu0 %v480_v21, 256 }
  0xfe   :  { %486 = vbcast.lane.b32.xlu0 %v480_v21, 264 }
 0x102   :  { %490 = vbcast.lane.b32.xlu0 %v480_v21, 272 }
 0x106   :  { %494 = vbcast.lane.b32.xlu0 %v480_v21, 280  ;;  %v200_v21 = vmul.f32 %v3400_v23, %v3441_v47 }
 0x108   :  { %v220_v24 = vsel %vm101_vm0, %v200_v21, 0.0  ;;  %v3599_v21 = vrot.slane %v3376_v12, %v3408_v27 }
 0x10a   :  { %730 = vbcast.lane.b32.xlu0 %v728_v22, 256 }
 0x10e   :  { %738 = vbcast.lane.b32.xlu0 %v728_v22, 272 }
 0x112   :  { %209 = vadd.xlane.f32.xlu1 %v208_v26  ;;  %1010 = vbcast.lane.b32.xlu0 %v1008_v25, 256 }
 0x116   :  { %1018 = vbcast.lane.b32.xlu0 %v1008_v25, 272 }
 0x11a   :  { %1290 = vbcast.lane.b32.xlu0 %v3412_v28, 256 }
 0x123   :  { %734 = vbcast.lane.b32.xlu1 %v728_v22, 264 }
 0x127   :  { %742 = vbcast.lane.b32.xlu1 %v728_v22, 280 }
 0x12b   :  { %1014 = vbcast.lane.b32.xlu1 %v1008_v25, 264 }
 0x12f   :  { %1022 = vbcast.lane.b32.xlu1 %v1008_v25, 280 }
 0x133   :  { %1294 = vbcast.lane.b32.xlu1 %v3412_v28, 264 }
 0x137   :  { %543 = vbcast.lane.b32.xlu1 %v537_v33, 264 }
 0x139   :  { %203 = vadd.xlane.f32.xlu0 %v202_v34  ;;  %v223_v34 = vsel %vm101_vm0, %v201_v32, 0.0 }
 0x13b   :  { %551 = vbcast.lane.b32.xlu1 %v537_v33, 280 }
 0x13f   :  { %791 = vbcast.lane.b32.xlu1 %v785_v35, 264 }
 0x143   :  { %799 = vbcast.lane.b32.xlu1 %v785_v35, 280 }
 0x147   :  { %1071 = vbcast.lane.b32.xlu1 %v1065_v36, 264 }
 0x14b   :  { %1079 = vbcast.lane.b32.xlu1 %v1065_v36, 280 }
 0x14f   :  { %539 = vbcast.lane.b32.xlu0 %v537_v33, 256 }
 0x150   :  { %v3468_v61 = vpop.permute.xlu0 %524  ;;  %v3499_v9 = vpop.permute.xlu1 %520 }
 0x151   :  { %5576 = vst [vmem:[#allocation19_spill] sm:$0xff] %v3499_v9 }
 0x153   :  { %547 = vbcast.lane.b32.xlu0 %v537_v33, 272 }
 0x154   :  { %v3474_v63 = vpop.permute.xlu0 %528  ;;  %v3504_v13 = vpop.permute.xlu1 %772 }
 0x155   :  { %5572 = vst [vmem:[#allocation15_spill] sm:$0xff] %v3474_v63 }
 0x157   :  { %787 = vbcast.lane.b32.xlu0 %v785_v35, 256 }
 0x158   :  { %v3481_v1 = vpop.permute.xlu0 %532  ;;  %v3508_v17 = vpop.permute.xlu1 %780 }
 0x159   :  { %5573 = vst [vmem:[#allocation16_spill] sm:$0xff] %v3481_v1  ;;  %5579 = vst [vmem:[#allocation22_spill] sm:$0xff] %v3508_v17 }
 0x15b   :  { %795 = vbcast.lane.b32.xlu0 %v785_v35, 272 }
 0x15c   :  { %v3489_v3 = vpop.permute.xlu0 %768  ;;  %v3512_v19 = vpop.permute.xlu1 %1052 }
 0x15d   :  { %5574 = vst [vmem:[#allocation17_spill] sm:$0xff] %v3489_v3  ;;  %5580 = vst [vmem:[#allocation23_spill] sm:$0xff] %v3512_v19 }
 0x15f   :  { %1067 = vbcast.lane.b32.xlu0 %v1065_v36, 256 }
 0x160   :  { %v3496_v5 = vpop.permute.xlu0 %776  ;;  %v3519_v25 = vpop.permute.xlu1 %1060 }
 0x161   :  { %5575 = vst [vmem:[#allocation18_spill] sm:$0xff] %v3496_v5  ;;  %5582 = vst [vmem:[#allocation25_spill] sm:$0xff] %v3519_v25 }
 0x163   :  { %1075 = vbcast.lane.b32.xlu0 %v1065_v36, 272 }
 0x164   :  { %v3502_v10 = vpop.permute.xlu0 %1048 }
 0x165   :  { %5577 = vst [vmem:[#allocation20_spill] sm:$0xff] %v3502_v10 }
 0x167   :  { %501 = vbcast.lane.b32.xlu0 %v499_v40, 256 }
 0x168   :  { %v3506_v15 = vpop.permute.xlu0 %1056 }
 0x169   :  { %5578 = vst [vmem:[#allocation21_spill] sm:$0xff] %v3506_v15 }
 0x16b   :  { %505 = vbcast.lane.b32.xlu0 %v499_v40, 264 }
 0x16c   :  { %v3510_v18 = vpop.permute.xlu0 %482 }
 0x16f   :  { %212 = vadd.xlane.f32.xlu1 %v211_v42  ;;  %509 = vbcast.lane.b32.xlu0 %v499_v40, 272 }
 0x170   :  { %v3516_v22 = vpop.permute.xlu0 %486 }
 0x171   :  { %5581 = vst [vmem:[#allocation24_spill] sm:$0xff] %v3516_v22 }
 0x173   :  { %513 = vbcast.lane.b32.xlu0 %v499_v40, 280  ;;  %v168_v40 = vadd.f32 %v3370_v8, %v167_v37  ;;  %v198_v37 = vmul.f32 %v3400_v23, %v3452_v54 }
 0x174   :  { %v3521_v26 = vpop.permute.xlu0 %490 }
 0x175   :  { %5583 = vst [vmem:[#allocation26_spill] sm:$0xff] %v3521_v26  ;;  %v3541_v42 = vmax.f32 %v168_v40, 0.0  ;;  %v3615_v40 = vsub.s32 4, %v3365_v7  ;;  %v3733_v26 = vsub.s32 5, %v3365_v7 }
 0x177   :  { %749 = vbcast.lane.b32.xlu0 %v747_v43, 256  ;;  %v3575_v52 = vrot.slane %v3541_v42, %v3386_v16  ;;  %5598 = vst [vmem:[#allocation41_spill] sm:$0xff] %v3615_v40  ;;  %5625 = vst [vmem:[#allocation68_spill] sm:$0xff] %v3733_v26 }
 0x178   :  { %v3525_v30 = vpop.permute.xlu0 %494 }
 0x17b   :  { %757 = vbcast.lane.b32.xlu0 %v747_v43, 272 }
 0x17c   :  { %v3532_v35 = vpop.permute.xlu0 %730 }
 0x17f   :  { %1029 = vbcast.lane.b32.xlu0 %v1027_v44, 256 }
 0x180   :  { %753 = vbcast.lane.b32.xlu1 %v747_v43, 264  ;;  %v3536_v38 = vpop.permute.xlu0 %738 }
 0x181   :  { %5585 = vst [vmem:[#allocation28_spill] sm:$0xff] %v3536_v38 }
 0x183   :  { %1037 = vbcast.lane.b32.xlu0 %v1027_v44, 272 }
 0x184   :  { %761 = vbcast.lane.b32.xlu1 %v747_v43, 280  ;;  %v3543_v43 = vpop.permute.xlu0 %1010 }
 0x188   :  { %1033 = vbcast.lane.b32.xlu1 %v1027_v44, 264  ;;  %v3553_v46 = vpop.permute.xlu0 %1018 }
 0x189   :  { %5587 = vst [vmem:[#allocation30_spill] sm:$0xff] %v3553_v46 }
 0x18c   :  { %1041 = vbcast.lane.b32.xlu1 %v1027_v44, 280  ;;  %v3547_v44 = vrot.slane %v3541_v42, %v3374_v11 }
 0x190   :  { %600 = vbcast.lane.b32.xlu1 %v594_v48, 264 }
 0x194   :  { %608 = vbcast.lane.b32.xlu1 %v594_v48, 280 }
 0x198   :  { %848 = vbcast.lane.b32.xlu1 %v842_v49, 264 }
 0x19b   :  { %v3523_v29 = vpop.xlane.xlu1 %209 }
 0x19c   :  { %856 = vbcast.lane.b32.xlu1 %v842_v49, 280 }
 0x19f   :  { %v3529_v33 = vpop.permute.xlu1 %734 }
 0x1a0   :  { %1128 = vbcast.lane.b32.xlu1 %v1122_v51, 264  ;;  %5584 = vst [vmem:[#allocation27_spill] sm:$0xff] %v3529_v33 }
 0x1a2   :  { %206 = vadd.xlane.f32.xlu0 %v205_v55 }
 0x1a3   :  { %v3534_v36 = vpop.permute.xlu1 %742 }
 0x1a4   :  { %1136 = vbcast.lane.b32.xlu1 %v1122_v51, 280 }
 0x1a7   :  { %v3539_v41 = vpop.permute.xlu1 %1014 }
 0x1a8   :  { %562 = vbcast.lane.b32.xlu1 %v556_v56, 264  ;;  %5586 = vst [vmem:[#allocation29_spill] sm:$0xff] %v3539_v41  ;;  %v3624_v41 = vrot.slane %v3391_v20, %v3615_v40 }
 0x1ab   :  { %v3549_v45 = vpop.permute.xlu1 %1022 }
 0x1ac   :  { %570 = vbcast.lane.b32.xlu1 %v556_v56, 280 }
 0x1af   :  { %v3557_v8 = vpop.permute.xlu1 %1294 }
 0x1b0   :  { %810 = vbcast.lane.b32.xlu1 %v3459_v57, 264  ;;  %5588 = vst [vmem:[#allocation31_spill] sm:$0xff] %v3557_v8 }
 0x1b3   :  { %v3567_v50 = vpop.permute.xlu1 %543 }
 0x1b4   :  { %818 = vbcast.lane.b32.xlu1 %v3459_v57, 280  ;;  %5589 = vst [vmem:[#allocation32_spill] sm:$0xff] %v3567_v50 }
 0x1b7   :  { %v3578_v53 = vpop.permute.xlu1 %551 }
 0x1b8   :  { %1090 = vbcast.lane.b32.xlu1 %v3465_v58, 264  ;;  %596 = vbcast.lane.b32.xlu0 %v594_v48, 256  ;;  %5590 = vst [vmem:[#allocation33_spill] sm:$0xff] %v3578_v53 }
 0x1bc   :  { %1098 = vbcast.lane.b32.xlu1 %v3465_v58, 280  ;;  %604 = vbcast.lane.b32.xlu0 %v594_v48, 272  ;;  %v3561_v48 = vrot.slane %v3541_v42, %v3381_v14 }
 0x1c0   :  { %619 = vbcast.lane.b32.xlu1 %v3478_v0, 264  ;;  %844 = vbcast.lane.b32.xlu0 %v842_v49, 256 }
 0x1c4   :  { %627 = vbcast.lane.b32.xlu1 %v3478_v0, 280  ;;  %852 = vbcast.lane.b32.xlu0 %v842_v49, 272  ;;  %v3563_v49 = vpop.permute.xlu0 %1290 }
 0x1c8   :  { %867 = vbcast.lane.b32.xlu1 %v3486_v2, 264  ;;  %1124 = vbcast.lane.b32.xlu0 %v1122_v51, 256 }
 0x1cc   :  { %875 = vbcast.lane.b32.xlu1 %v3486_v2, 280  ;;  %1132 = vbcast.lane.b32.xlu0 %v1122_v51, 272  ;;  %v3569_v51 = vpop.xlane.xlu0 %203 }
 0x1d0   :  { %1147 = vbcast.lane.b32.xlu1 %v3494_v4, 264  ;;  %v3580_v55 = vpop.permute.xlu0 %539 }
 0x1d1   :  { %5591 = vst [vmem:[#allocation34_spill] sm:$0xff] %v3580_v55 }
 0x1d4   :  { %1155 = vbcast.lane.b32.xlu1 %v3494_v4, 280  ;;  %v3589_v59 = vpop.permute.xlu0 %547 }
 0x1d5   :  { %5593 = vst [vmem:[#allocation36_spill] sm:$0xff] %v3589_v59 }
 0x1d8   :  { %v3595_v60 = vpop.permute.xlu0 %787 }
 0x1d9   :  { %5595 = vst [vmem:[#allocation38_spill] sm:$0xff] %v3595_v60 }
 0x1dc   :  { %v3604_v32 = vpop.permute.xlu0 %795 }
 0x1dd   :  { %5597 = vst [vmem:[#allocation40_spill] sm:$0xff] %v3604_v32 }
 0x1e0   :  { %v3619_v8 = vpop.permute.xlu0 %1067 }
 0x1e1   :  { %5600 = vst [vmem:[#allocation43_spill] sm:$0xff] %v3619_v8 }
 0x1e4   :  { %v3629_v50 = vpop.permute.xlu0 %1075 }
 0x1e5   :  { %5601 = vst [vmem:[#allocation44_spill] sm:$0xff] %v3629_v50 }
 0x1e8   :  { %v3634_v60 = vpop.permute.xlu0 %501 }
 0x1eb   :  { %221 = vadd.xlane.f32.xlu0 %v220_v24 }
 0x1f8   :  { %224 = vadd.xlane.f32.xlu1 %v223_v34  ;;  %v3609_v34 = vrot.slane %v3416_v31, %v3408_v27 }
 0x201   :  { %558 = vbcast.lane.b32.xlu0 %v556_v56, 256 }
 0x205   :  { %566 = vbcast.lane.b32.xlu0 %v556_v56, 272  ;;  %v3584_v56 = vrot.slane %v3429_v39, %v3408_v27 }
 0x209   :  { %581 = vbcast.lane.b32.xlu1 %v3547_v44, 264  ;;  %806 = vbcast.lane.b32.xlu0 %v3459_v57, 256 }
 0x20d   :  { %589 = vbcast.lane.b32.xlu1 %v3547_v44, 280  ;;  %814 = vbcast.lane.b32.xlu0 %v3459_v57, 272  ;;  %v3587_v57 = vpop.permute.xlu1 %791 }
 0x20e   :  { %5592 = vst [vmem:[#allocation35_spill] sm:$0xff] %v3587_v57 }
 0x211   :  { %829 = vbcast.lane.b32.xlu1 %v3561_v48, 264  ;;  %1086 = vbcast.lane.b32.xlu0 %v3465_v58, 256 }
 0x215   :  { %837 = vbcast.lane.b32.xlu1 %v3561_v48, 280  ;;  %1094 = vbcast.lane.b32.xlu0 %v3465_v58, 272  ;;  %v3593_v58 = vpop.permute.xlu1 %799 }
 0x216   :  { %5594 = vst [vmem:[#allocation37_spill] sm:$0xff] %v3593_v58 }
 0x219   :  { %1109 = vbcast.lane.b32.xlu1 %v3575_v52, 264  ;;  %v3602_v24 = vpop.permute.xlu1 %1071 }
 0x21a   :  { %5596 = vst [vmem:[#allocation39_spill] sm:$0xff] %v3602_v24  ;;  %v214_v24 = vsel %vm101_vm0, %v198_v37, 0.0  ;;  %v3638_v37 = vpop.permute.xlu0 %505 }
 0x21b   :  { %5603 = vst [vmem:[#allocation46_spill] sm:$0xff] %v3638_v37 }
 0x21d   :  { %1313 = vbcast.lane.b32.xlu1 %v3584_v56, 264  ;;  %v3617_v6 = vpop.permute.xlu1 %1079 }
 0x21e   :  { %5599 = vst [vmem:[#allocation42_spill] sm:$0xff] %v3617_v6 }
 0x221   :  { %1302 = vbcast.lane.b32.xlu1 %v3412_v28, 280  ;;  %v3627_v57 = vpop.xlane.xlu1 %212 }
 0x225   :  { %1321 = vbcast.lane.b32.xlu1 %v3584_v56, 280  ;;  %v3632_v15 = vpop.permute.xlu1 %753 }
 0x226   :  { %5602 = vst [vmem:[#allocation45_spill] sm:$0xff] %v3632_v15 }
 0x229   :  { %1332 = vbcast.lane.b32.xlu1 %v3599_v21, 264  ;;  %v3636_v8 = vpop.permute.xlu1 %761 }
 0x22d   :  { %1340 = vbcast.lane.b32.xlu1 %v3599_v21, 280  ;;  %v3640_v55 = vpop.permute.xlu1 %1033 }
 0x22e   :  { %5604 = vst [vmem:[#allocation47_spill] sm:$0xff] %v3640_v55  ;;  %v199_v55 = vmul.f32 %v3400_v23, %v3541_v42 }
 0x230   :  { %v217_v63 = vsel %vm101_vm0, %v199_v55, 0.0 }
 0x231   :  { %1351 = vbcast.lane.b32.xlu1 %v3609_v34, 264  ;;  %v3645_v33 = vpop.permute.xlu1 %1041 }
 0x234   :  { %215 = vadd.xlane.f32.xlu0 %v214_v24  ;;  %v3643_v24 = vpop.permute.xlu0 %509 }
 0x235   :  { %1574 = vbcast.lane.b32.xlu1 %v3624_v41, 264  ;;  %5605 = vst [vmem:[#allocation48_spill] sm:$0xff] %v3643_v24  ;;  %v3651_v15 = vpop.permute.xlu1 %600  ;;  %v3713_v24 = vrot.slane %v3541_v42, %v3408_v27 }
 0x236   :  { %5606 = vst [vmem:[#allocation49_spill] sm:$0xff] %v3651_v15 }
 0x238   :  { %v3648_v22 = vpop.permute.xlu0 %513 }
 0x239   :  { %1117 = vbcast.lane.b32.xlu1 %v3575_v52, 280  ;;  %v3658_v37 = vpop.permute.xlu1 %608 }
 0x23a   :  { %5607 = vst [vmem:[#allocation50_spill] sm:$0xff] %v3658_v37 }
 0x23c   :  { %v3654_v5 = vpop.permute.xlu0 %749 }
 0x23d   :  { %v3665_v10 = vpop.permute.xlu1 %848 }
 0x23e   :  { %5609 = vst [vmem:[#allocation52_spill] sm:$0xff] %v3665_v10  ;;  %v3757_v10 = vrot.slane %v3441_v47, %v3408_v27 }
 0x241   :  { %v3670_v46 = vpop.permute.xlu1 %856 }
 0x242   :  { %5610 = vst [vmem:[#allocation53_spill] sm:$0xff] %v3670_v46 }
 0x245   :  { %v3676_v55 = vpop.permute.xlu1 %1128 }
 0x246   :  { %5612 = vst [vmem:[#allocation55_spill] sm:$0xff] %v3676_v55 }
 0x249   :  { %v3683_v50 = vpop.permute.xlu1 %1136 }
 0x24a   :  { %615 = vbcast.lane.b32.xlu0 %v3478_v0, 256  ;;  %5613 = vst [vmem:[#allocation56_spill] sm:$0xff] %v3683_v50  ;;  %v3772_v50 = vrot.slane %v3452_v54, %v3615_v40 }
 0x24d   :  { %v3692_v3 = vpop.permute.xlu1 %562 }
 0x24e   :  { %623 = vbcast.lane.b32.xlu0 %v3478_v0, 272  ;;  %v3662_v0 = vpop.permute.xlu0 %757  ;;  %5615 = vst [vmem:[#allocation58_spill] sm:$0xff] %v3692_v3 }
 0x24f   :  { %5608 = vst [vmem:[#allocation51_spill] sm:$0xff] %v3662_v0  ;;  %v1606_v0 = vrot.slane %v3376_v12, %v3615_v40 }
 0x252   :  { %863 = vbcast.lane.b32.xlu0 %v3486_v2, 256 }
 0x256   :  { %871 = vbcast.lane.b32.xlu0 %v3486_v2, 272  ;;  %v3668_v2 = vpop.permute.xlu0 %1029 }
 0x25a   :  { %1143 = vbcast.lane.b32.xlu0 %v3494_v4, 256  ;;  %v3673_v23 = vpop.permute.xlu0 %1037 }
 0x25b   :  { %5611 = vst [vmem:[#allocation54_spill] sm:$0xff] %v3673_v23  ;;  %v1364_v23 = vrot.slane %v3452_v54, %v3408_v27 }
 0x25d   :  { %218 = vadd.xlane.f32.xlu1 %v217_v63  ;;  %v1587_v63 = vrot.slane %v3429_v39, %v3615_v40 }
 0x25e   :  { %1151 = vbcast.lane.b32.xlu0 %v3494_v4, 272  ;;  %v3680_v4 = vpop.xlane.xlu0 %206 }
 0x262   :  { %577 = vbcast.lane.b32.xlu0 %v3547_v44, 256 }
 0x266   :  { %585 = vbcast.lane.b32.xlu0 %v3547_v44, 272  ;;  %v3687_v44 = vpop.permute.xlu0 %596 }
 0x267   :  { %5614 = vst [vmem:[#allocation57_spill] sm:$0xff] %v3687_v44 }
 0x26a   :  { %825 = vbcast.lane.b32.xlu0 %v3561_v48, 256  ;;  %v3694_v9 = vpop.permute.xlu0 %604 }
 0x26b   :  { %5616 = vst [vmem:[#allocation59_spill] sm:$0xff] %v3694_v9 }
 0x26e   :  { %1593 = vbcast.lane.b32.xlu1 %v1587_v63, 264  ;;  %833 = vbcast.lane.b32.xlu0 %v3561_v48, 272  ;;  %v3698_v48 = vpop.permute.xlu1 %570  ;;  %v3701_v44 = vpop.permute.xlu0 %844 }
 0x26f   :  { %5617 = vst [vmem:[#allocation60_spill] sm:$0xff] %v3698_v48  ;;  %5618 = vst [vmem:[#allocation61_spill] sm:$0xff] %v3701_v44 }
 0x272   :  { %1359 = vbcast.lane.b32.xlu1 %v3609_v34, 280  ;;  %1105 = vbcast.lane.b32.xlu0 %v3575_v52, 256  ;;  %v3708_v9 = vpop.permute.xlu0 %852 }
 0x273   :  { %5620 = vst [vmem:[#allocation63_spill] sm:$0xff] %v3708_v9  ;;  %v3726_v9 = vrot.slane %v3416_v31, %v3615_v40 }
 0x276   :  { %1370 = vbcast.lane.b32.xlu1 %v1364_v23, 264  ;;  %1113 = vbcast.lane.b32.xlu0 %v3575_v52, 272  ;;  %v3706_v52 = vpop.permute.xlu1 %810  ;;  %v3719_v44 = vpop.permute.xlu0 %1124 }
 0x277   :  { %5619 = vst [vmem:[#allocation62_spill] sm:$0xff] %v3706_v52  ;;  %5622 = vst [vmem:[#allocation65_spill] sm:$0xff] %v3719_v44 }
 0x27a   :  { %1582 = vbcast.lane.b32.xlu1 %v3624_v41, 280  ;;  %1309 = vbcast.lane.b32.xlu0 %v3584_v56, 256  ;;  %v3728_v38 = vpop.permute.xlu0 %1132 }
 0x27b   :  { %5624 = vst [vmem:[#allocation67_spill] sm:$0xff] %v3728_v38  ;;  %v3746_v38 = vrot.slane %v3429_v39, %v3733_v26 }
 0x27e   :  { %1601 = vbcast.lane.b32.xlu1 %v1587_v63, 280  ;;  %1298 = vbcast.lane.b32.xlu0 %v3412_v28, 272  ;;  %v3715_v28 = vpop.permute.xlu1 %818  ;;  %v3739_v44 = vpop.xlane.xlu0 %221 }
 0x27f   :  { %5621 = vst [vmem:[#allocation64_spill] sm:$0xff] %v3715_v28 }
 0x282   :  { %1612 = vbcast.lane.b32.xlu1 %v1606_v0, 264  ;;  %1317 = vbcast.lane.b32.xlu0 %v3584_v56, 272  ;;  %v3722_v56 = vpop.permute.xlu1 %1090  ;;  %v3750_v59 = vpop.permute.xlu0 %558 }
 0x283   :  { %5623 = vst [vmem:[#allocation66_spill] sm:$0xff] %v3722_v56  ;;  %5627 = vst [vmem:[#allocation70_spill] sm:$0xff] %v3750_v59 }
 0x286   :  { %1378 = vbcast.lane.b32.xlu1 %v1364_v23, 280  ;;  %1328 = vbcast.lane.b32.xlu0 %v3599_v21, 256  ;;  %v3741_v32 = vpop.permute.xlu1 %1098  ;;  %v3759_v15 = vpop.permute.xlu0 %566 }
 0x287   :  { %5626 = vst [vmem:[#allocation69_spill] sm:$0xff] %v3741_v32  ;;  %5629 = vst [vmem:[#allocation72_spill] sm:$0xff] %v3759_v15 }
 0x28a   :  { %1389 = vbcast.lane.b32.xlu1 %v3713_v24, 264  ;;  %1336 = vbcast.lane.b32.xlu0 %v3599_v21, 272  ;;  %v3737_v21 = vrot.slane %v3391_v20, %v3733_v26  ;;  %v3752_v55 = vpop.permute.xlu1 %619 }
 0x28b   :  { %5628 = vst [vmem:[#allocation71_spill] sm:$0xff] %v3752_v55 }
 0x28e   :  { %1620 = vbcast.lane.b32.xlu1 %v1606_v0, 280  ;;  %1347 = vbcast.lane.b32.xlu0 %v3609_v34, 256  ;;  %v3761_v32 = vpop.permute.xlu1 %627 }
 0x28f   :  { %5630 = vst [vmem:[#allocation73_spill] sm:$0xff] %v3761_v32 }
 0x292   :  { %1631 = vbcast.lane.b32.xlu1 %v3726_v9, 264  ;;  %1570 = vbcast.lane.b32.xlu0 %v3624_v41, 256  ;;  %v3768_v59 = vpop.permute.xlu1 %867 }
 0x293   :  { %5632 = vst [vmem:[#allocation75_spill] sm:$0xff] %v3768_v59 }
 0x296   :  { %1854 = vbcast.lane.b32.xlu1 %v3737_v21, 264  ;;  %1589 = vbcast.lane.b32.xlu0 %v1587_v63, 256  ;;  %v3777_v32 = vpop.permute.xlu1 %875 }
 0x297   :  { %5634 = vst [vmem:[#allocation77_spill] sm:$0xff] %v3777_v32 }
 0x29a   :  { %1873 = vbcast.lane.b32.xlu1 %v3746_v38, 264  ;;  %1355 = vbcast.lane.b32.xlu0 %v3609_v34, 272  ;;  %v3766_v34 = vpop.permute.xlu0 %806 }
 0x29b   :  { %5631 = vst [vmem:[#allocation74_spill] sm:$0xff] %v3766_v34  ;;  %v3788_v34 = vrot.slane %v3376_v12, %v3733_v26 }
 0x29e   :  { %1397 = vbcast.lane.b32.xlu1 %v3713_v24, 280  ;;  %1366 = vbcast.lane.b32.xlu0 %v1364_v23, 256  ;;  %v3775_v15 = vpop.permute.xlu0 %814 }
 0x29f   :  { %5633 = vst [vmem:[#allocation76_spill] sm:$0xff] %v3775_v15 }
 0x2a2   :  { %1408 = vbcast.lane.b32.xlu1 %v3757_v10, 264  ;;  %1578 = vbcast.lane.b32.xlu0 %v3624_v41, 272  ;;  %v3782_v41 = vpop.permute.xlu0 %1086 }
 0x2a3   :  { %5635 = vst [vmem:[#allocation78_spill] sm:$0xff] %v3782_v41 }
 0x2a6   :  { %1639 = vbcast.lane.b32.xlu1 %v3726_v9, 280  ;;  %1597 = vbcast.lane.b32.xlu0 %v1587_v63, 272  ;;  %v3784_v63 = vpop.permute.xlu1 %1147  ;;  %v3791_v15 = vpop.permute.xlu0 %1094 }
 0x2a7   :  { %5636 = vst [vmem:[#allocation79_spill] sm:$0xff] %v3784_v63  ;;  %5637 = vst [vmem:[#allocation80_spill] sm:$0xff] %v3791_v15 }
 0x2aa   :  { %1650 = vbcast.lane.b32.xlu1 %v3772_v50, 264  ;;  %1608 = vbcast.lane.b32.xlu0 %v1606_v0, 256  ;;  %v3793_v32 = vpop.permute.xlu1 %1155 }
 0x2ab   :  { %5638 = vst [vmem:[#allocation81_spill] sm:$0xff] %v3793_v32  ;;  %v3815_v32 = vrot.slane %v3541_v42, %v3615_v40 }
 0x2ae   :  { %1862 = vbcast.lane.b32.xlu1 %v3737_v21, 280  ;;  %1374 = vbcast.lane.b32.xlu0 %v1364_v23, 272  ;;  %v3799_v23 = vrot.slane %v3471_v62, %v3408_v27  ;;  %v3803_v63 = vpop.xlane.xlu1 %224 }
 0x2b2   :  { %1881 = vbcast.lane.b32.xlu1 %v3746_v38, 280  ;;  %1385 = vbcast.lane.b32.xlu0 %v3713_v24, 256  ;;  %v3811_v15 = vpop.permute.xlu1 %581 }
 0x2b3   :  { %5640 = vst [vmem:[#allocation83_spill] sm:$0xff] %v3811_v15 }
 0x2b6   :  { %1892 = vbcast.lane.b32.xlu1 %v3788_v34, 264  ;;  %1616 = vbcast.lane.b32.xlu0 %v1606_v0, 272  ;;  %v3823_v59 = vpop.permute.xlu1 %589 }
 0x2b7   :  { %5643 = vst [vmem:[#allocation86_spill] sm:$0xff] %v3823_v59 }
 0x2ba   :  { %1416 = vbcast.lane.b32.xlu1 %v3757_v10, 280  ;;  %1627 = vbcast.lane.b32.xlu0 %v3726_v9, 256 }
 0x2bd   :  { %v3801_v41 = vpop.xlane.xlu0 %215 }
 0x2be   :  { %1427 = vbcast.lane.b32.xlu1 %v3799_v23, 264  ;;  %1850 = vbcast.lane.b32.xlu0 %v3737_v21, 256 }
 0x2c1   :  { %v3807_v0 = vpop.permute.xlu0 %615 }
 0x2c2   :  { %5639 = vst [vmem:[#allocation82_spill] sm:$0xff] %v3807_v0  ;;  %1658 = vbcast.lane.b32.xlu1 %v3772_v50, 280  ;;  %1869 = vbcast.lane.b32.xlu0 %v3746_v38, 256  ;;  %v3829_v0 = vrot.slane %v3416_v31, %v3733_v26 }
 0x2c5   :  { %v3817_v28 = vpop.permute.xlu0 %623 }
 0x2c6   :  { %5641 = vst [vmem:[#allocation84_spill] sm:$0xff] %v3817_v28  ;;  %1669 = vbcast.lane.b32.xlu1 %v3815_v32, 264  ;;  %1393 = vbcast.lane.b32.xlu0 %v3713_v24, 272  ;;  %v3836_v24 = vsub.s32 6, %v3365_v7  ;;  %v3838_v28 = vpop.permute.xlu1 %829 }
 0x2c7   :  { %5646 = vst [vmem:[#allocation89_spill] sm:$0xff] %v3838_v28 }
 0x2c8   :  { %5645 = vst [vmem:[#allocation88_spill] sm:$0xff] %v3836_v24 }
 0x2c9   :  { %v3821_v48 = vpop.permute.xlu0 %863 }
 0x2ca   :  { %5642 = vst [vmem:[#allocation85_spill] sm:$0xff] %v3821_v48  ;;  %1900 = vbcast.lane.b32.xlu1 %v3788_v34, 280  ;;  %1404 = vbcast.lane.b32.xlu0 %v3757_v10, 256  ;;  %v3842_v48 = vrot.slane %v3391_v20, %v3836_v24  ;;  %v3854_v55 = vpop.permute.xlu1 %837 }
 0x2cb   :  { %5649 = vst [vmem:[#allocation92_spill] sm:$0xff] %v3854_v55 }
 0x2cd   :  { %v3831_v15 = vpop.permute.xlu0 %871 }
 0x2ce   :  { %5644 = vst [vmem:[#allocation87_spill] sm:$0xff] %v3831_v15  ;;  %1911 = vbcast.lane.b32.xlu1 %v3829_v0, 264  ;;  %1635 = vbcast.lane.b32.xlu0 %v3726_v9, 272  ;;  %v3850_v15 = vrot.slane %v3429_v39, %v3836_v24 }
 0x2d1   :  { %v3844_v59 = vpop.permute.xlu0 %1143 }
 0x2d2   :  { %5647 = vst [vmem:[#allocation90_spill] sm:$0xff] %v3844_v59  ;;  %2134 = vbcast.lane.b32.xlu1 %v3842_v48, 264  ;;  %1646 = vbcast.lane.b32.xlu0 %v3772_v50, 256  ;;  %v3862_v59 = vpop.permute.xlu1 %1109 }
 0x2d3   :  { %5651 = vst [vmem:[#allocation94_spill] sm:$0xff] %v3862_v59 }
 0x2d5   :  { %v3852_v9 = vpop.permute.xlu0 %1151 }
 0x2d6   :  { %5648 = vst [vmem:[#allocation91_spill] sm:$0xff] %v3852_v9  ;;  %2153 = vbcast.lane.b32.xlu1 %v3850_v15, 264  ;;  %1858 = vbcast.lane.b32.xlu0 %v3737_v21, 272  ;;  %v3870_v9 = vrot.slane %v3441_v47, %v3615_v40  ;;  %v3874_v21 = vpop.permute.xlu1 %1313 }
 0x2d7   :  { %5654 = vst [vmem:[#allocation97_spill] sm:$0xff] %v3874_v21 }
 0x2d9   :  { %v3858_v28 = vpop.permute.xlu0 %577 }
 0x2da   :  { %5650 = vst [vmem:[#allocation93_spill] sm:$0xff] %v3858_v28  ;;  %1435 = vbcast.lane.b32.xlu1 %v3799_v23, 280  ;;  %1877 = vbcast.lane.b32.xlu0 %v3746_v38, 272  ;;  %v3882_v28 = vpop.permute.xlu1 %1302 }
 0x2db   :  { %5656 = vst [vmem:[#allocation99_spill] sm:$0xff] %v3882_v28 }
 0x2dd   :  { %v3864_v46 = vpop.permute.xlu0 %585 }
 0x2de   :  { %5652 = vst [vmem:[#allocation95_spill] sm:$0xff] %v3864_v46  ;;  %1677 = vbcast.lane.b32.xlu1 %v3815_v32, 280  ;;  %1888 = vbcast.lane.b32.xlu0 %v3788_v34, 256  ;;  %v3886_v46 = vrot.slane %v3452_v54, %v3733_v26 }
 0x2e1   :  { %v3872_v55 = vpop.permute.xlu0 %825 }
 0x2e2   :  { %5653 = vst [vmem:[#allocation96_spill] sm:$0xff] %v3872_v55  ;;  %1688 = vbcast.lane.b32.xlu1 %v3870_v9, 264  ;;  %1412 = vbcast.lane.b32.xlu0 %v3757_v10, 272  ;;  %v3894_v10 = vpop.permute.xlu1 %1321 }
 0x2e3   :  { %5659 = vst [vmem:[#allocation102_spill] sm:$0xff] %v3894_v10 }
 0x2e5   :  { %v3878_v38 = vpop.permute.xlu0 %833 }
 0x2e6   :  { %5655 = vst [vmem:[#allocation98_spill] sm:$0xff] %v3878_v38  ;;  %1919 = vbcast.lane.b32.xlu1 %v3829_v0, 280  ;;  %1423 = vbcast.lane.b32.xlu0 %v3799_v23, 256  ;;  %v3902_v38 = vpop.permute.xlu1 %1332 }
 0x2e7   :  { %5660 = vst [vmem:[#allocation103_spill] sm:$0xff] %v3902_v38 }
 0x2e9   :  { %v3888_v59 = vpop.permute.xlu0 %1105 }
 0x2ea   :  { %5657 = vst [vmem:[#allocation100_spill] sm:$0xff] %v3888_v59  ;;  %1930 = vbcast.lane.b32.xlu1 %v3886_v46, 264  ;;  %1654 = vbcast.lane.b32.xlu0 %v3772_v50, 272  ;;  %v3906_v59 = vrot.slane %v3376_v12, %v3836_v24  ;;  %v3914_v37 = vpop.permute.xlu1 %1340 }
 0x2eb   :  { %5663 = vst [vmem:[#allocation106_spill] sm:$0xff] %v3914_v37 }
 0x2ed   :  { %v3892_v21 = vpop.permute.xlu0 %1113 }
 0x2ee   :  { %5658 = vst [vmem:[#allocation101_spill] sm:$0xff] %v3892_v21  ;;  %2142 = vbcast.lane.b32.xlu1 %v3842_v48, 280  ;;  %1665 = vbcast.lane.b32.xlu0 %v3815_v32, 256 }
 0x2f1   :  { %v3898_v55 = vpop.permute.xlu0 %1309 }
 0x2f2   :  { %2161 = vbcast.lane.b32.xlu1 %v3850_v15, 280  ;;  %1896 = vbcast.lane.b32.xlu0 %v3788_v34, 272  ;;  %v3920_v34 = vrot.slane %v3471_v62, %v3615_v40 }
 0x2f5   :  { %v3908_v50 = vpop.permute.xlu0 %1298 }
 0x2f6   :  { %5661 = vst [vmem:[#allocation104_spill] sm:$0xff] %v3908_v50  ;;  %2172 = vbcast.lane.b32.xlu1 %v3906_v59, 264  ;;  %1907 = vbcast.lane.b32.xlu0 %v3829_v0, 256  ;;  %v3926_v50 = vpop.permute.xlu1 %1351 }
 0x2f7   :  { %5665 = vst [vmem:[#allocation108_spill] sm:$0xff] %v3926_v50 }
 0x2f9   :  { %v3912_v21 = vpop.permute.xlu0 %1317 }
 0x2fa   :  { %5662 = vst [vmem:[#allocation105_spill] sm:$0xff] %v3912_v21  ;;  %1696 = vbcast.lane.b32.xlu1 %v3870_v9, 280  ;;  %2130 = vbcast.lane.b32.xlu0 %v3842_v48, 256  ;;  %v3934_v21 = vrot.slane %v3541_v42, %v3733_v26  ;;  %v3938_v3 = vpop.permute.xlu1 %1574 }
 0x2fb   :  { %5668 = vst [vmem:[#allocation111_spill] sm:$0xff] %v3938_v3  ;;  %v3958_v3 = vrot.slane %v3416_v31, %v3836_v24 }
 0x2fd   :  { %v3922_v56 = vpop.permute.xlu0 %1328 }
 0x2fe   :  { %5664 = vst [vmem:[#allocation107_spill] sm:$0xff] %v3922_v56  ;;  %1707 = vbcast.lane.b32.xlu1 %v3920_v34, 264  ;;  %2149 = vbcast.lane.b32.xlu0 %v3850_v15, 256  ;;  %v5669_v56 = vlaneseq }
 0x300   :  { %v3943_v50 = vand.u32 127, %v5669_v56 }
 0x301   :  { %v3928_v6 = vpop.permute.xlu0 %1336 }
 0x302   :  { %5666 = vst [vmem:[#allocation109_spill] sm:$0xff] %v3928_v6  ;;  %1938 = vbcast.lane.b32.xlu1 %v3886_v46, 280  ;;  %1431 = vbcast.lane.b32.xlu0 %v3799_v23, 272  ;;  %5670 = vst [vmem:[#allocation112_spill] sm:$0xff] %v3943_v50  ;;  %v227_v23 = vstv %s5452_s7 }
 0x303   :  { %v3952_v58 = vadd.f32 %v227_v23, %v3680_v4  ;;  %v3965_v56 = vadd.f32 %v227_v23, %v3569_v51  ;;  %v3971_v4 = vsub.s32 7, %v3365_v7  ;;  %v3976_v37 = vadd.f32 %v227_v23, %v3523_v29 }
 0x304   :  { %v3991_v1 = vadd.f32 %v227_v23, %v3627_v57 }
 0x305   :  { %v3936_v52 = vpop.permute.xlu0 %1347  ;;  %5673 = vst [vmem:[#allocation115_spill] sm:$0xff] %v3971_v4  ;;  %v4000_v19 = vrot.slane %v3429_v39, %v3971_v4  ;;  %v4013_v39 = vadd.f32 %v227_v23, %v3739_v44 }
 0x306   :  { %5667 = vst [vmem:[#allocation110_spill] sm:$0xff] %v3936_v52  ;;  %1949 = vbcast.lane.b32.xlu1 %v3934_v21, 264  ;;  %1673 = vbcast.lane.b32.xlu0 %v3815_v32, 272  ;;  %v3954_v52 = vpop.permute.xlu1 %1117  ;;  %v3962_v32 = vsub.s32 %v3943_v50, %v3365_v7  ;;  %v3980_v50 = vrot.slane %v3391_v20, %v3971_v4 }
 0x307   :  { %5671 = vst [vmem:[#allocation113_spill] sm:$0xff] %v3954_v52  ;;  %v3987_v7 = vadd.f32 %v227_v23, %v3801_v41 }
 0x308   :  { %5672 = vst [vmem:[#allocation114_spill] sm:$0xff] %v3962_v32  ;;  %v253_v52 = vrot.slane %v3952_v58, %v3962_v32  ;;  %v249_v51 = vrot.slane %v3965_v56, %v3962_v32  ;;  %v257_v20 = vrot.slane %v3976_v37, %v3962_v32  ;;  %v273_v28 = vrot.slane %v4013_v39, %v3962_v32 }
 0x309   :  { %v3945_v6 = vpop.permute.xlu0 %1570  ;;  %v265_v57 = vrot.slane %v3987_v7, %v3962_v32 }
 0x30a   :  { %2180 = vbcast.lane.b32.xlu1 %v3906_v59, 280  ;;  %v219_v25 = vpop.xlane.xlu1 %218  ;;  %v279_v29 = vsel %vm278_vm1, %v253_v52, %v249_v51 }
 0x30b   :  { %v3994_v38 = vadd.f32 %v227_v23, %v219_v25  ;;  %v281_v41 = vsel %vm280_vm2, %v257_v20, %v279_v29  ;;  %v261_v25 = vrot.slane %v3991_v1, %v3962_v32 }
 0x30d   :  { %v3967_v53 = vpop.permute.xlu0 %1589  ;;  %v269_v52 = vrot.slane %v3994_v38, %v3962_v32  ;;  %v283_v51 = vsel %vm282_vm3, %v261_v25, %v281_v41 }
 0x30e   :  { %2191 = vbcast.lane.b32.xlu1 %v3958_v3, 264  ;;  %v285_v20 = vsel %vm284_vm4, %v265_v57, %v283_v51 }
 0x30f   :  { %v287_v10 = vsel %vm286_vm5, %v269_v52, %v285_v20 }
 0x310   :  { %v289_v41 = vsel %vm288_vm6, %v273_v28, %v287_v10  ;;  %v4043_v28 = vpop.permute.xlu1 %1593 }
 0x311   :  { %v3984_v17 = vpop.permute.xlu0 %1355  ;;  %5680 = vst [vmem:[#allocation122_spill] sm:$0xff] %v4043_v28 }
 0x312   :  { %5674 = vst [vmem:[#allocation116_spill] sm:$0xff] %v3984_v17  ;;  %2414 = vbcast.lane.b32.xlu1 %v3980_v50, 264 }
 0x314   :  { %v4047_v20 = vpop.permute.xlu1 %1359 }
 0x315   :  { %v4002_v17 = vpop.permute.xlu0 %1366  ;;  %5682 = vst [vmem:[#allocation124_spill] sm:$0xff] %v4047_v20 }
 0x316   :  { %5675 = vst [vmem:[#allocation117_spill] sm:$0xff] %v4002_v17  ;;  %2433 = vbcast.lane.b32.xlu1 %v4000_v19, 264  ;;  %v4021_v17 = vadd.f32 %v227_v23, %v3803_v63  ;;  %v4034_v63 = vrot.slane %v3441_v47, %v3733_v26 }
 0x318   :  { %v277_v57 = vrot.slane %v4021_v17, %v3962_v32 }
 0x319   :  { %v4016_v29 = vpop.permute.xlu0 %1578 }
 0x31a   :  { %5676 = vst [vmem:[#allocation118_spill] sm:$0xff] %v4016_v29  ;;  %1715 = vbcast.lane.b32.xlu1 %v3920_v34, 280  ;;  %v291_v25 = vsel %vm290_vm7, %v277_v57, %v289_v41  ;;  %v4051_v29 = vpop.permute.xlu1 %1370 }
 0x31b   :  { %v294_v52 = vsel %vm293_vm8, %v291_v25, -inf  ;;  %5684 = vst [vmem:[#allocation126_spill] sm:$0xff] %v4051_v29 }
 0x31d   :  { %v4026_v44 = vpop.permute.xlu0 %1597 }
 0x31e   :  { %5677 = vst [vmem:[#allocation119_spill] sm:$0xff] %v4026_v44  ;;  %1957 = vbcast.lane.b32.xlu1 %v3934_v21, 280  ;;  %v4056_v41 = vpop.permute.xlu1 %1582 }
 0x321   :  { %v4036_v23 = vpop.permute.xlu0 %1608 }
 0x322   :  { %5678 = vst [vmem:[#allocation120_spill] sm:$0xff] %v4036_v23  ;;  %1968 = vbcast.lane.b32.xlu1 %v4034_v63, 264  ;;  %v4062_v25 = vpop.permute.xlu1 %1601 }
 0x323   :  { %5686 = vst [vmem:[#allocation128_spill] sm:$0xff] %v4062_v25 }
 0x325   :  { %295 = vmax.xlane.f32.xlu0 %v294_v52  ;;  %v4041_v51 = vpop.permute.xlu0 %1374 }
 0x326   :  { %5679 = vst [vmem:[#allocation121_spill] sm:$0xff] %v4041_v51 }
 0x329   :  { %v4045_v10 = vpop.permute.xlu0 %1385 }
 0x32a   :  { %5681 = vst [vmem:[#allocation123_spill] sm:$0xff] %v4045_v10  ;;  %v4067_v10 = vpop.permute.xlu1 %1612 }
 0x32b   :  { %5687 = vst [vmem:[#allocation129_spill] sm:$0xff] %v4067_v10 }
 0x32d   :  { %v4049_v44 = vpop.permute.xlu0 %1616 }
 0x32e   :  { %5683 = vst [vmem:[#allocation125_spill] sm:$0xff] %v4049_v44 }
 0x331   :  { %v4053_v23 = vpop.permute.xlu0 %1627 }
 0x332   :  { %5685 = vst [vmem:[#allocation127_spill] sm:$0xff] %v4053_v23  ;;  %v3297_v23 = vmov 0  }
 0x333   :  { %3219 = vset.pattern.permute.xlu0 %v3297_v23  ;;  %3218 = vset.pattern.permute.xlu1 %v3297_v23 }
 0x335   :  { %v4058_v57 = vpop.permute.xlu0 %1850 }
 0x339   :  { %v4064_v52 = vpop.permute.xlu0 %1869 }
 0x33b   :  { %1684 = vbcast.lane.b32.xlu0 %v3870_v9, 256 }
 0x33d   :  { %v4069_v51 = vpop.permute.xlu0 %1393 }
 0x33e   :  { %5688 = vst [vmem:[#allocation130_spill] sm:$0xff] %v4069_v51 }
 0x33f   :  { %1915 = vbcast.lane.b32.xlu0 %v3829_v0, 272  ;;  %v4073_v0 = vpop.permute.xlu1 %1378 }
 0x340   :  { %5689 = vst [vmem:[#allocation131_spill] sm:$0xff] %v4073_v0 }
 0x341   :  { %v4075_v28 = vpop.permute.xlu0 %1404 }
 0x342   :  { %5690 = vst [vmem:[#allocation132_spill] sm:$0xff] %v4075_v28 }
 0x343   :  { %1926 = vbcast.lane.b32.xlu0 %v3886_v46, 256  ;;  %v4078_v44 = vpop.permute.xlu1 %1389 }
 0x344   :  { %5691 = vst [vmem:[#allocation133_spill] sm:$0xff] %v4078_v44 }
 0x347   :  { %2138 = vbcast.lane.b32.xlu0 %v3842_v48, 272  ;;  %v4080_v48 = vpop.permute.xlu0 %1635 }
 0x348   :  { %5692 = vst [vmem:[#allocation134_spill] sm:$0xff] %v4080_v48 }
 0x34b   :  { %2157 = vbcast.lane.b32.xlu0 %v3850_v15, 272  ;;  %v4084_v15 = vpop.permute.xlu1 %1620  ;;  %v4086_v51 = vpop.permute.xlu0 %1646 }
 0x34c   :  { %5693 = vst [vmem:[#allocation135_spill] sm:$0xff] %v4084_v15  ;;  %5694 = vst [vmem:[#allocation136_spill] sm:$0xff] %v4086_v51 }
 0x34f   :  { %2168 = vbcast.lane.b32.xlu0 %v3906_v59, 256  ;;  %v4089_v23 = vpop.permute.xlu1 %1631  ;;  %v4091_v0 = vpop.permute.xlu0 %1858 }
 0x350   :  { %5695 = vst [vmem:[#allocation137_spill] sm:$0xff] %v4089_v23  ;;  %5696 = vst [vmem:[#allocation138_spill] sm:$0xff] %v4091_v0 }
 0x353   :  { %1692 = vbcast.lane.b32.xlu0 %v3870_v9, 272  ;;  %v4095_v9 = vpop.permute.xlu1 %1854  ;;  %v4097_v28 = vpop.permute.xlu0 %1877 }
 0x354   :  { %5697 = vst [vmem:[#allocation139_spill] sm:$0xff] %v4095_v9  ;;  %5698 = vst [vmem:[#allocation140_spill] sm:$0xff] %v4097_v28 }
 0x357   :  { %1703 = vbcast.lane.b32.xlu0 %v3920_v34, 256  ;;  %v4102_v48 = vpop.permute.xlu0 %1888 }
 0x358   :  { %5700 = vst [vmem:[#allocation142_spill] sm:$0xff] %v4102_v48 }
 0x35b   :  { %1934 = vbcast.lane.b32.xlu0 %v3886_v46, 272  ;;  %v4100_v46 = vpop.permute.xlu1 %1873  ;;  %v4108_v0 = vpop.permute.xlu0 %1412 }
 0x35c   :  { %5699 = vst [vmem:[#allocation141_spill] sm:$0xff] %v4100_v46  ;;  %5702 = vst [vmem:[#allocation144_spill] sm:$0xff] %v4108_v0 }
 0x35f   :  { %1945 = vbcast.lane.b32.xlu0 %v3934_v21, 256  ;;  %v4106_v23 = vpop.permute.xlu1 %1397  ;;  %v4113_v9 = vpop.permute.xlu0 %1423 }
 0x360   :  { %5701 = vst [vmem:[#allocation143_spill] sm:$0xff] %v4106_v23  ;;  %5704 = vst [vmem:[#allocation146_spill] sm:$0xff] %v4113_v9 }
 0x363   :  { %2176 = vbcast.lane.b32.xlu0 %v3906_v59, 272  ;;  %v4111_v59 = vpop.permute.xlu1 %1408  ;;  %v4118_v46 = vpop.permute.xlu0 %1654 }
 0x364   :  { %5703 = vst [vmem:[#allocation145_spill] sm:$0xff] %v4111_v59  ;;  %5706 = vst [vmem:[#allocation148_spill] sm:$0xff] %v4118_v46 }
 0x367   :  { %2187 = vbcast.lane.b32.xlu0 %v3958_v3, 256  ;;  %v4116_v28 = vpop.permute.xlu1 %1639  ;;  %v4122_v51 = vpop.permute.xlu0 %1665 }
 0x368   :  { %5705 = vst [vmem:[#allocation147_spill] sm:$0xff] %v4116_v28  ;;  %5708 = vst [vmem:[#allocation150_spill] sm:$0xff] %v4122_v51 }
 0x36b   :  { %2410 = vbcast.lane.b32.xlu0 %v3980_v50, 256  ;;  %v4120_v48 = vpop.permute.xlu1 %1650  ;;  %v4126_v23 = vpop.permute.xlu0 %1896 }
 0x36c   :  { %5707 = vst [vmem:[#allocation149_spill] sm:$0xff] %v4120_v48  ;;  %5710 = vst [vmem:[#allocation152_spill] sm:$0xff] %v4126_v23 }
 0x36f   :  { %2429 = vbcast.lane.b32.xlu0 %v4000_v19, 256 }
 0x373   :  { %1711 = vbcast.lane.b32.xlu0 %v3920_v34, 272  ;;  %v4124_v34 = vpop.permute.xlu1 %1862 }
 0x374   :  { %5709 = vst [vmem:[#allocation151_spill] sm:$0xff] %v4124_v34 }
 0x377   :  { %1953 = vbcast.lane.b32.xlu0 %v3934_v21, 272  ;;  %v4128_v0 = vpop.permute.xlu1 %1881  ;;  %v4130_v21 = vpop.permute.xlu0 %1907 }
 0x378   :  { %5711 = vst [vmem:[#allocation153_spill] sm:$0xff] %v4128_v0  ;;  %5712 = vst [vmem:[#allocation154_spill] sm:$0xff] %v4130_v21 }
 0x37b   :  { %1964 = vbcast.lane.b32.xlu0 %v4034_v63, 256  ;;  %v4132_v59 = vpop.permute.xlu1 %1892  ;;  %v4134_v9 = vpop.permute.xlu0 %2130 }
 0x37c   :  { %5713 = vst [vmem:[#allocation155_spill] sm:$0xff] %v4132_v59 }
 0x37f   :  { %v4136_v44 = vpop.permute.xlu1 %1416  ;;  %v4138_v28 = vpop.permute.xlu0 %2149 }
 0x380   :  { %5714 = vst [vmem:[#allocation156_spill] sm:$0xff] %v4136_v44 }
 0x383   :  { %v4140_v46 = vpop.permute.xlu1 %1427  ;;  %v4142_v48 = vpop.permute.xlu0 %1431 }
 0x384   :  { %5715 = vst [vmem:[#allocation157_spill] sm:$0xff] %v4140_v46  ;;  %5716 = vst [vmem:[#allocation158_spill] sm:$0xff] %v4142_v48 }
 0x387   :  { %v4144_v51 = vpop.permute.xlu1 %1658  ;;  %v4146_v29 = vpop.permute.xlu0 %1673 }
 0x388   :  { %5717 = vst [vmem:[#allocation159_spill] sm:$0xff] %v4144_v51  ;;  %5718 = vst [vmem:[#allocation160_spill] sm:$0xff] %v4146_v29 }
 0x38b   :  { %v4154_v32 = vpop.permute.xlu1 %1669 }
 0x38c   :  { %5719 = vst [vmem:[#allocation161_spill] sm:$0xff] %v4154_v32 }
 0x38f   :  { %v4160_v29 = vpop.permute.xlu1 %1900 }
 0x390   :  { %5721 = vst [vmem:[#allocation163_spill] sm:$0xff] %v4160_v29 }
 0x393   :  { %v4166_v0 = vpop.permute.xlu1 %1911 }
 0x394   :  { %5724 = vst [vmem:[#allocation166_spill] sm:$0xff] %v4166_v0 }
 0x3ae   :  { %v4148_v23 = vpop.xlane.xlu0 %295 }
 0x3af   :  { %v301_v21 = vrot.slane %v4148_v23, %v3374_v11  ;;  %v305_v20 = vrot.slane %v4148_v23, %v3381_v14 }
 0x3b1   :  { %v338_v44 = vsub.f32 %v3965_v56, %v301_v21  ;;  %v339_v46 = vsub.f32 %v3952_v58, %v305_v20  ;;  %v4172_v56 = vpop.permute.xlu1 %2134 }
 0x3b2   :  { %v4158_v15 = vpop.permute.xlu0 %1684  ;;  %5726 = vst [vmem:[#allocation168_spill] sm:$0xff] %v4172_v56 }
 0x3b3   :  { %5720 = vst [vmem:[#allocation162_spill] sm:$0xff] %v4158_v15  ;;  %v346_v48 = vmul.f32 1.442695, %v338_v44  ;;  %v348_v51 = vmul.f32 1.442695, %v339_v46 }
 0x3b5   :  { %3228 = vpow2.f32 %v346_v48  ;;  %v4183_v20 = vpop.permute.xlu1 %2153  ;;  %v2204_v48 = vrot.slane %v3452_v54, %v3836_v24 }
 0x3b6   :  { %3230 = vpow2.f32 %v348_v51  ;;  %v4162_v59 = vpop.permute.xlu0 %1915  ;;  %5729 = vst [vmem:[#allocation171_spill] sm:$0xff] %v4183_v20 }
 0x3b7   :  { %5722 = vst [vmem:[#allocation164_spill] sm:$0xff] %v4162_v59 }
 0x3b9   :  { %v4190_v21 = vpop.permute.xlu1 %1435 }
 0x3ba   :  { %v4164_v10 = vpop.permute.xlu0 %1926  ;;  %5731 = vst [vmem:[#allocation173_spill] sm:$0xff] %v4190_v21 }
 0x3bb   :  { %5723 = vst [vmem:[#allocation165_spill] sm:$0xff] %v4164_v10  ;;  %v321_v10 = vrot.slane %v4148_v23, %v3733_v26 }
 0x3bd   :  { %v4197_v20 = vpop.permute.xlu1 %1677 }
 0x3be   :  { %v4168_v34 = vpop.permute.xlu0 %2138  ;;  %5733 = vst [vmem:[#allocation175_spill] sm:$0xff] %v4197_v20 }
 0x3bf   :  { %5725 = vst [vmem:[#allocation167_spill] sm:$0xff] %v4168_v34 }
 0x3c1   :  { %v4204_v0 = vpop.permute.xlu1 %1688 }
 0x3c2   :  { %v4170_v32 = vpop.eup %3228  ;;  %v4174_v58 = vpop.permute.xlu0 %2157  ;;  %5735 = vst [vmem:[#allocation177_spill] sm:$0xff] %v4204_v0 }
 0x3c3   :  { %5727 = vst [vmem:[#allocation169_spill] sm:$0xff] %v4174_v58  ;;  %v4176_v44 = vpop.eup %3230  ;;  %371 = vperm.xlu1 %3218, %v4170_v32   ;;  %v4257_v0 = vrot.slane %v4170_v32, %v3408_v27 }
 0x3c4   :  { %374 = vperm.xlu0 %3219, %v4176_v44   ;;  %v4261_v20 = vrot.slane %v4176_v44, %v3374_v11 }
 0x3c5   :  { %5745 = vst [vmem:[#allocation187_spill] sm:$0xff] %v4257_v0 }
 0x3c6   :  { %v4180_v51 = vpop.permute.xlu0 %2168  ;;  %5746 = vst [vmem:[#allocation188_spill] sm:$0xff] %v4261_v20 }
 0x3c7   :  { %5728 = vst [vmem:[#allocation170_spill] sm:$0xff] %v4180_v51  ;;  %2199 = vbcast.lane.b32.xlu1 %v3958_v3, 280 }
 0x3c8   :  { %2195 = vbcast.lane.b32.xlu0 %v3958_v3, 272  ;;  %v2446_v3 = vrot.slane %v3376_v12, %v3971_v4  ;;  %v309_v12 = vrot.slane %v4148_v23, %v3386_v16 }
 0x3ca   :  { %v4188_v46 = vpop.permute.xlu0 %1692 }
 0x3cb   :  { %5730 = vst [vmem:[#allocation172_spill] sm:$0xff] %v4188_v46  ;;  %2210 = vbcast.lane.b32.xlu1 %v2204_v48, 264  ;;  %v313_v46 = vrot.slane %v4148_v23, %v3408_v27 }
 0x3cc   :  { %2206 = vbcast.lane.b32.xlu0 %v2204_v48, 256 }
 0x3ce   :  { %v4194_v15 = vpop.permute.xlu0 %1703 }
 0x3cf   :  { %2422 = vbcast.lane.b32.xlu1 %v3980_v50, 280  ;;  %5732 = vst [vmem:[#allocation174_spill] sm:$0xff] %v4194_v15  ;;  %v1981_v15 = vrot.slane %v3471_v62, %v3733_v26 }
 0x3d0   :  { %2418 = vbcast.lane.b32.xlu0 %v3980_v50, 272 }
 0x3d2   :  { %v4202_v56 = vpop.permute.xlu0 %1934 }
 0x3d3   :  { %2441 = vbcast.lane.b32.xlu1 %v4000_v19, 280  ;;  %5734 = vst [vmem:[#allocation176_spill] sm:$0xff] %v4202_v56 }
 0x3d4   :  { %2437 = vbcast.lane.b32.xlu0 %v4000_v19, 272  ;;  %v4212_v19 = vpop.permute.xlu1 %1919 }
 0x3d5   :  { %5737 = vst [vmem:[#allocation179_spill] sm:$0xff] %v4212_v19  ;;  %v4290_v19 = vrot.slane %v4176_v44, %v3386_v16 }
 0x3d6   :  { %v4208_v50 = vpop.permute.xlu0 %1945 }
 0x3d7   :  { %2452 = vbcast.lane.b32.xlu1 %v2446_v3, 264  ;;  %5736 = vst [vmem:[#allocation178_spill] sm:$0xff] %v4208_v50  ;;  %v4223_v50 = vrot.slane %v3541_v42, %v3836_v24  ;;  %5750 = vst [vmem:[#allocation192_spill] sm:$0xff] %v4290_v19 }
 0x3d8   :  { %2448 = vbcast.lane.b32.xlu0 %v2446_v3, 256  ;;  %v4225_v51 = vpop.permute.xlu1 %1930 }
 0x3d9   :  { %5739 = vst [vmem:[#allocation181_spill] sm:$0xff] %v4225_v51 }
 0x3da   :  { %v4216_v56 = vpop.permute.xlu0 %2176 }
 0x3db   :  { %1976 = vbcast.lane.b32.xlu1 %v4034_v63, 280  ;;  %5738 = vst [vmem:[#allocation180_spill] sm:$0xff] %v4216_v56  ;;  %v317_v56 = vrot.slane %v4148_v23, %v3615_v40 }
 0x3dc   :  { %1972 = vbcast.lane.b32.xlu0 %v4034_v63, 272  ;;  %v340_v63 = vsub.f32 %v3976_v37, %v309_v12  ;;  %v4236_v37 = vrot.slane %v4170_v32, %v3374_v11  ;;  %v4240_v12 = vrot.slane %v4170_v32, %v3381_v14  ;;  %v4244_v59 = vpop.permute.xlu1 %2142 }
 0x3dd   :  { %5743 = vst [vmem:[#allocation185_spill] sm:$0xff] %v4244_v59  ;;  %v4305_v59 = vrot.slane %v4176_v44, %v3408_v27 }
 0x3de   :  { %v350_v58 = vmul.f32 1.442695, %v340_v63  ;;  %v4232_v34 = vpop.permute.xlu0 %2187  ;;  %5741 = vst [vmem:[#allocation183_spill] sm:$0xff] %v4236_v37  ;;  %5742 = vst [vmem:[#allocation184_spill] sm:$0xff] %v4240_v12  ;;  %v661_v21 = vmul.f32 %v3510_v18, %v4236_v37  ;;  %v4279_v18 = vrot.slane %v4170_v32, %v3615_v40 }
 0x3df   :  { %1987 = vbcast.lane.b32.xlu1 %v1981_v15, 264  ;;  %5740 = vst [vmem:[#allocation182_spill] sm:$0xff] %v4232_v34  ;;  %v4253_v34 = vrot.slane %v3416_v31, %v3971_v4  ;;  %v343_v31 = vsub.f32 %v3994_v38, %v321_v10  ;;  %v4286_v10 = vrot.slane %v4170_v32, %v3733_v26  ;;  %5753 = vst [vmem:[#allocation195_spill] sm:$0xff] %v4305_v59 }
 0x3e0   :  { %1983 = vbcast.lane.b32.xlu0 %v1981_v15, 256  ;;  %3232 = vpow2.f32 %v350_v58  ;;  %v4272_v58 = vrot.slane %v4176_v44, %v3381_v14  ;;  %5748 = vst [vmem:[#allocation190_spill] sm:$0xff] %v4279_v18 }
 0x3e1   :  { %5749 = vst [vmem:[#allocation191_spill] sm:$0xff] %v4286_v10 }
 0x3e2   :  { %5747 = vst [vmem:[#allocation189_spill] sm:$0xff] %v4272_v58 }
 0x3e3   :  { %2218 = vbcast.lane.b32.xlu1 %v2204_v48, 280 }
 0x3e4   :  { %2214 = vbcast.lane.b32.xlu0 %v2204_v48, 272  ;;  %v341_v48 = vsub.f32 %v3991_v1, %v313_v46  ;;  %v4248_v1 = vrot.slane %v4170_v32, %v3386_v16  ;;  %v342_v46 = vsub.f32 %v3987_v7, %v317_v56  ;;  %v909_v7 = vmul.f32 %v3532_v35, %v4240_v12 }
 0x3e5   :  { %v325_v56 = vrot.slane %v4148_v23, %v3836_v24 }
 0x3e6   :  { %5744 = vst [vmem:[#allocation186_spill] sm:$0xff] %v4248_v1  ;;  %v352_v63 = vmul.f32 1.442695, %v341_v48  ;;  %v329_v48 = vrot.slane %v4148_v23, %v3971_v4  ;;  %v941_v35 = vadd.f32 %v909_v7, %v661_v21  ;;  %v1189_v51 = vmul.f32 %v3543_v43, %v4248_v1  ;;  %v4292_v23 = vpop.permute.xlu1 %2161 }
 0x3e7   :  { %2229 = vbcast.lane.b32.xlu1 %v4223_v50, 264  ;;  %v354_v38 = vmul.f32 1.442695, %v342_v46  ;;  %5751 = vst [vmem:[#allocation193_spill] sm:$0xff] %v4292_v23  ;;  %v1469_v21 = vmul.f32 %v3563_v49, %v4257_v0  ;;  %v4298_v43 = vrot.slane %v4170_v32, %v3971_v4  ;;  %v665_v46 = vmul.f32 %v3634_v60, %v4261_v20 }
 0x3e8   :  { %2225 = vbcast.lane.b32.xlu0 %v4223_v50, 256  ;;  %3234 = vpow2.f32 %v352_v63  ;;  %v1221_v29 = vadd.f32 %v1189_v51, %v941_v35  ;;  %v344_v63 = vsub.f32 %v4013_v39, %v325_v56  ;;  %v356_v7 = vmul.f32 1.442695, %v343_v31 }
 0x3e9   :  { %5752 = vst [vmem:[#allocation194_spill] sm:$0xff] %v4298_v43  ;;  %v913_v51 = vmul.f32 %v3654_v5, %v4272_v58  ;;  %v4311_v49 = vrot.slane %v4170_v32, %v3836_v24  ;;  %v1749_v23 = vmul.f32 %v3945_v6, %v4279_v18  ;;  %3236 = vpow2.f32 %v354_v38 }
 0x3ea   :  { %v1501_v35 = vadd.f32 %v1469_v21, %v1221_v29  ;;  %v4318_v39 = vrot.slane %v4176_v44, %v3615_v40  ;;  %v1193_v5 = vmul.f32 %v3668_v2, %v4290_v19  ;;  %v2029_v32 = vmul.f32 %v4058_v57, %v4286_v10  ;;  %v4336_v2 = vpop.permute.xlu1 %2172 }
 0x3eb   :  { %2460 = vbcast.lane.b32.xlu1 %v2446_v3, 280  ;;  %5754 = vst [vmem:[#allocation196_spill] sm:$0xff] %v4311_v49  ;;  %v945_v56 = vadd.f32 %v913_v51, %v665_v46  ;;  %v4326_v6 = vrot.slane %v4176_v44, %v3971_v4  ;;  %v345_v29 = vsub.f32 %v4021_v17, %v329_v48  ;;  %3238 = vpow2.f32 %v356_v7 }
 0x3ec   :  { %2456 = vbcast.lane.b32.xlu0 %v2446_v3, 272  ;;  %v2411_v3 = vpop.permute.xlu0 %2410  ;;  %5755 = vst [vmem:[#allocation197_spill] sm:$0xff] %v4318_v39  ;;  %v1781_v25 = vadd.f32 %v1749_v23, %v1501_v35  ;;  %v1473_v38 = vmul.f32 %v3898_v55, %v4305_v59  ;;  %v358_v23 = vmul.f32 1.442695, %v344_v63  ;;  %v2309_v21 = vmul.f32 %v4134_v9, %v4311_v49 }
 0x3ed   :  { %v2589_v60 = vmul.f32 %v2411_v3, %v4298_v43  ;;  %5756 = vst [vmem:[#allocation198_spill] sm:$0xff] %v4326_v6  ;;  %v1225_v3 = vadd.f32 %v1193_v5, %v945_v56  ;;  %v4344_v17 = vrot.slane %v4176_v44, %v3836_v24  ;;  %v1753_v55 = vmul.f32 %v3967_v53, %v4318_v39  ;;  %v4348_v51 = vpop.eup %3232 }
 0x3ee   :  { %v2061_v57 = vadd.f32 %v2029_v32, %v1781_v25  ;;  %v2242_v25 = vrot.slane %v3441_v47, %v3836_v24  ;;  %3240 = vpow2.f32 %v358_v23  ;;  %v4361_v5 = vpop.permute.xlu1 %1696  ;;  %v2484_v32 = vrot.slane %v3452_v54, %v3971_v4 }
 0x3ef   :  { %2471 = vbcast.lane.b32.xlu1 %v4253_v34, 264  ;;  %5758 = vst [vmem:[#allocation200_spill] sm:$0xff] %v4344_v17  ;;  %v1505_v48 = vadd.f32 %v1473_v38, %v1225_v3  ;;  %v2313_v53 = vmul.f32 %v4138_v28, %v4344_v17  ;;  %v2261_v23 = vrot.slane %v3471_v62, %v3836_v24 }
 0x3f0   :  { %2467 = vbcast.lane.b32.xlu0 %v4253_v34, 256  ;;  %v2430_v31 = vpop.permute.xlu0 %2429  ;;  %v2341_v63 = vadd.f32 %v2309_v21, %v2061_v57  ;;  %v2503_v21 = vrot.slane %v3541_v42, %v3971_v4  ;;  %v4402_v42 = vrot.slane %v3471_v62, %v3971_v4 }
 0x3f1   :  { %v2593_v46 = vmul.f32 %v2430_v31, %v4326_v6  ;;  %v1785_v9 = vadd.f32 %v1753_v55, %v1505_v48  ;;  %v2522_v55 = vrot.slane %v3441_v47, %v3971_v4  ;;  %v664_v47 = vmul.f32 %v3525_v30, %v4236_v37 }
 0x3f2   :  { %v4372_v28 = vpop.permute.xlu1 %1707  ;;  %5765 = vst [vmem:[#allocation207_spill] sm:$0xff] %v4402_v42 }
 0x3f3   :  { %1995 = vbcast.lane.b32.xlu1 %v1981_v15, 280 }
 0x3f4   :  { %1991 = vbcast.lane.b32.xlu0 %v1981_v15, 272  ;;  %v4331_v15 = vrot.slane %v4176_v44, %v3733_v26  ;;  %v360_v44 = vmul.f32 1.442695, %v345_v29 }
 0x3f5   :  { %v4359_v56 = vpop.eup %3234 }
 0x3f6   :  { %5757 = vst [vmem:[#allocation199_spill] sm:$0xff] %v4331_v15  ;;  %v2033_v35 = vmul.f32 %v4064_v52, %v4331_v15  ;;  %3242 = vpow2.f32 %v360_v44  ;;  %v4379_v38 = vpop.permute.xlu1 %1938  ;;  %v916_v44 = vmul.f32 %v3636_v8, %v4272_v58 }
 0x3f7   :  { %2237 = vbcast.lane.b32.xlu1 %v4223_v50, 280 }
 0x3f8   :  { %2233 = vbcast.lane.b32.xlu0 %v4223_v50, 272  ;;  %v4355_v50 = vadd.f32 %v2589_v60, %v2341_v63  ;;  %v2065_v7 = vadd.f32 %v2033_v35, %v1785_v9  ;;  %v4367_v60 = vpop.eup %3236  ;;  %v668_v35 = vmul.f32 %v3648_v22, %v4261_v20 }
 0x3f9   :  { %v4374_v29 = vpop.eup %3238 }
 0x3fa   :  { %5759 = vst [vmem:[#allocation201_spill] sm:$0xff] %v4355_v50  ;;  %v2345_v31 = vadd.f32 %v2313_v53, %v2065_v7  ;;  %v4387_v57 = vpop.permute.xlu1 %1949  ;;  %v4422_v7 = vrot.slane %v4348_v51, %v3374_v11  ;;  %v4426_v53 = vrot.slane %v4348_v51, %v3381_v14 }
 0x3fb   :  { %377 = vperm.xlu1 %3218, %v4348_v51   ;;  %v4377_v3 = vpop.eup %3240  ;;  %5762 = vst [vmem:[#allocation204_spill] sm:$0xff] %v4387_v57 }
 0x3fc   :  { %2244 = vbcast.lane.b32.xlu0 %v2242_v25, 256  ;;  %v4365_v52 = vadd.f32 %v2593_v46, %v2345_v31  ;;  %5769 = vst [vmem:[#allocation211_spill] sm:$0xff] %v4422_v7  ;;  %5770 = vst [vmem:[#allocation212_spill] sm:$0xff] %v4426_v53  ;;  %v670_v8 = vmul.f32 %v3468_v61, %v4422_v7 }
 0x3fe   :  { %5760 = vst [vmem:[#allocation202_spill] sm:$0xff] %v4365_v52  ;;  %v4391_v46 = vpop.permute.xlu1 %2180 }
 0x3ff   :  { %380 = vperm.xlu1 %3218, %v4359_v56  }
 0x400   :  { %2475 = vbcast.lane.b32.xlu0 %v4253_v34, 272 }
 0x402   :  { %v4394_v48 = vpop.permute.xlu1 %2191 }
 0x403   :  { %383 = vperm.xlu1 %3218, %v4367_v60   ;;  %v4384_v54 = vpop.eup %3242  ;;  %5763 = vst [vmem:[#allocation205_spill] sm:$0xff] %v4394_v48 }
 0x404   :  { %2486 = vbcast.lane.b32.xlu0 %v2484_v32, 256  ;;  %5761 = vst [vmem:[#allocation203_spill] sm:$0xff] %v4384_v54  ;;  %v4624_v58 = vrot.slane %v4384_v54, %v3374_v11  ;;  %v4633_v37 = vrot.slane %v4384_v54, %v3386_v16 }
 0x406   :  { %v4398_v63 = vpop.permute.xlu1 %2414 }
 0x407   :  { %386 = vperm.xlu1 %3218, %v4374_v29   ;;  %5764 = vst [vmem:[#allocation206_spill] sm:$0xff] %v4398_v63 }
 0x408   :  { %2252 = vbcast.lane.b32.xlu0 %v2242_v25, 272 }
 0x40b   :  { %389 = vperm.xlu1 %3218, %v4377_v3  }
 0x40c   :  { %2263 = vbcast.lane.b32.xlu0 %v2261_v23, 256 }
 0x40f   :  { %392 = vperm.xlu1 %3218, %v4384_v54  }
 0x410   :  { %2494 = vbcast.lane.b32.xlu0 %v2484_v32, 272 }
 0x413   :  { %2248 = vbcast.lane.b32.xlu1 %v2242_v25, 264 }
 0x414   :  { %2505 = vbcast.lane.b32.xlu0 %v2503_v21, 256 }
 0x417   :  { %2479 = vbcast.lane.b32.xlu1 %v4253_v34, 280  ;;  %v4404_v34 = vpop.permute.xlu1 %2433 }
 0x418   :  { %2271 = vbcast.lane.b32.xlu0 %v2261_v23, 272  ;;  %5766 = vst [vmem:[#allocation208_spill] sm:$0xff] %v4404_v34 }
 0x41b   :  { %2490 = vbcast.lane.b32.xlu1 %v2484_v32, 264  ;;  %v4408_v9 = vpop.permute.xlu1 %1715 }
 0x41c   :  { %2513 = vbcast.lane.b32.xlu0 %v2503_v21, 272  ;;  %5767 = vst [vmem:[#allocation209_spill] sm:$0xff] %v4408_v9 }
 0x41f   :  { %2256 = vbcast.lane.b32.xlu1 %v2242_v25, 280  ;;  %v912_v25 = vmul.f32 %v3534_v36, %v4240_v12  ;;  %v4414_v62 = vpop.permute.xlu1 %1957  ;;  %v1192_v36 = vmul.f32 %v3549_v45, %v4248_v1  ;;  %v5773_v45 = vld [vmem:[#allocation99_spill] sm:$0xff]  ;;  %v5823_v1 = vld [vmem:[#allocation114_spill] sm:$0xff]  ;;  %v4629_v12 = vrot.slane %v4384_v54, %v3381_v14 }
 0x420   :  { %2524 = vbcast.lane.b32.xlu0 %v2522_v55, 256  ;;  %5768 = vst [vmem:[#allocation210_spill] sm:$0xff] %v4414_v62 }
 0x421   :  { %v944_v30 = vadd.f32 %v912_v25, %v664_v47  ;;  %v4440_v47 = vrot.slane %v4348_v51, %v3386_v16  ;;  %v1472_v25 = vmul.f32 %v5773_v45, %v4257_v0  ;;  %v4617_v0 = vrot.slane %v4367_v60, %v3733_v26 }
 0x423   :  { %2267 = vbcast.lane.b32.xlu1 %v2261_v23, 264  ;;  %v4430_v31 = vpop.permute.xlu1 %1968  ;;  %v1224_v22 = vadd.f32 %v1192_v36, %v944_v30  ;;  %5772 = vst [vmem:[#allocation214_spill] sm:$0xff] %v4440_v47  ;;  %v1752_v30 = vmul.f32 %v4056_v41, %v4279_v18  ;;  %v5776_v36 = vld [vmem:[#allocation23_spill] sm:$0xff]  ;;  %5822 = vst [vmem:[#allocation220_spill] sm:$0xff] %v4617_v0 }
 0x424   :  { %2532 = vbcast.lane.b32.xlu0 %v2522_v55, 272  ;;  %5771 = vst [vmem:[#allocation213_spill] sm:$0xff] %v4430_v31  ;;  %v1198_v45 = vmul.f32 %v5776_v36, %v4440_v47  ;;  %v5780_v41 = vld [vmem:[#allocation103_spill] sm:$0xff]  ;;  %v4651_v31 = vrot.slane %v4374_v29, %v3374_v11 }
 0x427   :  { %2498 = vbcast.lane.b32.xlu1 %v2484_v32, 280  ;;  %v948_v32 = vadd.f32 %v916_v44, %v668_v35  ;;  %v1504_v35 = vadd.f32 %v1472_v25, %v1224_v22  ;;  %v5774_v44 = vld [vmem:[#allocation102_spill] sm:$0xff]  ;;  %v5777_v22 = vld [vmem:[#allocation128_spill] sm:$0xff]  ;;  %v5779_v25 = vld [vmem:[#allocation151_spill] sm:$0xff] }
 0x428   :  { %2543 = vbcast.lane.b32.xlu0 %v4402_v42, 256 }
 0x42b   :  { %2509 = vbcast.lane.b32.xlu1 %v2503_v21, 264 }
 0x42c   :  { %2551 = vbcast.lane.b32.xlu0 %v4402_v42, 272 }
 0x42f   :  { %2275 = vbcast.lane.b32.xlu1 %v2261_v23, 280  ;;  %v918_v23 = vmul.f32 %v3504_v13, %v4426_v53  ;;  %v1476_v13 = vmul.f32 %v5774_v44, %v4305_v59  ;;  %v2032_v44 = vmul.f32 %v5779_v25, %v4286_v10 }
 0x431   :  { %v950_v61 = vadd.f32 %v918_v23, %v670_v8  ;;  %v1756_v8 = vmul.f32 %v5777_v22, %v4318_v39  ;;  %v4463_v23 = vrot.slane %v4348_v51, %v3615_v40  ;;  %v5784_v22 = vld [vmem:[#allocation129_spill] sm:$0xff] }
 0x433   :  { %2517 = vbcast.lane.b32.xlu1 %v2503_v21, 280  ;;  %v1196_v21 = vmul.f32 %v3645_v33, %v4290_v19  ;;  %v4451_v33 = vrot.slane %v4348_v51, %v3408_v27  ;;  %v1230_v34 = vadd.f32 %v1198_v45, %v950_v61  ;;  %5778 = vst [vmem:[#allocation102_spill] sm:$0xff] %v4463_v23 }
 0x434   :  { %v1758_v25 = vmul.f32 %v5784_v22, %v4463_v23  ;;  %v4613_v19 = vrot.slane %v4367_v60, %v3615_v40 }
 0x435   :  { %5775 = vst [vmem:[#allocation99_spill] sm:$0xff] %v4451_v33  ;;  %v1478_v63 = vmul.f32 %v5780_v41, %v4451_v33 }
 0x437   :  { %2528 = vbcast.lane.b32.xlu1 %v2522_v55, 264 }
 0x43b   :  { %2536 = vbcast.lane.b32.xlu1 %v2522_v55, 280  ;;  %v1228_v55 = vadd.f32 %v1196_v21, %v948_v32  ;;  %v1784_v21 = vadd.f32 %v1752_v30, %v1504_v35  ;;  %v5781_v35 = vld [vmem:[#allocation153_spill] sm:$0xff] }
 0x43c   :  { %v2036_v61 = vmul.f32 %v5781_v35, %v4331_v15  ;;  %v5783_v30 = vld [vmem:[#allocation185_spill] sm:$0xff]  ;;  %v5788_v35 = vld [vmem:[#allocation155_spill] sm:$0xff] }
 0x43d   :  { %v1508_v32 = vadd.f32 %v1476_v13, %v1228_v55  ;;  %v2064_v59 = vadd.f32 %v2032_v44, %v1784_v21  ;;  %v1510_v55 = vadd.f32 %v1478_v63, %v1230_v34  ;;  %v4475_v13 = vrot.slane %v4348_v51, %v3733_v26  ;;  %v5785_v63 = vld [vmem:[#allocation193_spill] sm:$0xff] }
 0x43e   :  { %v4444_v52 = vpop.permute.xlu1 %371  ;;  %v2312_v45 = vmul.f32 %v5783_v30, %v4311_v49  ;;  %v2316_v34 = vmul.f32 %v5785_v63, %v4344_v17  ;;  %v4583_v17 = vrot.slane %v4377_v3, %v3374_v11  ;;  %v4587_v49 = vrot.slane %v4377_v3, %v3381_v14 }
 0x43f   :  { %2547 = vbcast.lane.b32.xlu1 %v4402_v42, 264  ;;  %v1788_v36 = vadd.f32 %v1756_v8, %v1508_v32  ;;  %5782 = vst [vmem:[#allocation23_spill] sm:$0xff] %v4475_v13  ;;  %v1790_v21 = vadd.f32 %v1758_v25, %v1510_v55  ;;  %v4486_v8 = vrot.slane %v4348_v51, %v3836_v24 }
 0x440   :  { %v2344_v10 = vadd.f32 %v2312_v45, %v2064_v59  ;;  %v2038_v30 = vmul.f32 %v5788_v35, %v4475_v13 }
 0x441   :  { %v2068_v41 = vadd.f32 %v2036_v61, %v1788_v36  ;;  %5786 = vst [vmem:[#allocation128_spill] sm:$0xff] %v4486_v8  ;;  %v5790_v61 = vld [vmem:[#allocation22_spill] sm:$0xff] }
 0x442   :  { %v4457_v50 = vpop.permute.xlu1 %2199  ;;  %v2070_v59 = vadd.f32 %v2038_v30, %v1790_v21  ;;  %v920_v45 = vmul.f32 %v5790_v61, %v4426_v53  ;;  %v5794_v30 = vld [vmem:[#allocation25_spill] sm:$0xff]  ;;  %v397_v53 = vrot.slane %v4444_v52, %v5823_v1  ;;  %v4637_v52 = vrot.slane %v4384_v54, %v3408_v27 }
 0x443   :  { %v2348_v15 = vadd.f32 %v2316_v34, %v2068_v41 }
 0x446   :  { %v4469_v48 = vpop.permute.xlu1 %2210 }
 0x44a   :  { %v2423_v39 = vpop.permute.xlu1 %2422 }
 0x44b   :  { %v2592_v32 = vmul.f32 %v2423_v39, %v4298_v43  ;;  %v5789_v39 = vld [vmem:[#allocation16_spill] sm:$0xff]  ;;  %v4571_v43 = vrot.slane %v4359_v56, %v3615_v40 }
 0x44c   :  { %v672_v55 = vmul.f32 %v5789_v39, %v4422_v7 }
 0x44d   :  { %v4488_v44 = vadd.f32 %v2592_v32, %v2344_v10  ;;  %v2318_v10 = vmul.f32 %v4336_v2, %v4486_v8  ;;  %v4503_v32 = vrot.slane %v4348_v51, %v3971_v4  ;;  %5813 = vst [vmem:[#allocation217_spill] sm:$0xff] %v4571_v43 }
 0x44e   :  { %v2442_v22 = vpop.permute.xlu1 %2441  ;;  %v952_v21 = vadd.f32 %v920_v45, %v672_v55  ;;  %v5797_v45 = vld [vmem:[#allocation163_spill] sm:$0xff] }
 0x44f   :  { %5787 = vst [vmem:[#allocation151_spill] sm:$0xff] %v4488_v44  ;;  %v2596_v36 = vmul.f32 %v2442_v22, %v4326_v6  ;;  %5792 = vst [vmem:[#allocation153_spill] sm:$0xff] %v4503_v32  ;;  %v2350_v63 = vadd.f32 %v2318_v10, %v2070_v59  ;;  %v1200_v22 = vmul.f32 %v5794_v30, %v4440_v47 }
 0x450   :  { %v4567_v6 = vrot.slane %v4359_v56, %v3408_v27 }
 0x451   :  { %v4497_v25 = vadd.f32 %v2596_v36, %v2348_v15  ;;  %v1232_v15 = vadd.f32 %v1200_v22, %v952_v21  ;;  %v5795_v36 = vld [vmem:[#allocation106_spill] sm:$0xff]  ;;  %v2320_v21 = vmul.f32 %v4391_v46, %v4486_v8  ;;  %v4541_v46 = vrot.slane %v4359_v56, %v3374_v11 }
 0x452   :  { %v2453_v41 = vpop.permute.xlu1 %2452  ;;  %v1480_v2 = vmul.f32 %v5795_v36, %v4451_v33  ;;  %v5816_v8 = vld [vmem:[#allocation62_spill] sm:$0xff] }
 0x453   :  { %5791 = vst [vmem:[#allocation103_spill] sm:$0xff] %v4497_v25  ;;  %v2598_v34 = vmul.f32 %v2453_v41, %v4503_v32  ;;  %v5796_v25 = vld [vmem:[#allocation135_spill] sm:$0xff]  ;;  %v2040_v41 = vmul.f32 %v5797_v45, %v4475_v13  ;;  %v5820_v33 = vld [vmem:[#allocation42_spill] sm:$0xff] }
 0x454   :  { %v1512_v51 = vadd.f32 %v1480_v2, %v1232_v15  ;;  %v1760_v59 = vmul.f32 %v5796_v25, %v4463_v23  ;;  %5805 = vst [vmem:[#allocation135_spill] sm:$0xff] %v4541_v46  ;;  %v4591_v23 = vrot.slane %v4377_v3, %v3386_v16  ;;  %5821 = vst [vmem:[#allocation42_spill] sm:$0xff] %v4613_v19 }
 0x455   :  { %v4506_v35 = vadd.f32 %v2598_v34, %v2350_v63 }
 0x456   :  { %v4510_v39 = vpop.permute.xlu1 %1976  ;;  %v1792_v55 = vadd.f32 %v1760_v59, %v1512_v51  ;;  %v4533_v51 = vpop.permute.xlu0 %1711 }
 0x457   :  { %5793 = vst [vmem:[#allocation185_spill] sm:$0xff] %v4506_v35  ;;  %5802 = vst [vmem:[#allocation22_spill] sm:$0xff] %v4533_v51  ;;  %v5810_v35 = vld [vmem:[#allocation37_spill] sm:$0xff] }
 0x458   :  { %v2072_v34 = vadd.f32 %v2040_v41, %v1792_v55  ;;  %v4545_v41 = vrot.slane %v4359_v56, %v3381_v14  ;;  %5812 = vst [vmem:[#allocation37_spill] sm:$0xff] %v4567_v6 }
 0x45a   :  { %v4514_v61 = vpop.permute.xlu1 %1987  ;;  %v2352_v22 = vadd.f32 %v2320_v21, %v2072_v34  ;;  %v4537_v45 = vpop.permute.xlu0 %1953  ;;  %5806 = vst [vmem:[#allocation163_spill] sm:$0xff] %v4545_v41  ;;  %v4549_v21 = vrot.slane %v4367_v60, %v3374_v11  ;;  %v924_v44 = vmul.f32 %v5810_v35, %v4545_v41  ;;  %v5815_v35 = vld [vmem:[#allocation58_spill] sm:$0xff]  ;;  %v5829_v11 = vld [vmem:[#allocation53_spill] sm:$0xff] }
 0x45b   :  { %5804 = vst [vmem:[#allocation106_spill] sm:$0xff] %v4537_v45  ;;  %5817 = vst [vmem:[#allocation58_spill] sm:$0xff] %v4591_v23  ;;  %v936_v42 = vmul.f32 %v5829_v11, %v4587_v49  ;;  %v4677_v11 = vrot.slane %v4374_v29, %v3381_v14 }
 0x45c   :  { %v678_v51 = vmul.f32 %v5815_v35, %v4549_v21  ;;  %v4607_v35 = vrot.slane %v4367_v60, %v3408_v27 }
 0x45e   :  { %v4518_v10 = vpop.permute.xlu1 %2218  ;;  %5819 = vst [vmem:[#allocation219_spill] sm:$0xff] %v4607_v35 }
 0x462   :  { %v4522_v63 = vpop.permute.xlu1 %2229 }
 0x463   :  { %5798 = vst [vmem:[#allocation129_spill] sm:$0xff] %v4522_v63 }
 0x466   :  { %v2461_v30 = vpop.permute.xlu1 %2460 }
 0x467   :  { %v2600_v36 = vmul.f32 %v2461_v30, %v4503_v32  ;;  %v4553_v30 = vrot.slane %v4367_v60, %v3381_v14  ;;  %v5836_v14 = vld [vmem:[#allocation179_spill] sm:$0xff] }
 0x469   :  { %v4527_v15 = vadd.f32 %v2600_v36, %v2352_v22  ;;  %5807 = vst [vmem:[#allocation215_spill] sm:$0xff] %v4553_v30  ;;  %v4555_v22 = vpop.permute.xlu0 %1964  ;;  %v5809_v36 = vld [vmem:[#allocation33_spill] sm:$0xff]  ;;  %v926_v13 = vmul.f32 %v5816_v8, %v4553_v30  ;;  %v4603_v8 = vrot.slane %v4367_v60, %v3386_v16 }
 0x46a   :  { %v4529_v2 = vpop.permute.xlu1 %2471  ;;  %5808 = vst [vmem:[#allocation216_spill] sm:$0xff] %v4555_v22  ;;  %v4575_v22 = vrot.slane %v4359_v56, %v3733_v26 }
 0x46b   :  { %5799 = vst [vmem:[#allocation193_spill] sm:$0xff] %v4527_v15  ;;  %5800 = vst [vmem:[#allocation155_spill] sm:$0xff] %v4529_v2  ;;  %v676_v15 = vmul.f32 %v5809_v36, %v4541_v46  ;;  %v4563_v2 = vrot.slane %v4359_v56, %v3386_v16 }
 0x46c   :  { %5814 = vst [vmem:[#allocation218_spill] sm:$0xff] %v4575_v22 }
 0x46d   :  { %5811 = vst [vmem:[#allocation33_spill] sm:$0xff] %v4563_v2  ;;  %v375_v36 = vpop.permute.xlu0 %374  ;;  %v956_v45 = vadd.f32 %v924_v44, %v676_v15  ;;  %v4595_v44 = vrot.slane %v4377_v3, %v3408_v27  ;;  %v4599_v15 = vrot.slane %v4377_v3, %v3615_v40  ;;  %v1204_v18 = vmul.f32 %v5820_v33, %v4563_v2 }
 0x46e   :  { %v4531_v25 = vpop.permute.xlu1 %1995  ;;  %v401_v7 = vrot.slane %v375_v36, %v5823_v1  ;;  %v958_v33 = vadd.f32 %v926_v13, %v678_v51  ;;  %v5824_v13 = vld [vmem:[#allocation124_spill] sm:$0xff] }
 0x46f   :  { %5801 = vst [vmem:[#allocation16_spill] sm:$0xff] %v4531_v25  ;;  %5818 = vst [vmem:[#allocation62_spill] sm:$0xff] %v4595_v44  ;;  %v1236_v20 = vadd.f32 %v1204_v18, %v956_v45  ;;  %v4642_v18 = vrot.slane %v4384_v54, %v3615_v40  ;;  %v1484_v51 = vmul.f32 %v5824_v13, %v4567_v6  ;;  %v5825_v45 = vld [vmem:[#allocation66_spill] sm:$0xff] }
 0x471   :  { %v1516_v9 = vadd.f32 %v1484_v51, %v1236_v20  ;;  %v4659_v6 = vpop.permute.xlu0 %2195  ;;  %v5831_v20 = vld [vmem:[#allocation75_spill] sm:$0xff] }
 0x472   :  { %v4535_v59 = vpop.permute.xlu1 %2237  ;;  %5827 = vst [vmem:[#allocation124_spill] sm:$0xff] %v4659_v6  ;;  %v2044_v6 = vmul.f32 %v5836_v14, %v4575_v22 }
 0x473   :  { %5803 = vst [vmem:[#allocation25_spill] sm:$0xff] %v4535_v59  ;;  %v426_v59 = vsel %vm278_vm1, %v401_v7, %v397_v53  ;;  %v5830_v7 = vld [vmem:[#allocation71_spill] sm:$0xff] }
 0x474   :  { %v690_v53 = vmul.f32 %v5830_v7, %v4624_v58 }
 0x476   :  { %v378_v55 = vpop.permute.xlu1 %377 }
 0x477   :  { %v405_v2 = vrot.slane %v378_v55, %v5823_v1  ;;  %v1206_v55 = vmul.f32 %v5825_v45, %v4603_v8 }
 0x479   :  { %v1238_v63 = vadd.f32 %v1206_v55, %v958_v33  ;;  %v427_v13 = vsel %vm280_vm2, %v405_v2, %v426_v59  ;;  %v5832_v2 = vld [vmem:[#allocation60_spill] sm:$0xff] }
 0x47a   :  { %v381_v34 = vpop.permute.xlu1 %380  ;;  %v680_v59 = vmul.f32 %v5832_v2, %v4549_v21  ;;  %v4689_v2 = vrot.slane %v4359_v56, %v3836_v24 }
 0x47b   :  { %v409_v36 = vrot.slane %v381_v34, %v5823_v1  ;;  %v5826_v34 = vld [vmem:[#allocation126_spill] sm:$0xff] }
 0x47c   :  { %v1486_v62 = vmul.f32 %v5826_v34, %v4607_v35  ;;  %5835 = vst [vmem:[#allocation66_spill] sm:$0xff] %v4689_v2 }
 0x47d   :  { %v428_v34 = vsel %vm282_vm3, %v409_v36, %v427_v13 }
 0x47e   :  { %v384_v32 = vpop.permute.xlu1 %383 }
 0x47f   :  { %v413_v41 = vrot.slane %v384_v32, %v5823_v1  ;;  %v5828_v32 = vld [vmem:[#allocation50_spill] sm:$0xff] }
 0x480   :  { %v688_v57 = vmul.f32 %v5828_v32, %v4583_v17  ;;  %v5834_v32 = vld [vmem:[#allocation147_spill] sm:$0xff] }
 0x481   :  { %v429_v51 = vsel %vm284_vm4, %v413_v41, %v428_v34  ;;  %v1764_v7 = vmul.f32 %v5834_v32, %v4571_v43  ;;  %v1518_v41 = vadd.f32 %v1486_v62, %v1238_v63  ;;  %v2324_v62 = vmul.f32 %v4457_v50, %v4689_v2  ;;  %v4702_v63 = vpop.permute.xlu0 %2206  ;;  %v5962_v2 = vld [vmem:[#allocation165_spill] sm:$0xff] }
 0x482   :  { %v387_v47 = vpop.permute.xlu1 %386  ;;  %v968_v32 = vadd.f32 %v936_v42, %v688_v57  ;;  %5838 = vst [vmem:[#allocation126_spill] sm:$0xff] %v4702_v63  ;;  %v5840_v57 = vld [vmem:[#allocation83_spill] sm:$0xff] }
 0x483   :  { %v417_v25 = vrot.slane %v387_v47, %v5823_v1  ;;  %v938_v47 = vmul.f32 %v5831_v20, %v4629_v12  ;;  %v4685_v20 = vrot.slane %v4374_v29, %v3386_v16  ;;  %v682_v42 = vmul.f32 %v5840_v57, %v4651_v31  ;;  %v5938_v63 = vld [vmem:[#allocation187_spill] sm:$0xff] }
 0x485   :  { %v430_v36 = vsel %vm286_vm5, %v417_v25, %v429_v51  ;;  %v5837_v51 = vld [vmem:[#allocation149_spill] sm:$0xff] }
 0x486   :  { %v390_v46 = vpop.permute.xlu1 %389 }
 0x487   :  { %v421_v45 = vrot.slane %v390_v46, %v5823_v1  ;;  %v5833_v46 = vld [vmem:[#allocation64_spill] sm:$0xff] }
 0x488   :  { %v928_v33 = vmul.f32 %v5833_v46, %v4553_v30  ;;  %v1796_v46 = vadd.f32 %v1764_v7, %v1516_v9  ;;  %v5839_v9 = vld [vmem:[#allocation56_spill] sm:$0xff] }
 0x489   :  { %v431_v34 = vsel %vm288_vm6, %v421_v45, %v430_v36  ;;  %v1216_v14 = vmul.f32 %v5839_v9, %v4591_v23  ;;  %v5841_v45 = vld [vmem:[#allocation89_spill] sm:$0xff] }
 0x48a   :  { %v393_v55 = vpop.permute.xlu1 %392  ;;  %v960_v16 = vadd.f32 %v928_v33, %v680_v59  ;;  %v930_v7 = vmul.f32 %v5841_v45, %v4677_v11  ;;  %v5842_v59 = vld [vmem:[#allocation79_spill] sm:$0xff]  ;;  %v5843_v33 = vld [vmem:[#allocation69_spill] sm:$0xff] }
 0x48b   :  { %v425_v13 = vrot.slane %v393_v55, %v5823_v1  ;;  %v1766_v55 = vmul.f32 %v5837_v51, %v4613_v19  ;;  %v970_v1 = vadd.f32 %v938_v47, %v690_v53  ;;  %v4712_v53 = vrot.slane %v4374_v29, %v3408_v27  ;;  %v5846_v51 = vld [vmem:[#allocation181_spill] sm:$0xff] }
 0x48c   :  { %v1218_v50 = vmul.f32 %v5842_v59, %v4633_v37  ;;  %v1208_v36 = vmul.f32 %v5843_v33, %v4603_v8  ;;  %v2046_v9 = vmul.f32 %v5846_v51, %v4617_v0  ;;  %v5849_v51 = vld [vmem:[#allocation157_spill] sm:$0xff] }
 0x48d   :  { %v432_v25 = vsel %vm290_vm7, %v425_v13, %v431_v34  ;;  %v1798_v47 = vadd.f32 %v1766_v55, %v1518_v41  ;;  %v2076_v13 = vadd.f32 %v2044_v6, %v1796_v46  ;;  %v4720_v34 = vrot.slane %v4367_v60, %v3836_v24  ;;  %v5847_v41 = vld [vmem:[#allocation156_spill] sm:$0xff] }
 0x48e   :  { %v4697_v43 = vpop.permute.xlu1 %2248  ;;  %v434_v30 = vsel %vm293_vm8, %v432_v25, 0.0  ;;  %v1248_v25 = vadd.f32 %v1216_v14, %v968_v32  ;;  %v1496_v55 = vmul.f32 %v5847_v41, %v4595_v44  ;;  %v1250_v57 = vadd.f32 %v1218_v50, %v970_v1  ;;  %v5850_v41 = vld [vmem:[#allocation131_spill] sm:$0xff]  ;;  %v5852_v50 = vld [vmem:[#allocation94_spill] sm:$0xff] }
 0x48f   :  { %435 = vadd.xlane.f32.xlu1 %v434_v30  ;;  %5844 = vst [vmem:[#allocation50_spill] sm:$0xff] %v4720_v34  ;;  %v4724_v30 = vrot.slane %v4359_v56, %v3971_v4  ;;  %v1240_v45 = vadd.f32 %v1208_v36, %v960_v16  ;;  %v2356_v33 = vadd.f32 %v2324_v62, %v2076_v13  ;;  %v4741_v16 = vpop.permute.xlu0 %2418 }
 0x490   :  { %v2326_v6 = vmul.f32 %v4469_v48, %v4720_v34  ;;  %v962_v46 = vadd.f32 %v930_v7, %v682_v42  ;;  %v4735_v56 = vrot.slane %v4377_v3, %v3733_v26  ;;  %v2078_v14 = vadd.f32 %v2046_v9, %v1798_v47  ;;  %5851 = vst [vmem:[#allocation75_spill] sm:$0xff] %v4741_v16 }
 0x491   :  { %5845 = vst [vmem:[#allocation53_spill] sm:$0xff] %v4724_v30  ;;  %v1498_v27 = vmul.f32 %v5849_v51, %v4637_v52  ;;  %v1488_v1 = vmul.f32 %v5850_v41, %v4607_v35  ;;  %v1528_v62 = vadd.f32 %v1496_v55, %v1248_v25  ;;  %v1210_v48 = vmul.f32 %v5852_v50, %v4685_v20 }
 0x492   :  { %v2480_v59 = vpop.permute.xlu1 %2479  ;;  %5848 = vst [vmem:[#allocation71_spill] sm:$0xff] %v4735_v56  ;;  %v4747_v42 = vrot.slane %v4367_v60, %v3971_v4  ;;  %v1776_v47 = vmul.f32 %v4361_v5, %v4599_v15  ;;  %v1778_v13 = vmul.f32 %v4372_v28, %v4642_v18  ;;  %v2358_v51 = vadd.f32 %v2326_v6, %v2078_v14  ;;  %v5855_v60 = vld [vmem:[#allocation73_spill] sm:$0xff]  ;;  %v5858_v28 = vld [vmem:[#allocation92_spill] sm:$0xff] }
 0x493   :  { %v2604_v32 = vmul.f32 %v2480_v59, %v4724_v30  ;;  %v1530_v36 = vadd.f32 %v1498_v27, %v1250_v57  ;;  %v1520_v9 = vadd.f32 %v1488_v1, %v1240_v45  ;;  %v2056_v25 = vmul.f32 %v4510_v39, %v4735_v56  ;;  %v5857_v27 = vld [vmem:[#allocation86_spill] sm:$0xff]  ;;  %v5863_v1 = vld [vmem:[#allocation159_spill] sm:$0xff] }
 0x494   :  { %5853 = vst [vmem:[#allocation60_spill] sm:$0xff] %v4747_v42  ;;  %v1242_v55 = vadd.f32 %v1210_v48, %v962_v46  ;;  %v684_v5 = vmul.f32 %v5857_v27, %v4651_v31  ;;  %v932_v57 = vmul.f32 %v5858_v28, %v4677_v11  ;;  %v1808_v45 = vadd.f32 %v1776_v47, %v1528_v62 }
 0x495   :  { %v4749_v7 = vadd.f32 %v2604_v32, %v2356_v33  ;;  %v692_v33 = vmul.f32 %v5855_v60, %v4624_v58  ;;  %v5856_v32 = vld [vmem:[#allocation77_spill] sm:$0xff]  ;;  %v4768_v6 = vrot.slane %v4384_v54, %v3733_v26  ;;  %v4772_v39 = vrot.slane %v4377_v3, %v3836_v24  ;;  %v4784_v60 = vpop.permute.xlu0 %2437 }
 0x496   :  { %v2491_v59 = vpop.permute.xlu1 %2490  ;;  %v940_v50 = vmul.f32 %v5856_v32, %v4629_v12  ;;  %v4778_v14 = vrot.slane %v4374_v29, %v3615_v40  ;;  %v1768_v48 = vmul.f32 %v5863_v1, %v4613_v19  ;;  %5865 = vst [vmem:[#allocation83_spill] sm:$0xff] %v4784_v60  ;;  %v2088_v32 = vadd.f32 %v2056_v25, %v1808_v45  ;;  %v5868_v60 = vld [vmem:[#allocation52_spill] sm:$0xff] }
 0x497   :  { %5854 = vst [vmem:[#allocation64_spill] sm:$0xff] %v4749_v7  ;;  %v2606_v41 = vmul.f32 %v2491_v59, %v4747_v42  ;;  %5859 = vst [vmem:[#allocation147_spill] sm:$0xff] %v4768_v6  ;;  %v5864_v59 = vld [vmem:[#allocation133_spill] sm:$0xff]  ;;  %v1810_v27 = vadd.f32 %v1778_v13, %v1530_v36  ;;  %v2058_v28 = vmul.f32 %v4514_v61, %v4768_v6 }
 0x498   :  { %5860 = vst [vmem:[#allocation179_spill] sm:$0xff] %v4772_v39  ;;  %5862 = vst [vmem:[#allocation56_spill] sm:$0xff] %v4778_v14  ;;  %v1490_v62 = vmul.f32 %v5864_v59, %v4712_v53  ;;  %v972_v7 = vadd.f32 %v940_v50, %v692_v33  ;;  %v964_v40 = vadd.f32 %v932_v57, %v684_v5  ;;  %v5867_v59 = vld [vmem:[#allocation49_spill] sm:$0xff] }
 0x499   :  { %v4774_v46 = vadd.f32 %v2606_v41, %v2358_v51  ;;  %v1800_v41 = vadd.f32 %v1768_v48, %v1520_v9  ;;  %v4791_v1 = vrot.slane %v4384_v54, %v3836_v24  ;;  %v686_v30 = vmul.f32 %v5867_v59, %v4583_v17  ;;  %v5870_v9 = vld [vmem:[#allocation161_spill] sm:$0xff]  ;;  %v4819_v59 = vpop.permute.xlu0 %2448 }
 0x49a   :  { %v2257_v47 = vpop.permute.xlu1 %2256  ;;  %v934_v25 = vmul.f32 %v5868_v60, %v4587_v49  ;;  %v4801_v61 = vrot.slane %v4374_v29, %v3733_v26  ;;  %v2048_v13 = vmul.f32 %v4379_v38, %v4617_v0  ;;  %v5871_v33 = vld [vmem:[#allocation81_spill] sm:$0xff]  ;;  %v2090_v57 = vadd.f32 %v2058_v28, %v1810_v27  ;;  %5875 = vst [vmem:[#allocation181_spill] sm:$0xff] %v4819_v59 }
 0x49b   :  { %5861 = vst [vmem:[#allocation149_spill] sm:$0xff] %v4774_v46  ;;  %v2336_v51 = vmul.f32 %v2257_v47, %v4772_v39  ;;  %v1522_v46 = vadd.f32 %v1490_v62, %v1242_v55  ;;  %5866 = vst [vmem:[#allocation89_spill] sm:$0xff] %v4791_v1  ;;  %v1770_v55 = vmul.f32 %v5870_v9, %v4778_v14  ;;  %v5872_v48 = vld [vmem:[#allocation113_spill] sm:$0xff] }
 0x49c   :  { %5869 = vst [vmem:[#allocation79_spill] sm:$0xff] %v4801_v61  ;;  %v1220_v50 = vmul.f32 %v5871_v33, %v4633_v37  ;;  %v2328_v45 = vmul.f32 %v4518_v10, %v4720_v34  ;;  %v1212_v62 = vmul.f32 %v5872_v48, %v4685_v20  ;;  %v4816_v38 = vrot.slane %v4374_v29, %v3836_v24  ;;  %v5877_v10 = vld [vmem:[#allocation204_spill] sm:$0xff] }
 0x49d   :  { %v4797_v36 = vadd.f32 %v2336_v51, %v2088_v32  ;;  %v1802_v60 = vadd.f32 %v1770_v55, %v1522_v46  ;;  %v5874_v51 = vld [vmem:[#allocation207_spill] sm:$0xff]  ;;  %v2080_v9 = vadd.f32 %v2048_v13, %v1800_v41  ;;  %v966_v28 = vadd.f32 %v934_v25, %v686_v30  ;;  %v5939_v34 = vld [vmem:[#allocation104_spill] sm:$0xff] }
 0x49e   :  { %v2268_v5 = vpop.permute.xlu1 %2267  ;;  %5873 = vst [vmem:[#allocation69_spill] sm:$0xff] %v4816_v38  ;;  %v1252_v32 = vadd.f32 %v1220_v50, %v972_v7  ;;  %v1244_v27 = vadd.f32 %v1212_v62, %v964_v40  ;;  %v2050_v48 = vmul.f32 %v5877_v10, %v4801_v61  ;;  %v5879_v55 = vld [vmem:[#allocation143_spill] sm:$0xff]  ;;  %v5880_v50 = vld [vmem:[#allocation129_spill] sm:$0xff] }
 0x49f   :  { %v2338_v47 = vmul.f32 %v2268_v5, %v4791_v1  ;;  %v5878_v5 = vld [vmem:[#allocation173_spill] sm:$0xff]  ;;  %v1492_v24 = vmul.f32 %v5879_v55, %v4712_v53  ;;  %v2360_v7 = vadd.f32 %v2328_v45, %v2080_v9  ;;  %v5881_v41 = vld [vmem:[#allocation55_spill] sm:$0xff] }
 0x4a0   :  { %2555 = vbcast.lane.b32.xlu1 %v5874_v51, 280  ;;  %v1500_v46 = vmul.f32 %v5878_v5, %v4637_v52  ;;  %v2330_v51 = vmul.f32 %v5880_v50, %v4816_v38  ;;  %v1214_v40 = vmul.f32 %v5881_v41, %v4591_v23  ;;  %v2082_v25 = vadd.f32 %v2050_v48, %v1802_v60  ;;  %v5884_v45 = vld [vmem:[#allocation209_spill] sm:$0xff]  ;;  %v5885_v5 = vld [vmem:[#allocation175_spill] sm:$0xff]  ;;  %v4844_v41 = vpop.permute.xlu0 %1972  ;;  %v5887_v60 = vld [vmem:[#allocation16_spill] sm:$0xff] }
 0x4a1   :  { %v4821_v33 = vadd.f32 %v2338_v47, %v2090_v57  ;;  %v1524_v57 = vadd.f32 %v1492_v24, %v1244_v27  ;;  %v4836_v47 = vrot.slane %v4374_v29, %v3971_v4  ;;  %v1780_v9 = vmul.f32 %v5884_v45, %v4642_v18  ;;  %5886 = vst [vmem:[#allocation94_spill] sm:$0xff] %v4844_v41  ;;  %v5932_v41 = vld [vmem:[#allocation186_spill] sm:$0xff] }
 0x4a2   :  { %v2499_v26 = vpop.permute.xlu1 %2498  ;;  %v1532_v13 = vadd.f32 %v1500_v46, %v1252_v32  ;;  %v1246_v62 = vadd.f32 %v1214_v40, %v966_v28  ;;  %v1772_v55 = vmul.f32 %v5885_v5, %v4778_v14  ;;  %v2060_v24 = vmul.f32 %v5887_v60, %v4768_v6  ;;  %v5888_v32 = vld [vmem:[#allocation145_spill] sm:$0xff]  ;;  %v5890_v40 = vld [vmem:[#allocation210_spill] sm:$0xff] }
 0x4a3   :  { %5876 = vst [vmem:[#allocation156_spill] sm:$0xff] %v4821_v33  ;;  %v2608_v30 = vmul.f32 %v2499_v26, %v4747_v42  ;;  %5882 = vst [vmem:[#allocation157_spill] sm:$0xff] %v4836_v47  ;;  %v2362_v26 = vadd.f32 %v2330_v51, %v2082_v25  ;;  %v1494_v27 = vmul.f32 %v5888_v32, %v4595_v44  ;;  %v5891_v51 = vld [vmem:[#allocation25_spill] sm:$0xff]  ;;  %v5950_v6 = vld [vmem:[#allocation118_spill] sm:$0xff] }
 0x4a4   :  { %v1812_v28 = vadd.f32 %v1780_v9, %v1532_v13  ;;  %v1804_v48 = vadd.f32 %v1772_v55, %v1524_v57  ;;  %v2332_v25 = vmul.f32 %v5891_v51, %v4816_v38  ;;  %v5892_v60 = vld [vmem:[#allocation177_spill] sm:$0xff]  ;;  %v4860_v33 = vpop.permute.xlu0 %1983 }
 0x4a5   :  { %v4838_v10 = vadd.f32 %v2608_v30, %v2360_v7  ;;  %v1526_v46 = vadd.f32 %v1494_v27, %v1246_v62  ;;  %v2052_v30 = vmul.f32 %v5890_v40, %v4801_v61  ;;  %5893 = vst [vmem:[#allocation77_spill] sm:$0xff] %v4860_v33 }
 0x4a6   :  { %v2510_v50 = vpop.permute.xlu1 %2509  ;;  %v2092_v5 = vadd.f32 %v2060_v24, %v1812_v28  ;;  %v2334_v24 = vmul.f32 %v4697_v43, %v4772_v39  ;;  %v4871_v28 = vrot.slane %v4377_v3, %v3971_v4 }
 0x4a7   :  { %5883 = vst [vmem:[#allocation131_spill] sm:$0xff] %v4838_v10  ;;  %v2610_v29 = vmul.f32 %v2510_v50, %v4836_v47  ;;  %v1774_v10 = vmul.f32 %v5892_v60, %v4599_v15  ;;  %v2084_v13 = vadd.f32 %v2052_v30, %v1804_v48  ;;  %v5895_v50 = vld [vmem:[#allocation213_spill] sm:$0xff] }
 0x4a8   :  { %5896 = vst [vmem:[#allocation92_spill] sm:$0xff] %v4871_v28  ;;  %v4875_v48 = vpop.permute.xlu0 %2214 }
 0x4a9   :  { %v4851_v7 = vadd.f32 %v2610_v29, %v2362_v26  ;;  %v1806_v57 = vadd.f32 %v1774_v10, %v1526_v46  ;;  %v2364_v55 = vadd.f32 %v2332_v25, %v2084_v13  ;;  %v2054_v26 = vmul.f32 %v5895_v50, %v4735_v56  ;;  %5898 = vst [vmem:[#allocation133_spill] sm:$0xff] %v4875_v48  ;;  %v5919_v48 = vld [vmem:[#allocation215_spill] sm:$0xff] }
 0x4aa   :  { %v2276_v45 = vpop.permute.xlu1 %2275 }
 0x4ab   :  { %5889 = vst [vmem:[#allocation73_spill] sm:$0xff] %v4851_v7  ;;  %v2340_v32 = vmul.f32 %v2276_v45, %v4791_v1  ;;  %v2086_v29 = vadd.f32 %v2054_v26, %v1806_v57  ;;  %v5910_v26 = vld [vmem:[#allocation135_spill] sm:$0xff]  ;;  %v5937_v1 = vld [vmem:[#allocation116_spill] sm:$0xff] }
 0x4ac   :  { %v4881_v51 = vpop.permute.xlu0 %2225 }
 0x4ad   :  { %v4862_v62 = vadd.f32 %v2340_v32, %v2092_v5  ;;  %v2366_v46 = vadd.f32 %v2334_v24, %v2086_v29  ;;  %5900 = vst [vmem:[#allocation52_spill] sm:$0xff] %v4881_v51  ;;  %v5911_v24 = vld [vmem:[#allocation36_spill] sm:$0xff] }
 0x4ae   :  { %v2518_v9 = vpop.permute.xlu1 %2517  ;;  %v5913_v29 = vld [vmem:[#allocation40_spill] sm:$0xff] }
 0x4af   :  { %5894 = vst [vmem:[#allocation86_spill] sm:$0xff] %v4862_v62  ;;  %v2612_v27 = vmul.f32 %v2518_v9, %v4836_v47  ;;  %v5927_v62 = vld [vmem:[#allocation19_spill] sm:$0xff] }
 0x4b0   :  { %v4886_v3 = vpop.permute.xlu0 %2456 }
 0x4b1   :  { %v4873_v40 = vadd.f32 %v2612_v27, %v2364_v55  ;;  %5902 = vst [vmem:[#allocation81_spill] sm:$0xff] %v4886_v3  ;;  %v5912_v27 = vld [vmem:[#allocation163_spill] sm:$0xff]  ;;  %v5931_v3 = vld [vmem:[#allocation44_spill] sm:$0xff] }
 0x4b2   :  { %v2529_v10 = vpop.permute.xlu1 %2528 }
 0x4b3   :  { %5897 = vst [vmem:[#allocation159_spill] sm:$0xff] %v4873_v40  ;;  %v2614_v30 = vmul.f32 %v2529_v10, %v4871_v28  ;;  %v923_v10 = vmul.f32 %v5913_v29, %v5912_v27  ;;  %v5924_v29 = vld [vmem:[#allocation189_spill] sm:$0xff] }
 0x4b4   :  { %v4888_v60 = vpop.permute.xlu0 %2467 }
 0x4b5   :  { %v4878_v45 = vadd.f32 %v2614_v30, %v2366_v46  ;;  %5903 = vst [vmem:[#allocation113_spill] sm:$0xff] %v4888_v60  ;;  %v5914_v46 = vld [vmem:[#allocation183_spill] sm:$0xff]  ;;  %v5915_v30 = vld [vmem:[#allocation26_spill] sm:$0xff] }
 0x4b6   :  { %v2537_v5 = vpop.permute.xlu1 %2536 }
 0x4b7   :  { %5899 = vst [vmem:[#allocation49_spill] sm:$0xff] %v4878_v45  ;;  %v2616_v43 = vmul.f32 %v2537_v5, %v4871_v28  ;;  %v663_v5 = vmul.f32 %v5915_v30, %v5914_v46  ;;  %v5917_v45 = vld [vmem:[#allocation28_spill] sm:$0xff]  ;;  %v5926_v30 = vld [vmem:[#allocation211_spill] sm:$0xff] }
 0x4b8   :  { %v4890_v32 = vpop.permute.xlu0 %1991 }
 0x4b9   :  { %v4884_v25 = vadd.f32 %v2616_v43, %v4797_v36  ;;  %5904 = vst [vmem:[#allocation207_spill] sm:$0xff] %v4890_v32  ;;  %v675_v36 = vmul.f32 %v5911_v24, %v5910_v26  ;;  %v5916_v43 = vld [vmem:[#allocation184_spill] sm:$0xff]  ;;  %v5949_v32 = vld [vmem:[#allocation190_spill] sm:$0xff] }
 0x4ba   :  { %v911_v7 = vmul.f32 %v5917_v45, %v5916_v43  ;;  %v5922_v24 = vld [vmem:[#allocation188_spill] sm:$0xff] }
 0x4bb   :  { %5901 = vst [vmem:[#allocation161_spill] sm:$0xff] %v4884_v25  ;;  %v5920_v25 = vld [vmem:[#allocation74_spill] sm:$0xff]  ;;  %v955_v60 = vadd.f32 %v923_v10, %v675_v36  ;;  %v5928_v45 = vld [vmem:[#allocation212_spill] sm:$0xff] }
 0x4bc   :  { %v4892_v13 = vpop.permute.xlu0 %2233  ;;  %v925_v40 = vmul.f32 %v5920_v25, %v5919_v48  ;;  %v943_v47 = vadd.f32 %v911_v7, %v663_v5  ;;  %v5934_v10 = vld [vmem:[#allocation78_spill] sm:$0xff] }
 0x4bd   :  { %5905 = vst [vmem:[#allocation204_spill] sm:$0xff] %v4892_v13  ;;  %v5929_v13 = vld [vmem:[#allocation17_spill] sm:$0xff] }
 0x4be   :  { %v917_v38 = vmul.f32 %v5929_v13, %v5928_v45 }
 0x4c0   :  { %v4894_v57 = vpop.permute.xlu0 %2244 }
 0x4c1   :  { %5906 = vst [vmem:[#allocation173_spill] sm:$0xff] %v4894_v57  ;;  %v5918_v57 = vld [vmem:[#allocation70_spill] sm:$0xff] }
 0x4c2   :  { %v677_v51 = vmul.f32 %v5918_v57, %v4549_v21  ;;  %v5930_v57 = vld [vmem:[#allocation33_spill] sm:$0xff] }
 0x4c3   :  { %v1203_v33 = vmul.f32 %v5931_v3, %v5930_v57  ;;  %v1471_v3 = vmul.f32 %v5939_v34, %v5938_v63  ;;  %v5947_v34 = vld [vmem:[#allocation217_spill] sm:$0xff] }
 0x4c4   :  { %v4896_v9 = vpop.permute.xlu0 %2475  ;;  %v957_v25 = vadd.f32 %v925_v40, %v677_v51  ;;  %v5940_v40 = vld [vmem:[#allocation192_spill] sm:$0xff]  ;;  %v5941_v51 = vld [vmem:[#allocation54_spill] sm:$0xff] }
 0x4c5   :  { %5907 = vst [vmem:[#allocation143_spill] sm:$0xff] %v4896_v9  ;;  %v669_v9 = vmul.f32 %v5927_v62, %v5926_v30  ;;  %v1235_v7 = vadd.f32 %v1203_v33, %v955_v60  ;;  %v5936_v62 = vld [vmem:[#allocation37_spill] sm:$0xff]  ;;  %v1195_v54 = vmul.f32 %v5941_v51, %v5940_v40  ;;  %v5943_v33 = vld [vmem:[#allocation20_spill] sm:$0xff] }
 0x4c6   :  { %v1483_v16 = vmul.f32 %v5937_v1, %v5936_v62 }
 0x4c7   :  { %v949_v59 = vadd.f32 %v917_v38, %v669_v9  ;;  %v5945_v9 = vld [vmem:[#allocation59_spill] sm:$0xff] }
 0x4c8   :  { %v4898_v55 = vpop.permute.xlu0 %2486  ;;  %v1515_v4 = vadd.f32 %v1483_v16, %v1235_v7  ;;  %v687_v1 = vmul.f32 %v5945_v9, %v4583_v17  ;;  %v5951_v16 = vld [vmem:[#allocation195_spill] sm:$0xff]  ;;  %v5952_v7 = vld [vmem:[#allocation105_spill] sm:$0xff]  ;;  %v5957_v9 = vld [vmem:[#allocation136_spill] sm:$0xff] }
 0x4c9   :  { %5908 = vst [vmem:[#allocation129_spill] sm:$0xff] %v4898_v55  ;;  %v5925_v55 = vld [vmem:[#allocation51_spill] sm:$0xff]  ;;  %v1475_v61 = vmul.f32 %v5952_v7, %v5951_v16  ;;  %v5960_v7 = vld [vmem:[#allocation61_spill] sm:$0xff] }
 0x4ca   :  { %v915_v42 = vmul.f32 %v5925_v55, %v5924_v29 }
 0x4cc   :  { %v4900_v50 = vpop.permute.xlu0 %2252 }
 0x4cd   :  { %5909 = vst [vmem:[#allocation55_spill] sm:$0xff] %v4900_v50  ;;  %v5923_v50 = vld [vmem:[#allocation48_spill] sm:$0xff] }
 0x4ce   :  { %v667_v39 = vmul.f32 %v5923_v50, %v5922_v24  ;;  %v1205_v50 = vmul.f32 %v5934_v10, %v4603_v8 }
 0x4d0   :  { %v4914_v28 = vpop.permute.xlu0 %2263  ;;  %v947_v56 = vadd.f32 %v915_v42, %v667_v39  ;;  %v1237_v13 = vadd.f32 %v1205_v50, %v957_v25  ;;  %v5946_v25 = vld [vmem:[#allocation63_spill] sm:$0xff]  ;;  %v5948_v50 = vld [vmem:[#allocation134_spill] sm:$0xff] }
 0x4d1   :  { %5921 = vst [vmem:[#allocation209_spill] sm:$0xff] %v4914_v28  ;;  %v5933_v28 = vld [vmem:[#allocation30_spill] sm:$0xff]  ;;  %v935_v10 = vmul.f32 %v5946_v25, %v4587_v49  ;;  %v1765_v25 = vmul.f32 %v5957_v9, %v4613_v19  ;;  %v5965_v9 = vld [vmem:[#allocation197_spill] sm:$0xff] }
 0x4d2   :  { %v1191_v36 = vmul.f32 %v5933_v28, %v5932_v41  ;;  %v5942_v28 = vld [vmem:[#allocation214_spill] sm:$0xff] }
 0x4d3   :  { %v1197_v60 = vmul.f32 %v5943_v33, %v5942_v28  ;;  %v1751_v33 = vmul.f32 %v5950_v6, %v5949_v32  ;;  %v967_v14 = vadd.f32 %v935_v10, %v687_v1  ;;  %v5971_v1 = vld [vmem:[#allocation85_spill] sm:$0xff] }
 0x4d4   :  { %v1223_v5 = vadd.f32 %v1191_v36, %v943_v47  ;;  %v4930_v55 = vpop.permute.xlu0 %2494  ;;  %v5944_v47 = vld [vmem:[#allocation117_spill] sm:$0xff]  ;;  %v1227_v36 = vadd.f32 %v1195_v54, %v947_v56  ;;  %v5954_v54 = vld [vmem:[#allocation164_spill] sm:$0xff]  ;;  %v937_v10 = vmul.f32 %v5971_v1, %v4629_v12  ;;  %v5979_v1 = vld [vmem:[#allocation199_spill] sm:$0xff] }
 0x4d5   :  { %5935 = vst [vmem:[#allocation175_spill] sm:$0xff] %v4930_v55  ;;  %v1485_v42 = vmul.f32 %v5944_v47, %v4607_v35  ;;  %v1229_v38 = vadd.f32 %v1197_v60, %v949_v59  ;;  %v1763_v55 = vmul.f32 %v5948_v50, %v5947_v34  ;;  %v2043_v56 = vmul.f32 %v5954_v54, %v4575_v22  ;;  %v5955_v59 = vld [vmem:[#allocation99_spill] sm:$0xff] }
 0x4d6   :  { %v1503_v39 = vadd.f32 %v1471_v3, %v1223_v5  ;;  %v5956_v5 = vld [vmem:[#allocation107_spill] sm:$0xff]  ;;  %v4966_v35 = vmul.f32 %v5960_v7, %v4587_v49  ;;  %v5970_v49 = vld [vmem:[#allocation82_spill] sm:$0xff] }
 0x4d7   :  { %v1517_v51 = vadd.f32 %v1485_v42, %v1237_v13  ;;  %v1477_v3 = vmul.f32 %v5956_v5, %v5955_v59  ;;  %v1795_v60 = vadd.f32 %v1763_v55, %v1515_v4  ;;  %v1507_v13 = vadd.f32 %v1475_v61, %v1227_v36  ;;  %v5958_v42 = vld [vmem:[#allocation57_spill] sm:$0xff]  ;;  %v5963_v4 = vld [vmem:[#allocation191_spill] sm:$0xff]  ;;  %v5964_v55 = vld [vmem:[#allocation138_spill] sm:$0xff] }
 0x4d8   :  { %v4952_v47 = vpop.permute.xlu0 %2505  ;;  %v1783_v50 = vadd.f32 %v1751_v33, %v1503_v39  ;;  %v4962_v6 = vmul.f32 %v5958_v42, %v4583_v17  ;;  %5961 = vst [vmem:[#allocation210_spill] sm:$0xff] %v4966_v35  ;;  %v2045_v5 = vmul.f32 %v5962_v2, %v4617_v0  ;;  %v2031_v22 = vmul.f32 %v5964_v55, %v5963_v4  ;;  %v5966_v39 = vld [vmem:[#allocation119_spill] sm:$0xff]  ;;  %v5967_v36 = vld [vmem:[#allocation102_spill] sm:$0xff]  ;;  %v5968_v33 = vld [vmem:[#allocation120_spill] sm:$0xff] }
 0x4d9   :  { %5953 = vst [vmem:[#allocation16_spill] sm:$0xff] %v4952_v47  ;;  %v1509_v47 = vadd.f32 %v1477_v3, %v1229_v38  ;;  %v1797_v54 = vadd.f32 %v1765_v25, %v1517_v51  ;;  %v1755_v61 = vmul.f32 %v5966_v39, %v5965_v9  ;;  %v1757_v17 = vmul.f32 %v5968_v33, %v5967_v36  ;;  %v5969_v42 = vld [vmem:[#allocation67_spill] sm:$0xff]  ;;  %v5973_v3 = vld [vmem:[#allocation196_spill] sm:$0xff] }
 0x4da   :  { %5959 = vst [vmem:[#allocation145_spill] sm:$0xff] %v4962_v6  ;;  %v1215_v19 = vmul.f32 %v5969_v42, %v4591_v23  ;;  %v689_v38 = vmul.f32 %v5970_v49, %v4624_v58  ;;  %v4982_v51 = vadd.f32 %v2043_v56, %v1795_v60  ;;  %v2063_v2 = vadd.f32 %v2031_v22, %v1783_v50  ;;  %v5974_v25 = vld [vmem:[#allocation167_spill] sm:$0xff]  ;;  %v5977_v23 = vld [vmem:[#allocation18_spill] sm:$0xff]  ;;  %v5980_v56 = vld [vmem:[#allocation140_spill] sm:$0xff] }
 0x4db   :  { %v2311_v7 = vmul.f32 %v5974_v25, %v5973_v3  ;;  %v1787_v55 = vadd.f32 %v1755_v61, %v1507_v13  ;;  %v1789_v0 = vadd.f32 %v1757_v17, %v1509_v47  ;;  %v5976_v35 = vld [vmem:[#allocation15_spill] sm:$0xff]  ;;  %v919_v49 = vmul.f32 %v5977_v23, %v5928_v45  ;;  %v5981_v22 = vld [vmem:[#allocation200_spill] sm:$0xff]  ;;  %v5982_v50 = vld [vmem:[#allocation169_spill] sm:$0xff] }
 0x4dc   :  { %5972 = vst [vmem:[#allocation25_spill] sm:$0xff] %v4982_v51  ;;  %v4986_v39 = vpop.permute.xlu0 %2271  ;;  %v1247_v33 = vadd.f32 %v1215_v19, %v967_v14  ;;  %v671_v42 = vmul.f32 %v5976_v35, %v5926_v30  ;;  %v4992_v6 = vadd.f32 %v2045_v5, %v1797_v54  ;;  %v2035_v60 = vmul.f32 %v5980_v56, %v5979_v1  ;;  %v5983_v25 = vld [vmem:[#allocation23_spill] sm:$0xff]  ;;  %v5984_v13 = vld [vmem:[#allocation142_spill] sm:$0xff]  ;;  %v5985_v47 = vld [vmem:[#allocation144_spill] sm:$0xff] }
 0x4dd   :  { %5975 = vst [vmem:[#allocation177_spill] sm:$0xff] %v4986_v39  ;;  %v2315_v51 = vmul.f32 %v5982_v50, %v5981_v22  ;;  %v2037_v61 = vmul.f32 %v5984_v13, %v5983_v25  ;;  %v1495_v19 = vmul.f32 %v5985_v47, %v4595_v44  ;;  %v969_v14 = vadd.f32 %v937_v10, %v689_v38  ;;  %v5986_v35 = vld [vmem:[#allocation72_spill] sm:$0xff]  ;;  %v5989_v56 = vld [vmem:[#allocation170_spill] sm:$0xff] }
 0x4de   :  { %5978 = vst [vmem:[#allocation213_spill] sm:$0xff] %v4992_v6  ;;  %v679_v30 = vmul.f32 %v5986_v35, %v4549_v21  ;;  %v5987_v23 = vld [vmem:[#allocation76_spill] sm:$0xff]  ;;  %v5006_v54 = vadd.f32 %v2311_v7, %v2063_v2  ;;  %v2067_v5 = vadd.f32 %v2035_v60, %v1787_v55  ;;  %v5991_v47 = vld [vmem:[#allocation90_spill] sm:$0xff]  ;;  %v951_v10 = vadd.f32 %v919_v49, %v671_v42  ;;  %v5993_v2 = vld [vmem:[#allocation27_spill] sm:$0xff] }
 0x4df   :  { %v927_v45 = vmul.f32 %v5987_v23, %v5919_v48  ;;  %v5988_v17 = vld [vmem:[#allocation128_spill] sm:$0xff]  ;;  %v2069_v13 = vadd.f32 %v2037_v61, %v1789_v0  ;;  %v1527_v22 = vadd.f32 %v1495_v19, %v1247_v33  ;;  %v1217_v38 = vmul.f32 %v5991_v47, %v4633_v37  ;;  %v5994_v55 = vld [vmem:[#allocation46_spill] sm:$0xff]  ;;  %v5995_v35 = vld [vmem:[#allocation45_spill] sm:$0xff] }
 0x4e0   :  { %v2317_v6 = vmul.f32 %v5989_v56, %v5988_v17  ;;  %v5990_v50 = vld [vmem:[#allocation172_spill] sm:$0xff]  ;;  %v5014_v44 = vpop.permute.xlu0 %2513  ;;  %v910_v7 = vmul.f32 %v5993_v2, %v5916_v43  ;;  %v666_v60 = vmul.f32 %v5994_v55, %v5922_v24  ;;  %v914_v23 = vmul.f32 %v5995_v35, %v5924_v29  ;;  %v5996_v61 = vld [vmem:[#allocation34_spill] sm:$0xff]  ;;  %v6000_v24 = vld [vmem:[#allocation21_spill] sm:$0xff] }
 0x4e1   :  { %v1775_v39 = vmul.f32 %v5990_v50, %v4599_v15  ;;  %v5992_v21 = vld [vmem:[#allocation24_spill] sm:$0xff]  ;;  %v1249_v0 = vadd.f32 %v1217_v38, %v969_v14  ;;  %v959_v33 = vadd.f32 %v927_v45, %v679_v30  ;;  %v673_v19 = vmul.f32 %v5996_v61, %v5910_v26  ;;  %v5997_v42 = vld [vmem:[#allocation38_spill] sm:$0xff] }
 0x4e2   :  { %v662_v48 = vmul.f32 %v5992_v21, %v5914_v46  ;;  %v921_v49 = vmul.f32 %v5997_v42, %v5912_v27  ;;  %v5028_v56 = vadd.f32 %v2315_v51, %v2067_v5  ;;  %v5998_v46 = vld [vmem:[#allocation146_spill] sm:$0xff]  ;;  %v1199_v21 = vmul.f32 %v6000_v24, %v5942_v28  ;;  %v6001_v14 = vld [vmem:[#allocation80_spill] sm:$0xff]  ;;  %v6003_v51 = vld [vmem:[#allocation35_spill] sm:$0xff] }
 0x4e3   :  { %v1497_v50 = vmul.f32 %v5998_v46, %v4637_v52  ;;  %v5999_v43 = vld [vmem:[#allocation174_spill] sm:$0xff]  ;;  %v5036_v29 = vadd.f32 %v1775_v39, %v1527_v22  ;;  %v1207_v30 = vmul.f32 %v6001_v14, %v4603_v8  ;;  %v6002_v45 = vld [vmem:[#allocation32_spill] sm:$0xff]  ;;  %v922_v5 = vmul.f32 %v6003_v51, %v5912_v27  ;;  %v6004_v28 = vld [vmem:[#allocation109_spill] sm:$0xff] }
 0x4e4   :  { %v1777_v47 = vmul.f32 %v5999_v43, %v4642_v18  ;;  %v674_v38 = vmul.f32 %v6002_v45, %v5910_v26  ;;  %v5044_v2 = vadd.f32 %v2317_v6, %v2069_v13  ;;  %v1231_v55 = vadd.f32 %v1199_v21, %v951_v10  ;;  %v6005_v8 = vld [vmem:[#allocation95_spill] sm:$0xff]  ;;  %v6006_v26 = vld [vmem:[#allocation98_spill] sm:$0xff]  ;;  %v5054_v14 = vpop.permute.xlu0 %2524  ;;  %v6008_v27 = vld [vmem:[#allocation29_spill] sm:$0xff] }
 0x4e5   :  { %v942_v35 = vadd.f32 %v910_v7, %v662_v48  ;;  %v946_v61 = vadd.f32 %v914_v23, %v666_v60  ;;  %v1529_v42 = vadd.f32 %v1497_v50, %v1249_v0  ;;  %v5046_v46 = vadd.f32 %v1207_v30, %v959_v33  ;;  %6007 = vst [vmem:[#allocation135_spill] sm:$0xff] %v5054_v14  ;;  %v6009_v13 = vld [vmem:[#allocation47_spill] sm:$0xff] }
 0x4e6   :  { %v1479_v39 = vmul.f32 %v6004_v28, %v5955_v59  ;;  %v953_v22 = vadd.f32 %v921_v49, %v673_v19  ;;  %v683_v43 = vmul.f32 %v6005_v8, %v4651_v31  ;;  %v931_v24 = vmul.f32 %v6006_v26, %v4677_v11  ;;  %v6010_v48 = vld [vmem:[#allocation43_spill] sm:$0xff]  ;;  %v6011_v59 = vld [vmem:[#allocation84_spill] sm:$0xff]  ;;  %v6013_v19 = vld [vmem:[#allocation93_spill] sm:$0xff] }
 0x4e7   :  { %v1190_v6 = vmul.f32 %v6008_v27, %v5932_v41  ;;  %v1194_v10 = vmul.f32 %v6009_v13, %v5940_v40  ;;  %v1201_v7 = vmul.f32 %v6010_v48, %v5930_v57  ;;  %v691_v60 = vmul.f32 %v6011_v59, %v4624_v58  ;;  %v6012_v23 = vld [vmem:[#allocation87_spill] sm:$0xff]  ;;  %v6014_v41 = vld [vmem:[#allocation96_spill] sm:$0xff] }
 0x4e8   :  { %v939_v0 = vmul.f32 %v6012_v23, %v4629_v12  ;;  %v954_v33 = vadd.f32 %v922_v5, %v674_v38  ;;  %v681_v49 = vmul.f32 %v6013_v19, %v4651_v31  ;;  %v1511_v50 = vadd.f32 %v1479_v39, %v1231_v55  ;;  %v6015_v40 = vld [vmem:[#allocation100_spill] sm:$0xff]  ;;  %v6016_v58 = vld [vmem:[#allocation39_spill] sm:$0xff]  ;;  %v6017_v12 = vld [vmem:[#allocation125_spill] sm:$0xff] }
 0x4e9   :  { %v1222_v21 = vadd.f32 %v1190_v6, %v942_v35  ;;  %v1226_v30 = vadd.f32 %v1194_v10, %v946_v61  ;;  %v929_v45 = vmul.f32 %v6014_v41, %v4677_v11  ;;  %v5072_v51 = vmul.f32 %v6015_v40, %v4685_v20  ;;  %v6018_v31 = vld [vmem:[#allocation31_spill] sm:$0xff]  ;;  %v6019_v35 = vld [vmem:[#allocation97_spill] sm:$0xff]  ;;  %v6020_v11 = vld [vmem:[#allocation110_spill] sm:$0xff]  ;;  %v5088_v10 = vpop.permute.xlu0 %2532 }
 0x4ea   :  { %v1233_v28 = vadd.f32 %v1201_v7, %v953_v22  ;;  %v1202_v8 = vmul.f32 %v6016_v58, %v5930_v57  ;;  %v1759_v38 = vmul.f32 %v6017_v12, %v5967_v36  ;;  %v963_v5 = vadd.f32 %v931_v24, %v683_v43  ;;  %v6021_v57 = vld [vmem:[#allocation101_spill] sm:$0xff]  ;;  %v5096_v7 = vpop.permute.xlu1 %2547  ;;  %v6024_v59 = vld [vmem:[#allocation152_spill] sm:$0xff] }
 0x4eb   :  { %v1470_v55 = vmul.f32 %v6018_v31, %v5938_v63  ;;  %v1474_v61 = vmul.f32 %v6019_v35, %v5951_v16  ;;  %v5082_v39 = vadd.f32 %v1777_v47, %v1529_v42  ;;  %v1481_v26 = vmul.f32 %v6020_v11, %v5936_v62  ;;  %v6022_v16 = vld [vmem:[#allocation91_spill] sm:$0xff]  ;;  %v6023_v42 = vld [vmem:[#allocation108_spill] sm:$0xff]  ;;  %v6034_v11 = vld [vmem:[#allocation141_spill] sm:$0xff] }
 0x4ec   :  { %v971_v27 = vadd.f32 %v939_v0, %v691_v60  ;;  %v1234_v22 = vadd.f32 %v1202_v8, %v954_v33  ;;  %v1791_v6 = vadd.f32 %v1759_v38, %v1511_v50  ;;  %v1211_v13 = vmul.f32 %v6021_v57, %v4685_v20  ;;  %v6025_v20 = vld [vmem:[#allocation111_spill] sm:$0xff]  ;;  %v6026_v33 = vld [vmem:[#allocation122_spill] sm:$0xff] }
 0x4ed   :  { %v1502_v36 = vadd.f32 %v1470_v55, %v1222_v21  ;;  %v1506_v43 = vadd.f32 %v1474_v61, %v1226_v30  ;;  %v5090_v24 = vadd.f32 %v929_v45, %v681_v49  ;;  %v1513_v63 = vadd.f32 %v1481_v26, %v1233_v28  ;;  %v6027_v49 = vld [vmem:[#allocation180_spill] sm:$0xff]  ;;  %v6029_v45 = vld [vmem:[#allocation130_spill] sm:$0xff]  ;;  %v5116_v55 = vpop.permute.xlu0 %2543  ;;  %v6033_v35 = vld [vmem:[#allocation139_spill] sm:$0xff] }
 0x4ee   :  { %v1219_v47 = vmul.f32 %v6022_v16, %v4633_v37  ;;  %v1482_v48 = vmul.f32 %v6023_v42, %v5936_v62  ;;  %v2039_v60 = vmul.f32 %v6024_v59, %v5983_v25  ;;  %v1243_v23 = vadd.f32 %v1211_v13, %v963_v5  ;;  %v6028_v37 = vld [vmem:[#allocation127_spill] sm:$0xff]  ;;  %v6038_v57 = vld [vmem:[#allocation182_spill] sm:$0xff] }
 0x4ef   :  { %v1750_v0 = vmul.f32 %v6025_v20, %v5949_v32  ;;  %v1754_v19 = vmul.f32 %v6026_v33, %v5965_v9  ;;  %v2319_v50 = vmul.f32 %v6027_v49, %v5988_v17  ;;  %v1761_v21 = vmul.f32 %v6028_v37, %v5947_v34  ;;  %v6030_v32 = vld [vmem:[#allocation158_spill] sm:$0xff]  ;;  %v6032_v17 = vld [vmem:[#allocation137_spill] sm:$0xff]  ;;  %v6041_v59 = vld [vmem:[#allocation79_spill] sm:$0xff] }
 0x4f0   :  { %v1251_v30 = vadd.f32 %v1219_v47, %v971_v27  ;;  %v1514_v62 = vadd.f32 %v1482_v48, %v1234_v22  ;;  %v2071_v41 = vadd.f32 %v2039_v60, %v1791_v6  ;;  %v1491_v40 = vmul.f32 %v6029_v45, %v4712_v53  ;;  %v6031_v9 = vld [vmem:[#allocation22_spill] sm:$0xff]  ;;  %v6044_v33 = vld [vmem:[#allocation205_spill] sm:$0xff]  ;;  %v6045_v49 = vld [vmem:[#allocation168_spill] sm:$0xff] }
 0x4f1   :  { %v1782_v25 = vadd.f32 %v1750_v0, %v1502_v36  ;;  %v1786_v28 = vadd.f32 %v1754_v19, %v1506_v43  ;;  %v1793_v58 = vadd.f32 %v1761_v21, %v1513_v63  ;;  %v1499_v8 = vmul.f32 %v6030_v32, %v4637_v52  ;;  %v6035_v27 = vld [vmem:[#allocation218_spill] sm:$0xff]  ;;  %v6039_v43 = vld [vmem:[#allocation56_spill] sm:$0xff]  ;;  %v6047_v21 = vld [vmem:[#allocation171_spill] sm:$0xff] }
 0x4f2   :  { %v1779_v12 = vmul.f32 %v6031_v9, %v4642_v18  ;;  %v1762_v38 = vmul.f32 %v6032_v17, %v5947_v34  ;;  %v1523_v31 = vadd.f32 %v1491_v40, %v1243_v23  ;;  %v2030_v61 = vmul.f32 %v6033_v35, %v5963_v4  ;;  %v6036_v22 = vld [vmem:[#allocation154_spill] sm:$0xff]  ;;  %v6040_v63 = vld [vmem:[#allocation160_spill] sm:$0xff]  ;;  %v6049_v45 = vld [vmem:[#allocation207_spill] sm:$0xff] }
 0x4f3   :  { %v2034_v26 = vmul.f32 %v6034_v11, %v5979_v1  ;;  %v2041_v52 = vmul.f32 %v6036_v22, %v6035_v27  ;;  %v6037_v6 = vld [vmem:[#allocation66_spill] sm:$0xff]  ;;  %v1531_v13 = vadd.f32 %v1499_v8, %v1251_v30  ;;  %v2351_v36 = vadd.f32 %v2319_v50, %v2071_v41  ;;  %v6046_v37 = vld [vmem:[#allocation200_spill] sm:$0xff]  ;;  %v6048_v41 = vld [vmem:[#allocation147_spill] sm:$0xff] }
 0x4f4   :  { %v5126_v18 = vmul.f32 %v6038_v57, %v6037_v6  ;;  %v1794_v34 = vadd.f32 %v1762_v38, %v1514_v62  ;;  %v1771_v16 = vmul.f32 %v6040_v63, %v6039_v43  ;;  %v2062_v47 = vadd.f32 %v2030_v61, %v1782_v25  ;;  %v6042_v1 = vld [vmem:[#allocation106_spill] sm:$0xff]  ;;  %v6050_v25 = vld [vmem:[#allocation115_spill] sm:$0xff]  ;;  %v2552_v38 = vpop.permute.xlu0 %2551  ;;  %v6056_v35 = vld [vmem:[#allocation208_spill] sm:$0xff] }
 0x4f5   :  { %v2066_v42 = vadd.f32 %v2034_v26, %v1786_v28  ;;  %v5130_v48 = vadd.f32 %v2041_v52, %v1793_v58  ;;  %v1811_v4 = vadd.f32 %v1779_v12, %v1531_v13  ;;  %v2051_v60 = vmul.f32 %v6042_v1, %v6041_v59  ;;  %v6043_v23 = vld [vmem:[#allocation166_spill] sm:$0xff]  ;;  %v6051_v28 = vld [vmem:[#allocation203_spill] sm:$0xff]  ;;  %v6054_v12 = vld [vmem:[#allocation124_spill] sm:$0xff] }
 0x4f6   :  { %v2042_v20 = vmul.f32 %v6043_v23, %v6035_v27  ;;  %v1803_v0 = vadd.f32 %v1771_v16, %v1523_v31  ;;  %v2322_v19 = vmul.f32 %v6044_v33, %v6037_v6  ;;  %v2310_v50 = vmul.f32 %v6045_v49, %v5973_v3  ;;  %v6052_v32 = vld [vmem:[#allocation194_spill] sm:$0xff]  ;;  %v6059_v22 = vld [vmem:[#allocation75_spill] sm:$0xff]  ;;  %v6062_v63 = vld [vmem:[#allocation177_spill] sm:$0xff] }
 0x4f7   :  { %v2314_v30 = vmul.f32 %v6047_v21, %v6046_v37  ;;  %v2059_v40 = vmul.f32 %v6049_v45, %v6048_v41  ;;  %v5146_v58 = vrot.slane %v6051_v28, %v6050_v25  ;;  %v6053_v8 = vld [vmem:[#allocation206_spill] sm:$0xff]  ;;  %v2323_v17 = vmul.f32 %v6054_v12, %v6037_v6  ;;  %v6060_v57 = vld [vmem:[#allocation83_spill] sm:$0xff]  ;;  %v6063_v6 = vld [vmem:[#allocation153_spill] sm:$0xff] }
 0x4f8   :  { %v2074_v62 = vadd.f32 %v2042_v20, %v1794_v34  ;;  %v2590_v9 = vmul.f32 %v6053_v8, %v6052_v32  ;;  %v6055_v31 = vld [vmem:[#allocation198_spill] sm:$0xff]  ;;  %v2591_v52 = vmul.f32 %v6059_v22, %v6052_v32  ;;  %v6061_v34 = vld [vmem:[#allocation89_spill] sm:$0xff] }
 0x4f9   :  { %v2346_v3 = vadd.f32 %v2314_v30, %v2066_v42  ;;  %v2594_v61 = vmul.f32 %v6056_v35, %v6055_v31  ;;  %v6057_v11 = vld [vmem:[#allocation50_spill] sm:$0xff]  ;;  %v2595_v13 = vmul.f32 %v6060_v57, %v6055_v31  ;;  %v2339_v16 = vmul.f32 %v6062_v63, %v6061_v34  ;;  %v6064_v23 = vld [vmem:[#allocation181_spill] sm:$0xff]  ;;  %v6065_v42 = vld [vmem:[#allocation71_spill] sm:$0xff] }
 0x4fa   :  { %v6058_v26 = vld [vmem:[#allocation126_spill] sm:$0xff]  ;;  %v6067_v49 = vld [vmem:[#allocation77_spill] sm:$0xff]  ;;  %v2083_v30 = vadd.f32 %v2051_v60, %v1803_v0  ;;  %v5170_v45 = vadd.f32 %v2322_v19, %v2074_v62  ;;  %v2091_v28 = vadd.f32 %v2059_v40, %v1811_v4  ;;  %v2619_v32 = vmul.f32 %v2552_v38, %v5146_v58 }
 0x4fb   :  { %v2325_v27 = vmul.f32 %v6058_v26, %v6057_v11  ;;  %v6066_v20 = vld [vmem:[#allocation94_spill] sm:$0xff]  ;;  %v6068_v37 = vld [vmem:[#allocation81_spill] sm:$0xff]  ;;  %v2626_v26 = vadd.f32 %v2594_v61, %v2346_v3  ;;  %v2623_v63 = vadd.f32 %v2591_v52, %v5006_v54  ;;  %v6075_v54 = vld [vmem:[#allocation143_spill] sm:$0xff] }
 0x4fc   :  { %v2055_v33 = vmul.f32 %v6066_v20, %v6065_v42  ;;  %v2599_v21 = vmul.f32 %v6068_v37, %v6063_v6  ;;  %v6069_v8 = vld [vmem:[#allocation25_spill] sm:$0xff]  ;;  %v6077_v52 = vld [vmem:[#allocation11_spill] sm:$0xff] }
 0x4fd   :  { %v2355_v12 = vadd.f32 %v2323_v17, %v6069_v8  ;;  %v6070_v22 = vld [vmem:[#allocation213_spill] sm:$0xff]  ;;  %v6072_v17 = vld [vmem:[#allocation155_spill] sm:$0xff] }
 0x4fe   :  { %v2357_v57 = vadd.f32 %v2325_v27, %v6070_v22  ;;  %v2087_v0 = vadd.f32 %v2055_v33, %v5036_v29  ;;  %v2631_v19 = vadd.f32 %v2599_v21, %v2351_v36  ;;  %v6071_v40 = vld [vmem:[#allocation53_spill] sm:$0xff]  ;;  %v6078_v36 = vld [vmem:[#allocation12_spill] sm:$0xff]  ;;  %v6082_v33 = vld [vmem:[#allocation14_spill] sm:$0xff] }
 0x4ff   :  { %v5183_v38 = vmul.f32 %v6072_v17, %v6071_v40  ;;  %v2603_v61 = vmul.f32 %v6075_v54, %v6071_v40 }
 0x518   :  { %v436_v5 = vpop.xlane.xlu1 %435 }
 0x519   :  { %3244 = vrcp.f32 %v436_v5  ;;  %v2342_v5 = vadd.f32 %v2310_v50, %v2062_v47  ;;  %v2597_v47 = vmul.f32 %v6064_v23, %v6063_v6  ;;  %v2057_v50 = vmul.f32 %v6067_v49, %v6048_v41 }
 0x51a   :  { %v2627_v41 = vadd.f32 %v2595_v13, %v5028_v56  ;;  %v2371_v23 = vadd.f32 %v2339_v16, %v2091_v28  ;;  %v6079_v16 = vld [vmem:[#allocation60_spill] sm:$0xff]  ;;  %v6084_v28 = vld [vmem:[#allocation201_spill] sm:$0xff] }
 0x51b   :  { %v2622_v35 = vadd.f32 %v2590_v9, %v2342_v5  ;;  %v2629_v60 = vadd.f32 %v2597_v47, %v5044_v2  ;;  %v2089_v4 = vadd.f32 %v2057_v50, %v5082_v39  ;;  %v6073_v9 = vld [vmem:[#allocation69_spill] sm:$0xff]  ;;  %v6074_v5 = vld [vmem:[#allocation204_spill] sm:$0xff]  ;;  %v6076_v2 = vld [vmem:[#allocation86_spill] sm:$0xff] }
 0x51c   :  { %v2556_v1 = vpop.permute.xlu1 %2555  ;;  %v2331_v3 = vmul.f32 %v6074_v5, %v6073_v9  ;;  %v2651_v56 = vadd.f32 %v2619_v32, %v2371_v23  ;;  %v6081_v47 = vld [vmem:[#allocation13_spill] sm:$0xff]  ;;  %v6086_v5 = vld [vmem:[#allocation151_spill] sm:$0xff] }
 0x51d   :  { %v2620_v31 = vmul.f32 %v2556_v1, %v5146_v58  ;;  %v6080_v1 = vld [vmem:[#allocation129_spill] sm:$0xff] }
 0x51e   :  { %v2605_v6 = vmul.f32 %v6080_v1, %v6079_v16  ;;  %v6083_v50 = vld [vmem:[#allocation41_spill] sm:$0xff]  ;;  %v6087_v1 = vld [vmem:[#allocation103_spill] sm:$0xff] }
 0x51f   :  { %v2652_v29 = vadd.f32 %v2620_v31, %v6076_v2  ;;  %v6085_v31 = vld [vmem:[#allocation202_spill] sm:$0xff] }
 0x526   :  { %v3245_v62 = vpop.eup %3244 }
 0x527   :  { %v5190_v27 = vrot.slane %v3245_v62, %v6050_v25  ;;  %v2658_v39 = vrot.slane %v3245_v62, %v6077_v52  ;;  %v2662_v13 = vrot.slane %v3245_v62, %v6078_v36  ;;  %v2666_v20 = vrot.slane %v3245_v62, %v6081_v47 }
 0x528   :  { %v5199_v49 = vrot.slane %v3245_v62, %v6082_v33  ;;  %v5202_v37 = vrot.slane %v3245_v62, %v6083_v50 }
 0x529   :  { %v2725_v25 = vmul.f32 %v5190_v27, %v2651_v56  ;;  %v2726_v21 = vmul.f32 %v5190_v27, %v2652_v29  ;;  %v2695_v32 = vmul.f32 %v2658_v39, %v6084_v28  ;;  %v2696_v8 = vmul.f32 %v2658_v39, %v2622_v35  ;;  %v6088_v29 = vld [vmem:[#allocation185_spill] sm:$0xff] }
 0x52a   :  { %v2699_v22 = vmul.f32 %v2662_v13, %v6085_v31  ;;  %v2700_v23 = vmul.f32 %v2662_v13, %v2626_v26  ;;  %v2697_v17 = vmul.f32 %v2658_v39, %v2623_v63  ;;  %v2698_v54 = vmul.f32 %v2658_v39, %v6086_v5 }
 0x52b   :  { %v5209_v2 = vpack.c.bf16 %v2726_v21, %v2725_v25  ;;  %v2727_v52 = vpack.c.bf16 %v2696_v8, %v2695_v32  ;;  %v2701_v36 = vmul.f32 %v2662_v13, %v2627_v41  ;;  %v2702_v47 = vmul.f32 %v2662_v13, %v6087_v1  ;;  %v6089_v21 = vld [vmem:[#allocation179_spill] sm:$0xff]  ;;  %v6091_v8 = vld [vmem:[#allocation157_spill] sm:$0xff] }
 0x52c   :  { %v2729_v33 = vpack.c.bf16 %v2700_v23, %v2699_v22  ;;  %v5212_v50 = vpack.c.bf16 %v2698_v54, %v2697_v17  ;;  %v2703_v56 = vmul.f32 %v2666_v20, %v2629_v60  ;;  %v2704_v14 = vmul.f32 %v2666_v20, %v6088_v29  ;;  %v6090_v32 = vld [vmem:[#allocation55_spill] sm:$0xff]  ;;  %v6092_v60 = vld [vmem:[#allocation193_spill] sm:$0xff] }
 0x52d   :  { %v2771_v28 = vunpack.c.h.b16 %v2727_v52  ;;  %v2770_v35 = vunpack.c.l.b16 %v2727_v52  ;;  %v5215_v42 = vpack.c.bf16 %v2702_v47, %v2701_v36  ;;  %v2705_v26 = vmul.f32 %v2666_v20, %v2631_v19  ;;  %v6093_v23 = vld [vmem:[#allocation209_spill] sm:$0xff]  ;;  %v6094_v19 = vld [vmem:[#allocation68_spill] sm:$0xff] }
 0x52e   :  { %v2363_v63 = vadd.f32 %v2331_v3, %v2083_v30  ;;  %v2635_v31 = vadd.f32 %v2603_v61, %v2355_v12  ;;  %v2637_v39 = vadd.f32 %v2605_v6, %v2357_v57  ;;  %v2731_v25 = vpack.c.bf16 %v2704_v14, %v2703_v56  ;;  %v6095_v57 = vld [vmem:[#allocation64_spill] sm:$0xff]  ;;  %v6096_v61 = vld [vmem:[#allocation113_spill] sm:$0xff] }
 0x52f   :  { %v2335_v41 = vmul.f32 %v6090_v32, %v6089_v21  ;;  %v2611_v13 = vmul.f32 %v5014_v44, %v6091_v8  ;;  %2806 = vperm.xlu1 %3218, %v2771_v28   ;;  %2803 = vperm.xlu0 %3219, %v2770_v35   ;;  %v2706_v22 = vmul.f32 %v2666_v20, %v6092_v60  ;;  %v2775_v5 = vunpack.c.h.b16 %v2729_v33  ;;  %v6097_v20 = vld [vmem:[#allocation92_spill] sm:$0xff]  ;;  %v6098_v36 = vld [vmem:[#allocation149_spill] sm:$0xff] }
 0x530   :  { %v2337_v17 = vmul.f32 %v6093_v23, %v6061_v34  ;;  %v2774_v54 = vunpack.c.l.b16 %v2729_v33  ;;  %v5225_v30 = vrot.slane %v3245_v62, %v6094_v19  ;;  %v2709_v14 = vmul.f32 %v5199_v49, %v2635_v31  ;;  %v6099_v35 = vld [vmem:[#allocation88_spill] sm:$0xff] }
 0x531   :  { %v5227_v12 = vpack.c.bf16 %v2706_v22, %v2705_v26  ;;  %v2710_v3 = vmul.f32 %v5199_v49, %v6095_v57  ;;  %v2711_v44 = vmul.f32 %v5202_v37, %v2637_v39  ;;  %v2601_v6 = vmul.f32 %v6096_v61, %v6071_v40  ;;  %v6102_v22 = vld [vmem:[#allocation161_spill] sm:$0xff]  ;;  %v6107_v61 = vld [vmem:[#allocation210_spill] sm:$0xff] }
 0x532   :  { %v2615_v34 = vmul.f32 %v5088_v10, %v6097_v20  ;;  %v2617_v52 = vmul.f32 %v5116_v55, %v5146_v58  ;;  %v2712_v1 = vmul.f32 %v5202_v37, %v6098_v36  ;;  %v2643_v47 = vadd.f32 %v2611_v13, %v2363_v63 }
 0x533   :  { %v2618_v33 = vmul.f32 %v5096_v7, %v5146_v58  ;;  %2818 = vperm.xlu1 %3218, %v2775_v5   ;;  %2815 = vperm.xlu0 %3219, %v2774_v54   ;;  %v5243_v56 = vpack.c.bf16 %v2710_v3, %v2709_v14  ;;  %v2367_v29 = vadd.f32 %v2335_v41, %v2087_v0  ;;  %v2772_v26 = vunpack.c.l.b16 %v5212_v50  ;;  %v6103_v5 = vld [vmem:[#allocation219_spill] sm:$0xff]  ;;  %v6104_v54 = vld [vmem:[#allocation121_spill] sm:$0xff] }
 0x534   :  { %v2369_v28 = vadd.f32 %v2337_v17, %v2089_v4  ;;  %v5245_v40 = vpack.c.bf16 %v2712_v1, %v2711_v44  ;;  %v5248_v10 = vrot.slane %v3245_v62, %v6099_v35  ;;  %v2353_v55 = vadd.f32 %v5126_v18, %v5130_v48  ;;  %v6100_v62 = vld [vmem:[#allocation156_spill] sm:$0xff]  ;;  %v6101_v48 = vld [vmem:[#allocation159_spill] sm:$0xff]  ;;  %v6106_v44 = vld [vmem:[#allocation145_spill] sm:$0xff] }
 0x535   :  { %v2776_v63 = vunpack.c.l.b16 %v5215_v42  ;;  %v2717_v7 = vmul.f32 %v5225_v30, %v2643_v47  ;;  %v1241_v58 = vadd.f32 %v5072_v51, %v5090_v24  ;;  %v2634_v0 = vadd.f32 %v5183_v38, %v5170_v45  ;;  %v6108_v1 = vld [vmem:[#allocation58_spill] sm:$0xff]  ;;  %v6109_v47 = vld [vmem:[#allocation65_spill] sm:$0xff]  ;;  %v6112_v35 = vld [vmem:[#allocation220_spill] sm:$0xff] }
 0x536   :  { %v2647_v4 = vadd.f32 %v2615_v34, %v2367_v29  ;;  %v2649_v31 = vadd.f32 %v2617_v52, %v2369_v28  ;;  %v2633_v39 = vadd.f32 %v2601_v6, %v2353_v55  ;;  %v2650_v32 = vadd.f32 %v2618_v33, %v6100_v62  ;;  %v6110_v29 = vld [vmem:[#allocation42_spill] sm:$0xff]  ;;  %v6113_v55 = vld [vmem:[#allocation176_spill] sm:$0xff] }
 0x537   :  { %2809 = vperm.xlu0 %3219, %v2772_v26   ;;  %2821 = vperm.xlu1 %3218, %v2776_v63   ;;  %v2779_v18 = vunpack.c.h.b16 %v2731_v25  ;;  %v2718_v41 = vmul.f32 %v5225_v30, %v6101_v48  ;;  %v2778_v13 = vunpack.c.l.b16 %v2731_v25  ;;  %v2722_v51 = vmul.f32 %v5248_v10, %v6102_v22  ;;  %v6105_v25 = vld [vmem:[#allocation123_spill] sm:$0xff]  ;;  %v6114_v63 = vld [vmem:[#allocation150_spill] sm:$0xff] }
 0x538   :  { %v2721_v60 = vmul.f32 %v5248_v10, %v2647_v4  ;;  %v2723_v24 = vmul.f32 %v5190_v27, %v2649_v31  ;;  %v2707_v45 = vmul.f32 %v5199_v49, %v2633_v39  ;;  %v2708_v38 = vmul.f32 %v5199_v49, %v2634_v0  ;;  %v6116_v0 = vld [vmem:[#allocation133_spill] sm:$0xff]  ;;  %v6117_v39 = vld [vmem:[#allocation52_spill] sm:$0xff]  ;;  %v6118_v48 = vld [vmem:[#allocation62_spill] sm:$0xff] }
 0x539   :  { %v5268_v23 = vpack.c.bf16 %v2718_v41, %v2717_v7  ;;  %v2724_v17 = vmul.f32 %v5190_v27, %v2650_v32  ;;  %v1487_v19 = vmul.f32 %v6104_v54, %v6103_v5  ;;  %v1489_v57 = vmul.f32 %v6105_v25, %v4712_v53  ;;  %v6111_v53 = vld [vmem:[#allocation148_spill] sm:$0xff]  ;;  %v6122_v5 = vld [vmem:[#allocation162_spill] sm:$0xff] }
 0x53a   :  { %v5273_v14 = vpack.c.bf16 %v2722_v51, %v2721_v60  ;;  %v965_v6 = vadd.f32 %v6107_v61, %v6106_v44  ;;  %v2777_v27 = vunpack.c.h.b16 %v5215_v42  ;;  %v2773_v52 = vunpack.c.h.b16 %v5212_v50  ;;  %v6119_v41 = vld [vmem:[#allocation132_spill] sm:$0xff] }
 0x53b   :  { %2830 = vperm.xlu1 %3218, %v2779_v18   ;;  %2827 = vperm.xlu0 %3219, %v2778_v13   ;;  %v5277_v3 = vpack.c.bf16 %v2724_v17, %v2723_v24  ;;  %v1519_v49 = vadd.f32 %v1487_v19, %v5046_v46  ;;  %v1521_v34 = vadd.f32 %v1489_v57, %v1241_v58  ;;  %v6115_v46 = vld [vmem:[#allocation178_spill] sm:$0xff]  ;;  %v2780_v32 = vunpack.c.l.b16 %v5227_v12  ;;  %v6121_v51 = vld [vmem:[#allocation16_spill] sm:$0xff]  ;;  %v6123_v19 = vld [vmem:[#allocation71_spill] sm:$0xff] }
 0x53c   :  { %v2733_v36 = vpack.c.bf16 %v2708_v38, %v2707_v45  ;;  %v1213_v33 = vmul.f32 %v6109_v47, %v6108_v1  ;;  %v1767_v28 = vmul.f32 %v6111_v53, %v6110_v29  ;;  %v2047_v26 = vmul.f32 %v6113_v55, %v6112_v35  ;;  %v6124_v25 = vld [vmem:[#allocation216_spill] sm:$0xff] }
 0x53d   :  { %v1769_v7 = vmul.f32 %v6114_v63, %v6039_v43  ;;  %v2049_v58 = vmul.f32 %v6115_v46, %v6041_v59  ;;  %v2327_v4 = vmul.f32 %v6116_v0, %v6057_v11  ;;  %v2329_v62 = vmul.f32 %v6117_v39, %v6073_v9  ;;  %v6120_v59 = vld [vmem:[#allocation175_spill] sm:$0xff] }
 0x53e   :  { %v1245_v42 = vadd.f32 %v1213_v33, %v965_v6  ;;  %v1799_v50 = vadd.f32 %v1767_v28, %v1519_v49  ;;  %v2782_v18 = vunpack.c.l.b16 %v2733_v36  ;;  %v1493_v43 = vmul.f32 %v6119_v41, %v6118_v48  ;;  %v6128_v33 = vld [vmem:[#allocation135_spill] sm:$0xff] }
 0x53f   :  { %2824 = vperm.xlu1 %3218, %v2777_v27   ;;  %2812 = vperm.xlu0 %3219, %v2773_v52   ;;  %v1801_v31 = vadd.f32 %v1769_v7, %v1521_v34  ;;  %v2607_v60 = vmul.f32 %v6120_v59, %v6079_v16  ;;  %v2609_v24 = vmul.f32 %v6121_v51, %v6091_v8  ;;  %v2783_v9 = vunpack.c.h.b16 %v2733_v36  ;;  %v6125_v8 = vld [vmem:[#allocation173_spill] sm:$0xff]  ;;  %v6126_v34 = vld [vmem:[#allocation131_spill] sm:$0xff] }
 0x540   :  { %v2079_v13 = vadd.f32 %v2047_v26, %v1799_v50  ;;  %v1525_v11 = vadd.f32 %v1493_v43, %v1245_v42  ;;  %v2781_v17 = vunpack.c.h.b16 %v5227_v12  ;;  %v1773_v54 = vmul.f32 %v6122_v5, %v4599_v15  ;;  %v6127_v36 = vld [vmem:[#allocation73_spill] sm:$0xff] }
 0x541   :  { %v2081_v22 = vadd.f32 %v2049_v58, %v1801_v31  ;;  %v2053_v57 = vmul.f32 %v6124_v25, %v6123_v19  ;;  %v2333_v6 = vmul.f32 %v6125_v8, %v6089_v21  ;;  %v2714_v27 = vmul.f32 %v5202_v37, %v6126_v34  ;;  %v6129_v7 = vld [vmem:[#allocation49_spill] sm:$0xff] }
 0x542   :  { %v2359_v45 = vadd.f32 %v2327_v4, %v2079_v13  ;;  %v1805_v61 = vadd.f32 %v1773_v54, %v1525_v11  ;;  %v2784_v12 = vunpack.c.l.b16 %v5243_v56  ;;  %v2786_v15 = vunpack.c.l.b16 %v5245_v40 }
 0x543   :  { %2833 = vperm.xlu0 %3219, %v2780_v32   ;;  %2839 = vperm.xlu1 %3218, %v2782_v18   ;;  %v2361_v38 = vadd.f32 %v2329_v62, %v2081_v22  ;;  %v2716_v1 = vmul.f32 %v5225_v30, %v6127_v36  ;;  %v2613_v29 = vmul.f32 %v6128_v33, %v6097_v20  ;;  %v2787_v53 = vunpack.c.h.b16 %v5245_v40  ;;  %v3226_v18 = vld [vmem:[%s5449_s4 + $0x8] sm:$0xff]  }
 0x544   :  { %v2639_v44 = vadd.f32 %v2607_v60, %v2359_v45  ;;  %v2085_v47 = vadd.f32 %v2053_v57, %v1805_v61  ;;  %v2720_v46 = vmul.f32 %v5248_v10, %v6129_v7  ;;  %v2793_v0 = vunpack.c.h.b16 %v5268_v23  ;;  %v6130_v57 = vld [vmem:[#allocation112_spill] sm:$0xff] }
 0x545   :  { %v2641_v16 = vadd.f32 %v2609_v24, %v2361_v38  ;;  %v2796_v4 = vunpack.c.l.b16 %v5273_v14  ;;  %v2799_v31 = vunpack.c.h.b16 %v5277_v3  ;;  %v2797_v39 = vunpack.c.h.b16 %v5273_v14 }
 0x546   :  { %v2713_v49 = vmul.f32 %v5202_v37, %v2639_v44  ;;  %v2365_v21 = vadd.f32 %v2333_v6, %v2085_v47  ;;  %v2785_v37 = vunpack.c.h.b16 %v5243_v56  ;;  %v2792_v56 = vunpack.c.l.b16 %v5268_v23 }
 0x547   :  { %2842 = vperm.xlu0 %3219, %v2783_v9   ;;  %2836 = vperm.xlu1 %3218, %v2781_v17   ;;  %v2715_v52 = vmul.f32 %v5225_v30, %v2641_v16  ;;  %v3298_v62 = vmov 0.0   ;;  %v2801_v32 = vunpack.c.h.b16 %v5209_v2  ;;  %v2800_v23 = vunpack.c.l.b16 %v5209_v2 }
 0x548   :  { %v2736_v28 = vpack.c.bf16 %v2714_v27, %v2713_v49  ;;  %v2645_v55 = vadd.f32 %v2613_v29, %v2365_v21  ;;  %3203 = vmatprep.subr.bf16.mxu1 %v3298_v62  ;;  %3207 = vmatprep.mubr.msk.bf16.mxu1 %vm3299_vm9, %v3298_v62  ;;  %v2902_v44 = vadd.s32 4294967288, %v6130_v57  ;;  %v2909_v16 = vadd.s32 4294967280, %v6130_v57  ;;  %v6131_v49 = vld [vmem:[#allocation10_spill] sm:$0xff] }
 0x549   :  { %v2737_v35 = vpack.c.bf16 %v2716_v1, %v2715_v52  ;;  %3204 = vmatpush3.bf16.msra.mxu1 %v3226_v18  ;;  %v2916_v61 = vadd.s32 4294967272, %v6130_v57  ;;  %v6132_v1 = vld [vmem:[#allocation114_spill] sm:$0xff] }
 0x54a   :  { %v2788_v26 = vunpack.c.l.b16 %v2736_v28  ;;  %v2719_v30 = vmul.f32 %v5248_v10, %v2645_v55  ;;  %v2789_v58 = vunpack.c.h.b16 %v2736_v28  ;;  %v2798_v10 = vunpack.c.l.b16 %v5277_v3  ;;  %v3227_v3 = vld [vmem:[%s5449_s4] sm:$0xff]   ;;  %3205 = vmatprep.subr.bf16.mxu1 %v3298_v62 }
 0x54b   :  { %2845 = vperm.xlu0 %3219, %v2784_v12   ;;  %2851 = vperm.xlu1 %3218, %v2786_v15   ;;  %v2790_v63 = vunpack.c.l.b16 %v2737_v35  ;;  %v2791_v20 = vunpack.c.h.b16 %v2737_v35  ;;  %v5355_v34 = vsub.s32 %v2902_v44, %v6131_v49  ;;  %v5358_v27 = vsub.s32 %v2909_v16, %v6131_v49 }
 0x54c   :  { %v2739_v42 = vpack.c.bf16 %v2720_v46, %v2719_v30  ;;  %v5361_v12 = vsub.s32 %v2916_v61, %v6131_v49 }
 0x54d   :  { %3206 = vmatpush3.bf16.msra.mxu1 %v3227_v3 }
 0x54e   :  { %v2794_v40 = vunpack.c.l.b16 %v2739_v42  ;;  %v2795_v50 = vunpack.c.h.b16 %v2739_v42 }
 0x54f   :  { %2854 = vperm.xlu0 %3219, %v2787_v53   ;;  %2848 = vperm.xlu1 %3218, %v2785_v37  }
 0x553   :  { %2857 = vperm.xlu0 %3219, %v2788_v26   ;;  %2863 = vperm.xlu1 %3218, %v2790_v63  }
 0x557   :  { %2866 = vperm.xlu0 %3219, %v2791_v20   ;;  %2860 = vperm.xlu1 %3218, %v2789_v58  }
 0x55b   :  { %2869 = vperm.xlu0 %3219, %v2792_v56   ;;  %2875 = vperm.xlu1 %3218, %v2794_v40  }
 0x55f   :  { %2878 = vperm.xlu0 %3219, %v2795_v50   ;;  %2872 = vperm.xlu1 %3218, %v2793_v0  }
 0x563   :  { %2881 = vperm.xlu0 %3219, %v2796_v4   ;;  %2887 = vperm.xlu1 %3218, %v2798_v10  }
 0x567   :  { %2890 = vperm.xlu0 %3219, %v2799_v31   ;;  %2884 = vperm.xlu1 %3218, %v2797_v39  }
 0x56b   :  { %2896 = vperm.xlu1 %3218, %v2801_v32   ;;  %2893 = vperm.xlu0 %3219, %v2800_v23  }
 0x5aa   :  { %v2807_v14 = vpop.permute.xlu1 %2806  ;;  %v2804_v48 = vpop.permute.xlu0 %2803 }
 0x5ab   :  { %v2906_v36 = vrot.slane %v2807_v14, %v5355_v34  ;;  %v2901_v47 = vrot.slane %v2804_v48, %v6132_v1 }
 0x5ad   :  { %v2908_v7 = vsel %vm2907_vm10, %v2906_v36, %v2901_v47 }
 0x5ae   :  { %v2819_v41 = vpop.permute.xlu1 %2818  ;;  %v2816_v43 = vpop.permute.xlu0 %2815 }
 0x5af   :  { %v2930_v33 = vrot.slane %v2819_v41, %v5355_v34  ;;  %v2926_v29 = vrot.slane %v2816_v43, %v6132_v1 }
 0x5b1   :  { %v2931_v46 = vsel %vm2907_vm10, %v2930_v33, %v2926_v29 }
 0x5b2   :  { %v2822_v2 = vpop.permute.xlu1 %2821  ;;  %v2810_v13 = vpop.permute.xlu0 %2809 }
 0x5b3   :  { %v2935_v21 = vrot.slane %v2822_v2, %v5358_v27  ;;  %v2913_v53 = vrot.slane %v2810_v13, %v5358_v27 }
 0x5b5   :  { %v2936_v58 = vsel %vm2914_vm11, %v2935_v21, %v2931_v46  ;;  %v2915_v42 = vsel %vm2914_vm11, %v2913_v53, %v2908_v7 }
 0x5b6   :  { %v2831_v59 = vpop.permute.xlu1 %2830  ;;  %v2828_v60 = vpop.permute.xlu0 %2827 }
 0x5b7   :  { %v2949_v37 = vrot.slane %v2831_v59, %v5355_v34  ;;  %v2945_v28 = vrot.slane %v2828_v60, %v6132_v1 }
 0x5b9   :  { %v2950_v56 = vsel %vm2907_vm10, %v2949_v37, %v2945_v28 }
 0x5ba   :  { %v2825_v22 = vpop.permute.xlu1 %2824  ;;  %v2813_v51 = vpop.permute.xlu0 %2812 }
 0x5bb   :  { %v2940_v35 = vrot.slane %v2825_v22, %v5361_v12  ;;  %v2920_v55 = vrot.slane %v2813_v51, %v5361_v12 }
 0x5bd   :  { %v2941_v40 = vsel %vm2921_vm12, %v2940_v35, %v2936_v58  ;;  %v2922_v50 = vsel %vm2921_vm12, %v2920_v55, %v2915_v42 }
 0x5be   :  { %v2840_v24 = vpop.permute.xlu1 %2839  ;;  %v2834_v11 = vpop.permute.xlu0 %2833 }
 0x5bf   :  { %v2954_v30 = vrot.slane %v2834_v11, %v5358_v27  ;;  %v2964_v31 = vrot.slane %v2840_v24, %v6132_v1 }
 0x5c1   :  { %v2955_v39 = vsel %vm2914_vm11, %v2954_v30, %v2950_v56  ;;  %v3180_v30 = vld [vmem:[%s5451_s6] ss:$0 sm:$0xff] }
 0x5c2   :  { %v2837_v45 = vpop.permute.xlu1 %2836  ;;  %v2843_v38 = vpop.permute.xlu0 %2842 }
 0x5c3   :  { %v2959_v20 = vrot.slane %v2837_v45, %v5361_v12  ;;  %v2968_v0 = vrot.slane %v2843_v38, %v5355_v34 }
 0x5c5   :  { %v2960_v23 = vsel %vm2921_vm12, %v2959_v20, %v2955_v39  ;;  %v2969_v13 = vsel %vm2907_vm10, %v2968_v0, %v2964_v31 }
 0x5c6   :  { %v5341_v9 = vpop.permute.xlu1 %2851  ;;  %v2846_v17 = vpop.permute.xlu0 %2845 }
 0x5c7   :  { %v2973_v62 = vrot.slane %v2846_v17, %v5358_v27  ;;  %v2983_v48 = vrot.slane %v5341_v9, %v6132_v1 }
 0x5c9   :  { %v2974_v11 = vsel %vm2914_vm11, %v2973_v62, %v2969_v13 }
 0x5ca   :  { %v5343_v5 = vpop.permute.xlu1 %2848  ;;  %v2855_v54 = vpop.permute.xlu0 %2854 }
 0x5cb   :  { %v2987_v32 = vrot.slane %v2855_v54, %v5355_v34  ;;  %v2978_v18 = vrot.slane %v5343_v5, %v5361_v12 }
 0x5cd   :  { %v2988_v45 = vsel %vm2907_vm10, %v2987_v32, %v2983_v48  ;;  %v2979_v17 = vsel %vm2921_vm12, %v2978_v18, %v2974_v11 }
 0x5ce   :  { %v5345_v19 = vpop.permute.xlu1 %2863  ;;  %v5347_v25 = vpop.permute.xlu0 %2857 }
 0x5cf   :  { %v2992_v3 = vrot.slane %v5347_v25, %v5358_v27  ;;  %v3002_v59 = vrot.slane %v5345_v19, %v6132_v1  ;;  %v3056_v25 = vsel %vm278_vm1, %v2941_v40, %v2922_v50  ;;  %v3133_v40 = vstv %s5453_s8 }
 0x5d0   :  { %v3057_v61 = vsel %vm280_vm2, %v2960_v23, %v3056_v25 }
 0x5d1   :  { %v2993_v5 = vsel %vm2914_vm11, %v2992_v3, %v2988_v45 }
 0x5d2   :  { %v5352_v8 = vpop.permute.xlu1 %2860  ;;  %v2867_v6 = vpop.permute.xlu0 %2866 }
 0x5d3   :  { %v3006_v14 = vrot.slane %v2867_v6, %v5355_v34  ;;  %v2997_v41 = vrot.slane %v5352_v8, %v5361_v12 }
 0x5d5   :  { %v3007_v54 = vsel %vm2907_vm10, %v3006_v14, %v3002_v59  ;;  %v2998_v57 = vsel %vm2921_vm12, %v2997_v41, %v2993_v5 }
 0x5d6   :  { %v2876_v15 = vpop.permute.xlu1 %2875  ;;  %v2870_v52 = vpop.permute.xlu0 %2869 }
 0x5d7   :  { %v3011_v43 = vrot.slane %v2870_v52, %v5358_v27  ;;  %v3021_v38 = vrot.slane %v2876_v15, %v6132_v1 }
 0x5d9   :  { %v3012_v44 = vsel %vm2914_vm11, %v3011_v43, %v3007_v54 }
 0x5da   :  { %v2873_v26 = vpop.permute.xlu1 %2872  ;;  %v2879_v63 = vpop.permute.xlu0 %2878 }
 0x5db   :  { %v3025_v2 = vrot.slane %v2879_v63, %v5355_v34  ;;  %v3016_v60 = vrot.slane %v2873_v26, %v5361_v12 }
 0x5dd   :  { %v3026_v16 = vsel %vm2907_vm10, %v3025_v2, %v3021_v38  ;;  %v3017_v8 = vsel %vm2921_vm12, %v3016_v60, %v3012_v44 }
 0x5de   :  { %v2888_v4 = vpop.permute.xlu1 %2887  ;;  %v2882_v10 = vpop.permute.xlu0 %2881 }
 0x5df   :  { %v3030_v22 = vrot.slane %v2882_v10, %v5358_v27  ;;  %v3040_v6 = vrot.slane %v2888_v4, %v6132_v1 }
 0x5e1   :  { %v3031_v49 = vsel %vm2914_vm11, %v3030_v22, %v3026_v16 }
 0x5e2   :  { %v2885_v51 = vpop.permute.xlu1 %2884  ;;  %v2891_v24 = vpop.permute.xlu0 %2890 }
 0x5e3   :  { %v3035_v9 = vrot.slane %v2885_v51, %v5361_v12  ;;  %v3044_v19 = vrot.slane %v2891_v24, %v5355_v34  ;;  %v3058_v34 = vsel %vm282_vm3, %v2979_v17, %v3057_v61 }
 0x5e4   :  { %v3059_v29 = vsel %vm284_vm4, %v2998_v57, %v3058_v34 }
 0x5e5   :  { %v3036_v36 = vsel %vm2921_vm12, %v3035_v9, %v3031_v49  ;;  %v3045_v21 = vsel %vm2907_vm10, %v3044_v19, %v3040_v6  ;;  %v3060_v53 = vsel %vm286_vm5, %v3017_v8, %v3059_v29 }
 0x5e6   :  { %v2897_v15 = vpop.permute.xlu1 %2896  ;;  %v2894_v52 = vpop.permute.xlu0 %2893  ;;  %v3061_v28 = vsel %vm288_vm6, %v3036_v36, %v3060_v53 }
 0x5e7   :  { %v3054_v47 = vrot.slane %v2897_v15, %v5361_v12  ;;  %v3049_v33 = vrot.slane %v2894_v52, %v5358_v27  ;;  %v3176_v27 = vld [vmem:[%s5450_s5] ss:$0 sm:$0xff]  ;;  %s3300_s5 = smov [#allocation7]  }
 0x5e8   :  { %s3155_s6 = sshll.u32 %s3300_s5, 4  ;;  %s3156_s6 = int_to_ptr.vmem [resolvable:$true] %s3155_s6 }
 0x5e9   :  { %v3050_v37 = vsel %vm2914_vm11, %v3049_v33, %v3045_v21  ;;  %s3270_s30 = scalar_lea.vmem %s3156_s6, 16  ;;  %s3274_s10 = scalar_lea.vmem %s3156_s6, 32 }
 0x5ea   :  { %v3055_v35 = vsel %vm2921_vm12, %v3054_v47, %v3050_v37  ;;  %p3271_p5 = scmp.ne.s32.totalorder %s3156_s6, %s3270_s30  ;;  %p3275_p6 = scmp.lt.s32.totalorder %s3156_s6, %s3156_s6 }
 0x5eb   :  { %v3062_v55 = vsel %vm290_vm7, %v3055_v35, %v3061_v28  ;;  %p3276_p7 = scmp.lt.s32.totalorder %s3274_s10, %s3270_s30 }
 0x5ec   :  { %v3063_v26 = vpack.c.b16 %v3062_v55, %v3062_v55 }
 0x5ed   :  { %p3277_p8 = por %p3276_p7, %p3275_p6 }
 0x5ee   :  { %3208 = vmatmul.mubr.msk.bf16.vlgmr.msra.gmra.mxu1 %vm101_vm0, %v3063_v26 }
 0x5ef   :  { %p3278_p9 = pnand %p3277_p8, %p3271_p5 }
 0x6ae   :  { %v3113_v12 = vpop.f32.mrf.mxu1 }
 0x6af   :  { %v3114_v63 = vadd.f32 %v3176_v27, %v3113_v12 }
 0x6b0   :  { %v3209_v7 = vpop.f32.mrf.mxu1 }
 0x6b1   :  { %v3119_v46 = vmax.f32 %v3114_v63, 0.0 }
 0x6b2   :  { %v3116_v20 = vpop.f32.mrf.mxu1 }
 0x6b3   :  { %v3127_v58 = vmul.f32 %v3180_v30, %v3119_v46 }
 0x6b4   :  { %v3210_v42 = vpop.f32.mrf.mxu1 }
 0x6b5   :  { %v3129_v56 = vsel %vm3128_vm13, %v3127_v58, 0.0 }
 0x6b6   :  { %3130 = vadd.xlane.f32.xlu0 %v3129_v56 }
 0x73f   :  { %v3131_v50 = vpop.xlane.xlu0 %3130 }
 0x740   :  { %v3134_v0 = vadd.f32 %v3133_v40, %v3131_v50 }
 0x742   :  { %v3181_v4 = vmul.f32 -1.442695, %v3134_v0 }
 0x744   :  { %3246 = vpow2.f32 %v3181_v4 }
 0x751   :  { %v3247_v10 = vpop.eup %3246 }
 0x752   :  { %v3138_v31 = vadd.f32 1.0, %v3247_v10 }
 0x754   :  { %3248 = vrcp.f32 %v3138_v31 }
 0x761   :  { %v3249_v39 = vpop.eup %3248 }
 0x762   :  { %v3145_v62 = vrot.slane %v3249_v39, %v6132_v1 }
 0x764   :  { %3148 = vst.msk [vmem:[#allocation7] sm:$0x1] %vm3147_vm14, %v3145_v62 }
 0x765   :  { %3281 = shalt.err (!%p3278_p9)
}
 0x766   :  { %3158 = dma.vmem_to_hbm [thread:$0]  %s3156_s6, 16, %s5454_s9, [#allocation6]  }
 0x767   :  { %3292 = dma.done.wait [#allocation6], 16  }
 0x768   :  { %3293 = vsyncadd [#allocation6], 4294967280 }
 0x769   :  { %3162 = vsyncpa [#allocation5], 1 }
 0x76a   :  { %3163 = vsyncpa [#allocation6], 1 }

</bundles_post_ra>
